<compile_context>
chip_gen: v7x
topology: tpu7x:2x2x1
jax: 0.10.0
libtpu: 0.0.40
codegen_flags: <defaults>
</compile_context>

<pallas_src>
import math
import jax
import jax.numpy as jnp
from jax.experimental import pallas as pl
from jax.experimental.pallas import tpu as pltpu


# ----------------------------------------------------------------------------
# Pallas kernel
# ----------------------------------------------------------------------------
def make_resblock_kernel(H, W, Cin_p, Cout_p, learnable_sc, downsample):
    HW = H * W
    Ho, Wo = (H // 2, W // 2) if downsample else (H, W)

    def conv3x3(hpad_ref, act, w_ref, b_ref, C):
        """3x3 conv, pad=1. act: (H, W, C) f32 (already activated).
        Returns (H*W, Cout_p) f32 accumulator (bias included)."""
        # H-padded scratch: zero only the two 1-row borders (cheap) and write the
        # interior at an aligned (leading-dim) offset.  No full-buffer clears.
        zrow = jnp.zeros((1, W, C), jnp.float32)
        hpad_ref[0:1] = zrow
        hpad_ref[H + 1:H + 2] = zrow
        hpad_ref[1:H + 1] = act

        full = hpad_ref[...]                                     # (H+2, W, C) f32
        col = jax.lax.broadcasted_iota(jnp.int32, (H + 2, W, C), 1)

        # Accumulator initialized with the bias (saves a full-tensor add).
        acc = jnp.broadcast_to(b_ref[...], (HW, Cout_p)).astype(jnp.float32)

        # kx = horizontal tap.  The W shift (sublane axis) is an XLU roll + border
        # mask instead of a misaligned slice copy.  The H shift (ky) is a free
        # leading-dim slice of the H-padded buffer.
        for kx, shift, kill_col in ((0, 1, 0), (1, 0, None), (2, W - 1, W - 1)):
            sh = full if shift == 0 else pltpu.roll(full, shift=shift, axis=1)
            if kill_col is not None:
                sh = jnp.where(col == kill_col, 0.0, sh)
            shb = sh.astype(jnp.bfloat16)                        # bf16 MXU inputs
            for ky in range(3):
                patch = shb[ky:ky + H].reshape(HW, C)            # (HW, C)
                acc = acc + jnp.dot(patch, w_ref[ky, kx],
                                    preferred_element_type=jnp.float32)
        return acc

    def kernel(*refs):
        refs = list(refs)
        x_ref = refs.pop(0)                       # (1, H, W, Cin_p) f32
        w1_ref = refs.pop(0)                      # (3, 3, Cin_p, Cout_p) bf16
        b1_ref = refs.pop(0)                      # (1, Cout_p) f32
        w2_ref = refs.pop(0)                      # (3, 3, Cout_p, Cout_p) bf16
        b2_ref = refs.pop(0)                      # (1, Cout_p) f32
        wsc_ref = bsc_ref = pool_ref = None
        if learnable_sc:
            wsc_ref = refs.pop(0)                 # (Cin_p, Cout_p) bf16
            bsc_ref = refs.pop(0)                 # (1, Cout_p) f32
        if downsample:
            pool_ref = refs.pop(0)                # (Ho*Wo, H*W) f32 pool matrix
        o_ref = refs.pop(0)                       # (1, Ho, Wo, Cout_p) f32
        hpad1_ref = refs.pop(0)                   # VMEM (H+2, W, Cin_p) f32
        hpad2_ref = refs.pop(0)                   # VMEM (H+2, W, Cout_p) f32

        x = x_ref[0]                              # (H, W, Cin_p) f32

        # residual: conv1(relu(x)) -> conv2(relu(.))
        acc1 = conv3x3(hpad1_ref, jnp.maximum(x, 0.0), w1_ref, b1_ref, Cin_p)
        h1 = jnp.maximum(acc1, 0.0).reshape(H, W, Cout_p)
        acc2 = conv3x3(hpad2_ref, h1, w2_ref, b2_ref, Cout_p)

        # shortcut: 1x1 conv or identity
        if learnable_sc:
            xb = x.astype(jnp.bfloat16).reshape(HW, Cin_p)
            sc = jnp.dot(xb, wsc_ref[...],
                         preferred_element_type=jnp.float32) + bsc_ref[...]
        else:
            sc = x.reshape(HW, Cout_p)            # Cin_p == Cout_p here

        # pooling is linear: pool(res) + pool(sc) == pool(res + sc)
        y = acc2 + sc                             # (HW, Cout_p) f32

        if downsample:
            # fused 2x2 avg-pool: one MXU matmul + one unmasked full-tile store
            o = jnp.dot(pool_ref[...], y, preferred_element_type=jnp.float32)
            o_ref[0] = o.reshape(Ho, Wo, Cout_p)
        else:
            o_ref[0] = y.reshape(H, W, Cout_p)

    return kernel


# ----------------------------------------------------------------------------
# Host wrapper
# ----------------------------------------------------------------------------
def _round_up(n, m):
    return (n + m - 1) // m * m


def _pool_matrix(H, W):
    """(Ho*Wo, H*W) matrix P with P[(i,j),(h,w)] = 0.25 iff h//2==i and w//2==j."""
    Ho, Wo = H // 2, W // 2
    r = jnp.arange(Ho * Wo)
    c = jnp.arange(H * W)
    ri, rj = r // Wo, r % Wo
    ch, cw = c // W, c % W
    sel = (ch[None, :] // 2 == ri[:, None]) & (cw[None, :] // 2 == rj[:, None])
    return jnp.where(sel, 0.25, 0.0).astype(jnp.float32)


def resblock_pallas(x, params, *, downsample):
    """x: (B, H, W, Cin) float32, NHWC. Returns (B, Ho, Wo, Cout) float32."""
    B, H, W, Cin = x.shape
    Cout = params["w1"].shape[-1]
    learnable_sc = (Cin != Cout) or downsample
    Ho, Wo = (H // 2, W // 2) if downsample else (H, W)

    LANE = 128
    Cin_p, Cout_p = _round_up(Cin, LANE), _round_up(Cout, LANE)
    pc_in, pc_out = Cin_p - Cin, Cout_p - Cout

    # Lane-dense layout: pad channels to a multiple of 128 (zeros are inert).
    xp = jnp.pad(x, ((0, 0), (0, 0), (0, 0), (0, pc_in)))
    w1 = jnp.pad(params["w1"], ((0, 0), (0, 0), (0, pc_in), (0, pc_out))).astype(jnp.bfloat16)
    w2 = jnp.pad(params["w2"], ((0, 0), (0, 0), (0, pc_out), (0, pc_out))).astype(jnp.bfloat16)
    b1 = jnp.pad(params["b1"], (0, pc_out)).reshape(1, Cout_p)
    b2 = jnp.pad(params["b2"], (0, pc_out)).reshape(1, Cout_p)

    inputs = [xp, w1, b1, w2, b2]
    in_specs = [
        pl.BlockSpec((1, H, W, Cin_p), lambda b: (b, 0, 0, 0)),
        pl.BlockSpec((3, 3, Cin_p, Cout_p), lambda b: (0, 0, 0, 0)),
        pl.BlockSpec((1, Cout_p), lambda b: (0, 0)),
        pl.BlockSpec((3, 3, Cout_p, Cout_p), lambda b: (0, 0, 0, 0)),
        pl.BlockSpec((1, Cout_p), lambda b: (0, 0)),
    ]
    if learnable_sc:
        wsc = jnp.pad(params["wsc"], ((0, pc_in), (0, pc_out))).astype(jnp.bfloat16)
        bsc = jnp.pad(params["bsc"], (0, pc_out)).reshape(1, Cout_p)
        inputs += [wsc, bsc]
        in_specs += [pl.BlockSpec((Cin_p, Cout_p), lambda b: (0, 0)),
                     pl.BlockSpec((1, Cout_p), lambda b: (0, 0))]
    if downsample:
        inputs.append(_pool_matrix(H, W))
        in_specs.append(pl.BlockSpec((Ho * Wo, H * W), lambda b: (0, 0)))

    kernel = make_resblock_kernel(H, W, Cin_p, Cout_p, learnable_sc, downsample)

    out_p = pl.pallas_call(
        kernel,
        out_shape=jax.ShapeDtypeStruct((B, Ho, Wo, Cout_p), jnp.float32),
        grid_spec=pltpu.PrefetchScalarGridSpec(
            num_scalar_prefetch=0,
            grid=(B,),
            in_specs=in_specs,
            out_specs=pl.BlockSpec((1, Ho, Wo, Cout_p), lambda b: (b, 0, 0, 0)),
            scratch_shapes=[pltpu.VMEM((H + 2, W, Cin_p), jnp.float32),
                            pltpu.VMEM((H + 2, W, Cout_p), jnp.float32)],
        ),
        # One output block per batch element -> parallel is safe; on v7x the two
        # TensorCores split the batch grid.
        compiler_params=pltpu.CompilerParams(dimension_semantics=("parallel",)),
    )(*inputs)

    return out_p[..., :Cout]


# ----------------------------------------------------------------------------
# Parameter setup (deterministic) + pure-JAX reference
# ----------------------------------------------------------------------------
def _l2norm(v, eps=1e-4):
    return v / jnp.maximum(jnp.linalg.norm(v), eps)


def spectral_normalize(w_oihw, key, eps=1e-4):
    # One power iteration, matching torch.nn.utils.spectral_norm(eps=1e-4)
    # forward-in-training behaviour (weight / sigma).
    wm = w_oihw.reshape(w_oihw.shape[0], -1)
    u = _l2norm(jax.random.normal(key, (wm.shape[0],), jnp.float32), eps)
    v = _l2norm(wm.T @ u, eps)
    u = _l2norm(wm @ v, eps)
    sigma = u @ (wm @ v)
    return w_oihw / sigma


def init_params(key, in_ch, out_ch, downsample):
    learnable_sc = (in_ch != out_ch) or downsample
    ks = jax.random.split(key, 9)

    def mk_conv(kw, ku, o, i, k):
        fan = i * k * k
        w = jax.random.normal(kw, (o, i, k, k), jnp.float32) / math.sqrt(fan)
        return spectral_normalize(w, ku)

    w1 = mk_conv(ks[0], ks[1], out_ch, in_ch, 3)
    w2 = mk_conv(ks[3], ks[4], out_ch, out_ch, 3)
    params = {
        "w1": jnp.transpose(w1, (2, 3, 1, 0)),            # OIHW -> HWIO
        "b1": 0.1 * jax.random.normal(ks[2], (out_ch,), jnp.float32),
        "w2": jnp.transpose(w2, (2, 3, 1, 0)),
        "b2": 0.1 * jax.random.normal(ks[5], (out_ch,), jnp.float32),
    }
    if learnable_sc:
        wsc = mk_conv(ks[6], ks[7], out_ch, in_ch, 1)     # (O, I, 1, 1)
        params["wsc"] = jnp.transpose(wsc[:, :, 0, 0], (1, 0))   # (Cin, Cout)
        params["bsc"] = 0.1 * jax.random.normal(ks[8], (out_ch,), jnp.float32)
    return params


def resblock_ref(x, params, downsample):
    def conv(h, w, b, pad):
        y = jax.lax.conv_general_dilated(
            h, w, window_strides=(1, 1), padding=[(pad, pad), (pad, pad)],
            dimension_numbers=("NHWC", "HWIO", "NHWC"),
            precision=jax.lax.Precision.HIGHEST)
        return y + b.reshape(1, 1, 1, -1)

    def avgpool(h):
        B, H, W, C = h.shape
        return h.reshape(B, H // 2, 2, W // 2, 2, C).mean(axis=(2, 4))

    r = conv(jax.nn.relu(x), params["w1"], params["b1"], 1)
    r = conv(jax.nn.relu(r), params["w2"], params["b2"], 1)
    if downsample:
        r = avgpool(r)
    if "wsc" in params:
        Cin, Cout = params["wsc"].shape
        s = conv(x, params["wsc"].reshape(1, 1, Cin, Cout), params["bsc"], 0)
        if downsample:
            s = avgpool(s)
    else:
        s = x
    return r + s


# ----------------------------------------------------------------------------
if __name__ == "__main__":
    key = jax.random.PRNGKey(0)
    B, H, W = 2, 16, 16
    configs = [
        dict(in_ch=4, out_ch=8, downsample=False),   # learnable shortcut (channel change)
        dict(in_ch=8, out_ch=8, downsample=True),    # learnable shortcut + avg-pool
        dict(in_ch=8, out_ch=8, downsample=False),   # identity shortcut
    ]
    for ci, cfg in enumerate(configs):
        kx, kp = jax.random.split(jax.random.fold_in(key, ci))
        x = jax.random.normal(kx, (B, H, W, cfg["in_ch"]), jnp.float32)
        params = init_params(kp, cfg["in_ch"], cfg["out_ch"], cfg["downsample"])

        out = resblock_pallas(x, params, downsample=cfg["downsample"])
        out = jax.block_until_ready(out)

        ref = resblock_ref(x, params, cfg["downsample"])
        err = float(jnp.max(jnp.abs(out - ref)))
        scale = max(1.0, float(jnp.max(jnp.abs(ref))))
        assert err <= 3e-2 * scale, f"config {ci}: max abs err {err}"

    print("KERNEL_OK")
</pallas_src>

<mosaic_0001>
module attributes {stable_mosaic.version = 11 : i64} {
  func.func @kernel(%arg0: i32, %arg1: memref<1x16x16x128xf32, #tpu.memory_space<vmem>>, %arg2: memref<3x3x128x128xbf16, #tpu.memory_space<vmem>>, %arg3: memref<1x128xf32, #tpu.memory_space<vmem>>, %arg4: memref<3x3x128x128xbf16, #tpu.memory_space<vmem>>, %arg5: memref<1x128xf32, #tpu.memory_space<vmem>>, %arg6: memref<128x128xbf16, #tpu.memory_space<vmem>>, %arg7: memref<1x128xf32, #tpu.memory_space<vmem>>, %arg8: memref<1x16x16x128xf32, #tpu.memory_space<vmem>>, %arg9: memref<18x16x128xf32, #tpu.memory_space<vmem>>, %arg10: memref<18x16x128xf32, #tpu.memory_space<vmem>>) attributes {dimension_semantics = [#tpu.dimension_semantics<parallel>], iteration_bounds = array<i64: 2>, scalar_prefetch = 0 : i64, scratch_operands = 2 : i64, tpu.core_type = #tpu.core_type<tc>, window_params = [{transform_indices = @transform_0, window_bounds = array<i64: 1, 16, 16, 128>}, {pipeline_mode = #tpu.pipeline_mode<synchronous>, transform_indices = @transform_1, window_bounds = array<i64: 3, 3, 128, 128>}, {pipeline_mode = #tpu.pipeline_mode<synchronous>, transform_indices = @transform_2, window_bounds = array<i64: 1, 128>}, {pipeline_mode = #tpu.pipeline_mode<synchronous>, transform_indices = @transform_3, window_bounds = array<i64: 3, 3, 128, 128>}, {pipeline_mode = #tpu.pipeline_mode<synchronous>, transform_indices = @transform_4, window_bounds = array<i64: 1, 128>}, {pipeline_mode = #tpu.pipeline_mode<synchronous>, transform_indices = @transform_5, window_bounds = array<i64: 128, 128>}, {pipeline_mode = #tpu.pipeline_mode<synchronous>, transform_indices = @transform_6, window_bounds = array<i64: 1, 128>}, {transform_indices = @transform_7, window_bounds = array<i64: 1, 16, 16, 128>}]} {
    %c0 = arith.constant 0 : index
    %c0_0 = arith.constant 0 : index
    %c0_1 = arith.constant 0 : index
    %c0_2 = arith.constant 0 : index
    %0 = vector.load %arg1[%c0, %c0_0, %c0_1, %c0_2] : memref<1x16x16x128xf32, #tpu.memory_space<vmem>>, vector<1x16x16x128xf32>
    %1 = vector.shape_cast %0 : vector<1x16x16x128xf32> to vector<16x16x128xf32>
    %cst = arith.constant 0.000000e+00 : f32
    %2 = vector.broadcast %cst : f32 to vector<16x16x128xf32>
    %3 = arith.maximumf %1, %2 : vector<16x16x128xf32>
    %cst_3 = arith.constant 0.000000e+00 : f32
    %4 = vector.broadcast %cst_3 : f32 to vector<1x16x128xf32>
    %c0_4 = arith.constant 0 : index
    %c0_5 = arith.constant 0 : index
    %c0_6 = arith.constant 0 : index
    %5 = vector.load %arg9[%c0_4, %c0_5, %c0_6] : memref<18x16x128xf32, #tpu.memory_space<vmem>>, vector<1x16x128xf32>
    tpu.vector_store %arg9[%c0_4, %c0_5, %c0_6], %4 {strides = array<i32>} : memref<18x16x128xf32, #tpu.memory_space<vmem>>, vector<1x16x128xf32>,
    %c17 = arith.constant 17 : index
    %c0_7 = arith.constant 0 : index
    %c0_8 = arith.constant 0 : index
    %6 = vector.load %arg9[%c17, %c0_7, %c0_8] : memref<18x16x128xf32, #tpu.memory_space<vmem>>, vector<1x16x128xf32>
    tpu.vector_store %arg9[%c17, %c0_7, %c0_8], %4 {strides = array<i32>} : memref<18x16x128xf32, #tpu.memory_space<vmem>>, vector<1x16x128xf32>,
    %c1 = arith.constant 1 : index
    %c0_9 = arith.constant 0 : index
    %c0_10 = arith.constant 0 : index
    %7 = vector.load %arg9[%c1, %c0_9, %c0_10] : memref<18x16x128xf32, #tpu.memory_space<vmem>>, vector<16x16x128xf32>
    tpu.vector_store %arg9[%c1, %c0_9, %c0_10], %3 {strides = array<i32>} : memref<18x16x128xf32, #tpu.memory_space<vmem>>, vector<16x16x128xf32>,
    %c0_11 = arith.constant 0 : index
    %c0_12 = arith.constant 0 : index
    %c0_13 = arith.constant 0 : index
    %8 = vector.load %arg9[%c0_11, %c0_12, %c0_13] : memref<18x16x128xf32, #tpu.memory_space<vmem>>, vector<18x16x128xf32>
    %9 = tpu.iota {dimensions = array<i32: 1>} : vector<18x16x128xi32>
    %c0_14 = arith.constant 0 : index
    %c0_15 = arith.constant 0 : index
    %10 = vector.load %arg3[%c0_14, %c0_15] : memref<1x128xf32, #tpu.memory_space<vmem>>, vector<1x128xf32>
    %11 = vector.shape_cast %10 : vector<1x128xf32> to vector<1x128xf32>
    %12 = vector.broadcast %11 : vector<1x128xf32> to vector<256x128xf32>
    %c1_i32 = arith.constant 1 : i32
    %13 = tpu.dynamic_rotate %8 by %c1_i32 dim 1 : vector<18x16x128xf32>, i32 -> vector<18x16x128xf32>
    %c0_i32 = arith.constant 0 : i32
    %14 = vector.broadcast %c0_i32 : i32 to vector<18x16x128xi32>
    %15 = arith.cmpi eq, %9, %14 : vector<18x16x128xi32>
    %cst_16 = arith.constant 0.000000e+00 : f32
    %16 = vector.broadcast %cst_16 : f32 to vector<18x16x128xf32>
    %17 = arith.select %15, %16, %13 : vector<18x16x128xi1>, vector<18x16x128xf32>
    %18 = arith.truncf %17 : vector<18x16x128xf32> to vector<18x16x128xbf16>
    %19 = vector.extract_strided_slice %18 {offsets = [0, 0, 0], sizes = [16, 16, 128], strides = [1, 1, 1]} : vector<18x16x128xbf16> to vector<16x16x128xbf16>
    %20 = vector.shape_cast %19 : vector<16x16x128xbf16> to vector<256x128xbf16>
    %c0_17 = arith.constant 0 : index
    %c0_18 = arith.constant 0 : index
    %c0_19 = arith.constant 0 : index
    %c0_20 = arith.constant 0 : index
    %21 = vector.load %arg2[%c0_17, %c0_18, %c0_19, %c0_20] : memref<3x3x128x128xbf16, #tpu.memory_space<vmem>>, vector<1x1x128x128xbf16>
    %22 = vector.shape_cast %21 : vector<1x1x128x128xbf16> to vector<128x128xbf16>
    %cst_21 = arith.constant dense<0.000000e+00> : vector<256x128xf32>
    %23 = tpu.matmul %20, %22, %cst_21 {dimension_numbers = #tpu.dot_dimension_numbers<[1], [0], [0], [1], [0, 0, 1, 1], [], []>} : vector<256x128xbf16>, vector<128x128xbf16>, vector<256x128xf32> -> vector<256x128xf32>
    %24 = arith.addf %12, %23 : vector<256x128xf32>
    %25 = vector.extract_strided_slice %18 {offsets = [1, 0, 0], sizes = [16, 16, 128], strides = [1, 1, 1]} : vector<18x16x128xbf16> to vector<16x16x128xbf16>
    %26 = vector.shape_cast %25 : vector<16x16x128xbf16> to vector<256x128xbf16>
    %c1_22 = arith.constant 1 : index
    %c0_23 = arith.constant 0 : index
    %c0_24 = arith.constant 0 : index
    %c0_25 = arith.constant 0 : index
    %27 = vector.load %arg2[%c1_22, %c0_23, %c0_24, %c0_25] : memref<3x3x128x128xbf16, #tpu.memory_space<vmem>>, vector<1x1x128x128xbf16>
    %28 = vector.shape_cast %27 : vector<1x1x128x128xbf16> to vector<128x128xbf16>
    %cst_26 = arith.constant dense<0.000000e+00> : vector<256x128xf32>
    %29 = tpu.matmul %26, %28, %cst_26 {dimension_numbers = #tpu.dot_dimension_numbers<[1], [0], [0], [1], [0, 0, 1, 1], [], []>} : vector<256x128xbf16>, vector<128x128xbf16>, vector<256x128xf32> -> vector<256x128xf32>
    %30 = arith.addf %24, %29 : vector<256x128xf32>
    %31 = vector.extract_strided_slice %18 {offsets = [2, 0, 0], sizes = [16, 16, 128], strides = [1, 1, 1]} : vector<18x16x128xbf16> to vector<16x16x128xbf16>
    %32 = vector.shape_cast %31 : vector<16x16x128xbf16> to vector<256x128xbf16>
    %c2 = arith.constant 2 : index
    %c0_27 = arith.constant 0 : index
    %c0_28 = arith.constant 0 : index
    %c0_29 = arith.constant 0 : index
    %33 = vector.load %arg2[%c2, %c0_27, %c0_28, %c0_29] : memref<3x3x128x128xbf16, #tpu.memory_space<vmem>>, vector<1x1x128x128xbf16>
    %34 = vector.shape_cast %33 : vector<1x1x128x128xbf16> to vector<128x128xbf16>
    %cst_30 = arith.constant dense<0.000000e+00> : vector<256x128xf32>
    %35 = tpu.matmul %32, %34, %cst_30 {dimension_numbers = #tpu.dot_dimension_numbers<[1], [0], [0], [1], [0, 0, 1, 1], [], []>} : vector<256x128xbf16>, vector<128x128xbf16>, vector<256x128xf32> -> vector<256x128xf32>
    %36 = arith.addf %30, %35 : vector<256x128xf32>
    %37 = arith.truncf %8 : vector<18x16x128xf32> to vector<18x16x128xbf16>
    %38 = vector.extract_strided_slice %37 {offsets = [0, 0, 0], sizes = [16, 16, 128], strides = [1, 1, 1]} : vector<18x16x128xbf16> to vector<16x16x128xbf16>
    %39 = vector.shape_cast %38 : vector<16x16x128xbf16> to vector<256x128xbf16>
    %c0_31 = arith.constant 0 : index
    %c1_32 = arith.constant 1 : index
    %c0_33 = arith.constant 0 : index
    %c0_34 = arith.constant 0 : index
    %40 = vector.load %arg2[%c0_31, %c1_32, %c0_33, %c0_34] : memref<3x3x128x128xbf16, #tpu.memory_space<vmem>>, vector<1x1x128x128xbf16>
    %41 = vector.shape_cast %40 : vector<1x1x128x128xbf16> to vector<128x128xbf16>
    %cst_35 = arith.constant dense<0.000000e+00> : vector<256x128xf32>
    %42 = tpu.matmul %39, %41, %cst_35 {dimension_numbers = #tpu.dot_dimension_numbers<[1], [0], [0], [1], [0, 0, 1, 1], [], []>} : vector<256x128xbf16>, vector<128x128xbf16>, vector<256x128xf32> -> vector<256x128xf32>
    %43 = arith.addf %36, %42 : vector<256x128xf32>
    %44 = vector.extract_strided_slice %37 {offsets = [1, 0, 0], sizes = [16, 16, 128], strides = [1, 1, 1]} : vector<18x16x128xbf16> to vector<16x16x128xbf16>
    %45 = vector.shape_cast %44 : vector<16x16x128xbf16> to vector<256x128xbf16>
    %c1_36 = arith.constant 1 : index
    %c1_37 = arith.constant 1 : index
    %c0_38 = arith.constant 0 : index
    %c0_39 = arith.constant 0 : index
    %46 = vector.load %arg2[%c1_36, %c1_37, %c0_38, %c0_39] : memref<3x3x128x128xbf16, #tpu.memory_space<vmem>>, vector<1x1x128x128xbf16>
    %47 = vector.shape_cast %46 : vector<1x1x128x128xbf16> to vector<128x128xbf16>
    %cst_40 = arith.constant dense<0.000000e+00> : vector<256x128xf32>
    %48 = tpu.matmul %45, %47, %cst_40 {dimension_numbers = #tpu.dot_dimension_numbers<[1], [0], [0], [1], [0, 0, 1, 1], [], []>} : vector<256x128xbf16>, vector<128x128xbf16>, vector<256x128xf32> -> vector<256x128xf32>
    %49 = arith.addf %43, %48 : vector<256x128xf32>
    %50 = vector.extract_strided_slice %37 {offsets = [2, 0, 0], sizes = [16, 16, 128], strides = [1, 1, 1]} : vector<18x16x128xbf16> to vector<16x16x128xbf16>
    %51 = vector.shape_cast %50 : vector<16x16x128xbf16> to vector<256x128xbf16>
    %c2_41 = arith.constant 2 : index
    %c1_42 = arith.constant 1 : index
    %c0_43 = arith.constant 0 : index
    %c0_44 = arith.constant 0 : index
    %52 = vector.load %arg2[%c2_41, %c1_42, %c0_43, %c0_44] : memref<3x3x128x128xbf16, #tpu.memory_space<vmem>>, vector<1x1x128x128xbf16>
    %53 = vector.shape_cast %52 : vector<1x1x128x128xbf16> to vector<128x128xbf16>
    %cst_45 = arith.constant dense<0.000000e+00> : vector<256x128xf32>
    %54 = tpu.matmul %51, %53, %cst_45 {dimension_numbers = #tpu.dot_dimension_numbers<[1], [0], [0], [1], [0, 0, 1, 1], [], []>} : vector<256x128xbf16>, vector<128x128xbf16>, vector<256x128xf32> -> vector<256x128xf32>
    %55 = arith.addf %49, %54 : vector<256x128xf32>
    %c15_i32 = arith.constant 15 : i32
    %56 = tpu.dynamic_rotate %8 by %c15_i32 dim 1 : vector<18x16x128xf32>, i32 -> vector<18x16x128xf32>
    %c15_i32_46 = arith.constant 15 : i32
    %57 = vector.broadcast %c15_i32_46 : i32 to vector<18x16x128xi32>
    %58 = arith.cmpi eq, %9, %57 : vector<18x16x128xi32>
    %cst_47 = arith.constant 0.000000e+00 : f32
    %59 = vector.broadcast %cst_47 : f32 to vector<18x16x128xf32>
    %60 = arith.select %58, %59, %56 : vector<18x16x128xi1>, vector<18x16x128xf32>
    %61 = arith.truncf %60 : vector<18x16x128xf32> to vector<18x16x128xbf16>
    %62 = vector.extract_strided_slice %61 {offsets = [0, 0, 0], sizes = [16, 16, 128], strides = [1, 1, 1]} : vector<18x16x128xbf16> to vector<16x16x128xbf16>
    %63 = vector.shape_cast %62 : vector<16x16x128xbf16> to vector<256x128xbf16>
    %c0_48 = arith.constant 0 : index
    %c2_49 = arith.constant 2 : index
    %c0_50 = arith.constant 0 : index
    %c0_51 = arith.constant 0 : index
    %64 = vector.load %arg2[%c0_48, %c2_49, %c0_50, %c0_51] : memref<3x3x128x128xbf16, #tpu.memory_space<vmem>>, vector<1x1x128x128xbf16>
    %65 = vector.shape_cast %64 : vector<1x1x128x128xbf16> to vector<128x128xbf16>
    %cst_52 = arith.constant dense<0.000000e+00> : vector<256x128xf32>
    %66 = tpu.matmul %63, %65, %cst_52 {dimension_numbers = #tpu.dot_dimension_numbers<[1], [0], [0], [1], [0, 0, 1, 1], [], []>} : vector<256x128xbf16>, vector<128x128xbf16>, vector<256x128xf32> -> vector<256x128xf32>
    %67 = arith.addf %55, %66 : vector<256x128xf32>
    %68 = vector.extract_strided_slice %61 {offsets = [1, 0, 0], sizes = [16, 16, 128], strides = [1, 1, 1]} : vector<18x16x128xbf16> to vector<16x16x128xbf16>
    %69 = vector.shape_cast %68 : vector<16x16x128xbf16> to vector<256x128xbf16>
    %c1_53 = arith.constant 1 : index
    %c2_54 = arith.constant 2 : index
    %c0_55 = arith.constant 0 : index
    %c0_56 = arith.constant 0 : index
    %70 = vector.load %arg2[%c1_53, %c2_54, %c0_55, %c0_56] : memref<3x3x128x128xbf16, #tpu.memory_space<vmem>>, vector<1x1x128x128xbf16>
    %71 = vector.shape_cast %70 : vector<1x1x128x128xbf16> to vector<128x128xbf16>
    %cst_57 = arith.constant dense<0.000000e+00> : vector<256x128xf32>
    %72 = tpu.matmul %69, %71, %cst_57 {dimension_numbers = #tpu.dot_dimension_numbers<[1], [0], [0], [1], [0, 0, 1, 1], [], []>} : vector<256x128xbf16>, vector<128x128xbf16>, vector<256x128xf32> -> vector<256x128xf32>
    %73 = arith.addf %67, %72 : vector<256x128xf32>
    %74 = vector.extract_strided_slice %61 {offsets = [2, 0, 0], sizes = [16, 16, 128], strides = [1, 1, 1]} : vector<18x16x128xbf16> to vector<16x16x128xbf16>
    %75 = vector.shape_cast %74 : vector<16x16x128xbf16> to vector<256x128xbf16>
    %c2_58 = arith.constant 2 : index
    %c2_59 = arith.constant 2 : index
    %c0_60 = arith.constant 0 : index
    %c0_61 = arith.constant 0 : index
    %76 = vector.load %arg2[%c2_58, %c2_59, %c0_60, %c0_61] : memref<3x3x128x128xbf16, #tpu.memory_space<vmem>>, vector<1x1x128x128xbf16>
    %77 = vector.shape_cast %76 : vector<1x1x128x128xbf16> to vector<128x128xbf16>
    %cst_62 = arith.constant dense<0.000000e+00> : vector<256x128xf32>
    %78 = tpu.matmul %75, %77, %cst_62 {dimension_numbers = #tpu.dot_dimension_numbers<[1], [0], [0], [1], [0, 0, 1, 1], [], []>} : vector<256x128xbf16>, vector<128x128xbf16>, vector<256x128xf32> -> vector<256x128xf32>
    %79 = arith.addf %73, %78 : vector<256x128xf32>
    %cst_63 = arith.constant 0.000000e+00 : f32
    %80 = vector.broadcast %cst_63 : f32 to vector<256x128xf32>
    %81 = arith.maximumf %79, %80 : vector<256x128xf32>
    %82 = vector.shape_cast %81 : vector<256x128xf32> to vector<16x16x128xf32>
    %cst_64 = arith.constant 0.000000e+00 : f32
    %83 = vector.broadcast %cst_64 : f32 to vector<1x16x128xf32>
    %c0_65 = arith.constant 0 : index
    %c0_66 = arith.constant 0 : index
    %c0_67 = arith.constant 0 : index
    %84 = vector.load %arg10[%c0_65, %c0_66, %c0_67] : memref<18x16x128xf32, #tpu.memory_space<vmem>>, vector<1x16x128xf32>
    tpu.vector_store %arg10[%c0_65, %c0_66, %c0_67], %83 {strides = array<i32>} : memref<18x16x128xf32, #tpu.memory_space<vmem>>, vector<1x16x128xf32>,
    %c17_68 = arith.constant 17 : index
    %c0_69 = arith.constant 0 : index
    %c0_70 = arith.constant 0 : index
    %85 = vector.load %arg10[%c17_68, %c0_69, %c0_70] : memref<18x16x128xf32, #tpu.memory_space<vmem>>, vector<1x16x128xf32>
    tpu.vector_store %arg10[%c17_68, %c0_69, %c0_70], %83 {strides = array<i32>} : memref<18x16x128xf32, #tpu.memory_space<vmem>>, vector<1x16x128xf32>,
    %c1_71 = arith.constant 1 : index
    %c0_72 = arith.constant 0 : index
    %c0_73 = arith.constant 0 : index
    %86 = vector.load %arg10[%c1_71, %c0_72, %c0_73] : memref<18x16x128xf32, #tpu.memory_space<vmem>>, vector<16x16x128xf32>
    tpu.vector_store %arg10[%c1_71, %c0_72, %c0_73], %82 {strides = array<i32>} : memref<18x16x128xf32, #tpu.memory_space<vmem>>, vector<16x16x128xf32>,
    %c0_74 = arith.constant 0 : index
    %c0_75 = arith.constant 0 : index
    %c0_76 = arith.constant 0 : index
    %87 = vector.load %arg10[%c0_74, %c0_75, %c0_76] : memref<18x16x128xf32, #tpu.memory_space<vmem>>, vector<18x16x128xf32>
    %88 = tpu.iota {dimensions = array<i32: 1>} : vector<18x16x128xi32>
    %c0_77 = arith.constant 0 : index
    %c0_78 = arith.constant 0 : index
    %89 = vector.load %arg5[%c0_77, %c0_78] : memref<1x128xf32, #tpu.memory_space<vmem>>, vector<1x128xf32>
    %90 = vector.shape_cast %89 : vector<1x128xf32> to vector<1x128xf32>
    %91 = vector.broadcast %90 : vector<1x128xf32> to vector<256x128xf32>
    %c1_i32_79 = arith.constant 1 : i32
    %92 = tpu.dynamic_rotate %87 by %c1_i32_79 dim 1 : vector<18x16x128xf32>, i32 -> vector<18x16x128xf32>
    %c0_i32_80 = arith.constant 0 : i32
    %93 = vector.broadcast %c0_i32_80 : i32 to vector<18x16x128xi32>
    %94 = arith.cmpi eq, %88, %93 : vector<18x16x128xi32>
    %cst_81 = arith.constant 0.000000e+00 : f32
    %95 = vector.broadcast %cst_81 : f32 to vector<18x16x128xf32>
    %96 = arith.select %94, %95, %92 : vector<18x16x128xi1>, vector<18x16x128xf32>
    %97 = arith.truncf %96 : vector<18x16x128xf32> to vector<18x16x128xbf16>
    %98 = vector.extract_strided_slice %97 {offsets = [0, 0, 0], sizes = [16, 16, 128], strides = [1, 1, 1]} : vector<18x16x128xbf16> to vector<16x16x128xbf16>
    %99 = vector.shape_cast %98 : vector<16x16x128xbf16> to vector<256x128xbf16>
    %c0_82 = arith.constant 0 : index
    %c0_83 = arith.constant 0 : index
    %c0_84 = arith.constant 0 : index
    %c0_85 = arith.constant 0 : index
    %100 = vector.load %arg4[%c0_82, %c0_83, %c0_84, %c0_85] : memref<3x3x128x128xbf16, #tpu.memory_space<vmem>>, vector<1x1x128x128xbf16>
    %101 = vector.shape_cast %100 : vector<1x1x128x128xbf16> to vector<128x128xbf16>
    %cst_86 = arith.constant dense<0.000000e+00> : vector<256x128xf32>
    %102 = tpu.matmul %99, %101, %cst_86 {dimension_numbers = #tpu.dot_dimension_numbers<[1], [0], [0], [1], [0, 0, 1, 1], [], []>} : vector<256x128xbf16>, vector<128x128xbf16>, vector<256x128xf32> -> vector<256x128xf32>
    %103 = arith.addf %91, %102 : vector<256x128xf32>
    %104 = vector.extract_strided_slice %97 {offsets = [1, 0, 0], sizes = [16, 16, 128], strides = [1, 1, 1]} : vector<18x16x128xbf16> to vector<16x16x128xbf16>
    %105 = vector.shape_cast %104 : vector<16x16x128xbf16> to vector<256x128xbf16>
    %c1_87 = arith.constant 1 : index
    %c0_88 = arith.constant 0 : index
    %c0_89 = arith.constant 0 : index
    %c0_90 = arith.constant 0 : index
    %106 = vector.load %arg4[%c1_87, %c0_88, %c0_89, %c0_90] : memref<3x3x128x128xbf16, #tpu.memory_space<vmem>>, vector<1x1x128x128xbf16>
    %107 = vector.shape_cast %106 : vector<1x1x128x128xbf16> to vector<128x128xbf16>
    %cst_91 = arith.constant dense<0.000000e+00> : vector<256x128xf32>
    %108 = tpu.matmul %105, %107, %cst_91 {dimension_numbers = #tpu.dot_dimension_numbers<[1], [0], [0], [1], [0, 0, 1, 1], [], []>} : vector<256x128xbf16>, vector<128x128xbf16>, vector<256x128xf32> -> vector<256x128xf32>
    %109 = arith.addf %103, %108 : vector<256x128xf32>
    %110 = vector.extract_strided_slice %97 {offsets = [2, 0, 0], sizes = [16, 16, 128], strides = [1, 1, 1]} : vector<18x16x128xbf16> to vector<16x16x128xbf16>
    %111 = vector.shape_cast %110 : vector<16x16x128xbf16> to vector<256x128xbf16>
    %c2_92 = arith.constant 2 : index
    %c0_93 = arith.constant 0 : index
    %c0_94 = arith.constant 0 : index
    %c0_95 = arith.constant 0 : index
    %112 = vector.load %arg4[%c2_92, %c0_93, %c0_94, %c0_95] : memref<3x3x128x128xbf16, #tpu.memory_space<vmem>>, vector<1x1x128x128xbf16>
    %113 = vector.shape_cast %112 : vector<1x1x128x128xbf16> to vector<128x128xbf16>
    %cst_96 = arith.constant dense<0.000000e+00> : vector<256x128xf32>
    %114 = tpu.matmul %111, %113, %cst_96 {dimension_numbers = #tpu.dot_dimension_numbers<[1], [0], [0], [1], [0, 0, 1, 1], [], []>} : vector<256x128xbf16>, vector<128x128xbf16>, vector<256x128xf32> -> vector<256x128xf32>
    %115 = arith.addf %109, %114 : vector<256x128xf32>
    %116 = arith.truncf %87 : vector<18x16x128xf32> to vector<18x16x128xbf16>
    %117 = vector.extract_strided_slice %116 {offsets = [0, 0, 0], sizes = [16, 16, 128], strides = [1, 1, 1]} : vector<18x16x128xbf16> to vector<16x16x128xbf16>
    %118 = vector.shape_cast %117 : vector<16x16x128xbf16> to vector<256x128xbf16>
    %c0_97 = arith.constant 0 : index
    %c1_98 = arith.constant 1 : index
    %c0_99 = arith.constant 0 : index
    %c0_100 = arith.constant 0 : index
    %119 = vector.load %arg4[%c0_97, %c1_98, %c0_99, %c0_100] : memref<3x3x128x128xbf16, #tpu.memory_space<vmem>>, vector<1x1x128x128xbf16>
    %120 = vector.shape_cast %119 : vector<1x1x128x128xbf16> to vector<128x128xbf16>
    %cst_101 = arith.constant dense<0.000000e+00> : vector<256x128xf32>
    %121 = tpu.matmul %118, %120, %cst_101 {dimension_numbers = #tpu.dot_dimension_numbers<[1], [0], [0], [1], [0, 0, 1, 1], [], []>} : vector<256x128xbf16>, vector<128x128xbf16>, vector<256x128xf32> -> vector<256x128xf32>
    %122 = arith.addf %115, %121 : vector<256x128xf32>
    %123 = vector.extract_strided_slice %116 {offsets = [1, 0, 0], sizes = [16, 16, 128], strides = [1, 1, 1]} : vector<18x16x128xbf16> to vector<16x16x128xbf16>
    %124 = vector.shape_cast %123 : vector<16x16x128xbf16> to vector<256x128xbf16>
    %c1_102 = arith.constant 1 : index
    %c1_103 = arith.constant 1 : index
    %c0_104 = arith.constant 0 : index
    %c0_105 = arith.constant 0 : index
    %125 = vector.load %arg4[%c1_102, %c1_103, %c0_104, %c0_105] : memref<3x3x128x128xbf16, #tpu.memory_space<vmem>>, vector<1x1x128x128xbf16>
    %126 = vector.shape_cast %125 : vector<1x1x128x128xbf16> to vector<128x128xbf16>
    %cst_106 = arith.constant dense<0.000000e+00> : vector<256x128xf32>
    %127 = tpu.matmul %124, %126, %cst_106 {dimension_numbers = #tpu.dot_dimension_numbers<[1], [0], [0], [1], [0, 0, 1, 1], [], []>} : vector<256x128xbf16>, vector<128x128xbf16>, vector<256x128xf32> -> vector<256x128xf32>
    %128 = arith.addf %122, %127 : vector<256x128xf32>
    %129 = vector.extract_strided_slice %116 {offsets = [2, 0, 0], sizes = [16, 16, 128], strides = [1, 1, 1]} : vector<18x16x128xbf16> to vector<16x16x128xbf16>
    %130 = vector.shape_cast %129 : vector<16x16x128xbf16> to vector<256x128xbf16>
    %c2_107 = arith.constant 2 : index
    %c1_108 = arith.constant 1 : index
    %c0_109 = arith.constant 0 : index
    %c0_110 = arith.constant 0 : index
    %131 = vector.load %arg4[%c2_107, %c1_108, %c0_109, %c0_110] : memref<3x3x128x128xbf16, #tpu.memory_space<vmem>>, vector<1x1x128x128xbf16>
    %132 = vector.shape_cast %131 : vector<1x1x128x128xbf16> to vector<128x128xbf16>
    %cst_111 = arith.constant dense<0.000000e+00> : vector<256x128xf32>
    %133 = tpu.matmul %130, %132, %cst_111 {dimension_numbers = #tpu.dot_dimension_numbers<[1], [0], [0], [1], [0, 0, 1, 1], [], []>} : vector<256x128xbf16>, vector<128x128xbf16>, vector<256x128xf32> -> vector<256x128xf32>
    %134 = arith.addf %128, %133 : vector<256x128xf32>
    %c15_i32_112 = arith.constant 15 : i32
    %135 = tpu.dynamic_rotate %87 by %c15_i32_112 dim 1 : vector<18x16x128xf32>, i32 -> vector<18x16x128xf32>
    %c15_i32_113 = arith.constant 15 : i32
    %136 = vector.broadcast %c15_i32_113 : i32 to vector<18x16x128xi32>
    %137 = arith.cmpi eq, %88, %136 : vector<18x16x128xi32>
    %cst_114 = arith.constant 0.000000e+00 : f32
    %138 = vector.broadcast %cst_114 : f32 to vector<18x16x128xf32>
    %139 = arith.select %137, %138, %135 : vector<18x16x128xi1>, vector<18x16x128xf32>
    %140 = arith.truncf %139 : vector<18x16x128xf32> to vector<18x16x128xbf16>
    %141 = vector.extract_strided_slice %140 {offsets = [0, 0, 0], sizes = [16, 16, 128], strides = [1, 1, 1]} : vector<18x16x128xbf16> to vector<16x16x128xbf16>
    %142 = vector.shape_cast %141 : vector<16x16x128xbf16> to vector<256x128xbf16>
    %c0_115 = arith.constant 0 : index
    %c2_116 = arith.constant 2 : index
    %c0_117 = arith.constant 0 : index
    %c0_118 = arith.constant 0 : index
    %143 = vector.load %arg4[%c0_115, %c2_116, %c0_117, %c0_118] : memref<3x3x128x128xbf16, #tpu.memory_space<vmem>>, vector<1x1x128x128xbf16>
    %144 = vector.shape_cast %143 : vector<1x1x128x128xbf16> to vector<128x128xbf16>
    %cst_119 = arith.constant dense<0.000000e+00> : vector<256x128xf32>
    %145 = tpu.matmul %142, %144, %cst_119 {dimension_numbers = #tpu.dot_dimension_numbers<[1], [0], [0], [1], [0, 0, 1, 1], [], []>} : vector<256x128xbf16>, vector<128x128xbf16>, vector<256x128xf32> -> vector<256x128xf32>
    %146 = arith.addf %134, %145 : vector<256x128xf32>
    %147 = vector.extract_strided_slice %140 {offsets = [1, 0, 0], sizes = [16, 16, 128], strides = [1, 1, 1]} : vector<18x16x128xbf16> to vector<16x16x128xbf16>
    %148 = vector.shape_cast %147 : vector<16x16x128xbf16> to vector<256x128xbf16>
    %c1_120 = arith.constant 1 : index
    %c2_121 = arith.constant 2 : index
    %c0_122 = arith.constant 0 : index
    %c0_123 = arith.constant 0 : index
    %149 = vector.load %arg4[%c1_120, %c2_121, %c0_122, %c0_123] : memref<3x3x128x128xbf16, #tpu.memory_space<vmem>>, vector<1x1x128x128xbf16>
    %150 = vector.shape_cast %149 : vector<1x1x128x128xbf16> to vector<128x128xbf16>
    %cst_124 = arith.constant dense<0.000000e+00> : vector<256x128xf32>
    %151 = tpu.matmul %148, %150, %cst_124 {dimension_numbers = #tpu.dot_dimension_numbers<[1], [0], [0], [1], [0, 0, 1, 1], [], []>} : vector<256x128xbf16>, vector<128x128xbf16>, vector<256x128xf32> -> vector<256x128xf32>
    %152 = arith.addf %146, %151 : vector<256x128xf32>
    %153 = vector.extract_strided_slice %140 {offsets = [2, 0, 0], sizes = [16, 16, 128], strides = [1, 1, 1]} : vector<18x16x128xbf16> to vector<16x16x128xbf16>
    %154 = vector.shape_cast %153 : vector<16x16x128xbf16> to vector<256x128xbf16>
    %c2_125 = arith.constant 2 : index
    %c2_126 = arith.constant 2 : index
    %c0_127 = arith.constant 0 : index
    %c0_128 = arith.constant 0 : index
    %155 = vector.load %arg4[%c2_125, %c2_126, %c0_127, %c0_128] : memref<3x3x128x128xbf16, #tpu.memory_space<vmem>>, vector<1x1x128x128xbf16>
    %156 = vector.shape_cast %155 : vector<1x1x128x128xbf16> to vector<128x128xbf16>
    %cst_129 = arith.constant dense<0.000000e+00> : vector<256x128xf32>
    %157 = tpu.matmul %154, %156, %cst_129 {dimension_numbers = #tpu.dot_dimension_numbers<[1], [0], [0], [1], [0, 0, 1, 1], [], []>} : vector<256x128xbf16>, vector<128x128xbf16>, vector<256x128xf32> -> vector<256x128xf32>
    %158 = arith.addf %152, %157 : vector<256x128xf32>
    %159 = arith.truncf %1 : vector<16x16x128xf32> to vector<16x16x128xbf16>
    %160 = vector.shape_cast %159 : vector<16x16x128xbf16> to vector<256x128xbf16>
    %c0_130 = arith.constant 0 : index
    %c0_131 = arith.constant 0 : index
    %161 = vector.load %arg6[%c0_130, %c0_131] : memref<128x128xbf16, #tpu.memory_space<vmem>>, vector<128x128xbf16>
    %cst_132 = arith.constant dense<0.000000e+00> : vector<256x128xf32>
    %162 = tpu.matmul %160, %161, %cst_132 {dimension_numbers = #tpu.dot_dimension_numbers<[1], [0], [0], [1], [0, 0, 1, 1], [], []>} : vector<256x128xbf16>, vector<128x128xbf16>, vector<256x128xf32> -> vector<256x128xf32>
    %c0_133 = arith.constant 0 : index
    %c0_134 = arith.constant 0 : index
    %163 = vector.load %arg7[%c0_133, %c0_134] : memref<1x128xf32, #tpu.memory_space<vmem>>, vector<1x128xf32>
    %164 = vector.broadcast %163 : vector<1x128xf32> to vector<256x128xf32>
    %165 = arith.addf %162, %164 : vector<256x128xf32>
    %166 = arith.addf %158, %165 : vector<256x128xf32>
    %167 = vector.shape_cast %166 : vector<256x128xf32> to vector<16x16x128xf32>
    %c0_135 = arith.constant 0 : index
    %c0_136 = arith.constant 0 : index
    %c0_137 = arith.constant 0 : index
    %c0_138 = arith.constant 0 : index
    %168 = vector.load %arg8[%c0_135, %c0_136, %c0_137, %c0_138] : memref<1x16x16x128xf32, #tpu.memory_space<vmem>>, vector<1x16x16x128xf32>
    %169 = vector.shape_cast %168 : vector<1x16x16x128xf32> to vector<16x16x128xf32>
    %170 = vector.shape_cast %167 : vector<16x16x128xf32> to vector<1x16x16x128xf32>
    tpu.vector_store %arg8[%c0_135, %c0_136, %c0_137, %c0_138], %170 {strides = array<i32>} : memref<1x16x16x128xf32, #tpu.memory_space<vmem>>, vector<1x16x16x128xf32>,
    return
  }
  func.func @transform_0(%arg0: i32) -> (i32, i32, i32, i32) {
    %c0_i32 = arith.constant 0 : i32
    %c0_i32_0 = arith.constant 0 : i32
    %c0_i32_1 = arith.constant 0 : i32
    %c0_i32_2 = arith.constant 0 : i32
    return %arg0, %c0_i32, %c0_i32_0, %c0_i32_1 : i32, i32, i32, i32
  }
  func.func @transform_1(%arg0: i32) -> (i32, i32, i32, i32) {
    %c0_i32 = arith.constant 0 : i32
    %c0_i32_0 = arith.constant 0 : i32
    %c0_i32_1 = arith.constant 0 : i32
    %c0_i32_2 = arith.constant 0 : i32
    %c0_i32_3 = arith.constant 0 : i32
    return %c0_i32, %c0_i32_0, %c0_i32_1, %c0_i32_2 : i32, i32, i32, i32
  }
  func.func @transform_2(%arg0: i32) -> (i32, i32) {
    %c0_i32 = arith.constant 0 : i32
    %c0_i32_0 = arith.constant 0 : i32
    %c0_i32_1 = arith.constant 0 : i32
    return %c0_i32, %c0_i32_0 : i32, i32
  }
  func.func @transform_3(%arg0: i32) -> (i32, i32, i32, i32) {
    %c0_i32 = arith.constant 0 : i32
    %c0_i32_0 = arith.constant 0 : i32
    %c0_i32_1 = arith.constant 0 : i32
    %c0_i32_2 = arith.constant 0 : i32
    %c0_i32_3 = arith.constant 0 : i32
    return %c0_i32, %c0_i32_0, %c0_i32_1, %c0_i32_2 : i32, i32, i32, i32
  }
  func.func @transform_4(%arg0: i32) -> (i32, i32) {
    %c0_i32 = arith.constant 0 : i32
    %c0_i32_0 = arith.constant 0 : i32
    %c0_i32_1 = arith.constant 0 : i32
    return %c0_i32, %c0_i32_0 : i32, i32
  }
  func.func @transform_5(%arg0: i32) -> (i32, i32) {
    %c0_i32 = arith.constant 0 : i32
    %c0_i32_0 = arith.constant 0 : i32
    %c0_i32_1 = arith.constant 0 : i32
    return %c0_i32, %c0_i32_0 : i32, i32
  }
  func.func @transform_6(%arg0: i32) -> (i32, i32) {
    %c0_i32 = arith.constant 0 : i32
    %c0_i32_0 = arith.constant 0 : i32
    %c0_i32_1 = arith.constant 0 : i32
    return %c0_i32, %c0_i32_0 : i32, i32
  }
  func.func @transform_7(%arg0: i32) -> (i32, i32, i32, i32) {
    %c0_i32 = arith.constant 0 : i32
    %c0_i32_0 = arith.constant 0 : i32
    %c0_i32_1 = arith.constant 0 : i32
    %c0_i32_2 = arith.constant 0 : i32
    return %arg0, %c0_i32, %c0_i32_0, %c0_i32_1 : i32, i32, i32, i32
  }
}

</mosaic_0001>

<bundles_post_ra>
// kernel: tpu_custom_call.1
= control target key start
LH: loop header
LB: loop body
LE: loop exit
PB: predicated region body
PF: predicated region fallthrough
CT: control target
= control target key end

     0   :  { %12 = vsyncpa [#allocation5], 0  ;;  %s11532_s0 = inlined_call_operand.hbm [shape: f32[2,16,16,128], index: 0, kind: input, shape index: {}]   ;;  %s11533_s1 = inlined_call_operand.hbm [shape: bf16[3,3,128,128], index: 1, kind: input, shape index: {}]   ;;  %s11534_s2 = inlined_call_operand.vmem [shape: f32[1,128], index: 2, kind: input, shape index: {}]   ;;  %s11535_s3 = inlined_call_operand.hbm [shape: bf16[3,3,128,128], index: 3, kind: input, shape index: {}]   ;;  %s11536_s4 = inlined_call_operand.vmem [shape: f32[1,128], index: 4, kind: input, shape index: {}]   ;;  %s11537_s5 = inlined_call_operand.hbm [shape: bf16[128,128], index: 5, kind: input, shape index: {}]   ;;  %s11538_s6 = inlined_call_operand.vmem [shape: f32[1,128], index: 6, kind: input, shape index: {}]   ;;  %s11539_s7 = inlined_call_operand.hbm [shape: f32[2,16,16,128], index: 7, kind: output, shape index: {}]  }
   0x1   :  { %14 = vsyncpa [#allocation5 + $0x1], 0 }
   0x2   :  { %15 = vsyncpa [#allocation8], 0 }
   0x3   :  { %16 = vsyncpa [#allocation11], 0 }
   0x4   :  { %17 = vsyncpa [#allocation6], 0 }
   0x5   :  { %19 = vsyncpa [#allocation6 + $0x1], 0  ;;  %s9704_s24 = smov 0   ;;  %s9706_s25 = smov 0  }
   0x6   :  { %s9708_s26 = smov 0   ;;  %s9710_s27 = smov 0  }
   0x7 LB: > { %s9725_s28 = sadd.s32 4294967295, %s9648_s27   ;;  %s6219_s29 = sadd.s32 4294967294, %s9648_s27   ;;  %s9648_s27 = sphi %s9710_s27, %s11587_s27   ;;  %s9644_s26 = sphi %s9708_s26, %s11586_s26   ;;  %s9640_s25 = sphi %s9706_s25, %s11585_s25   ;;  %s9636_s24 = sphi %s9704_s24, %s11584_s24  }
   0x8   : > { %p45_p0 = scmp.ne.s32.totalorder %s9640_s25, %s9636_s24  ;;  %p11540_p1 = scmp.eq.s32.totalorder %s9725_s28, 0 }
   0x9   : > { %p201_p3 = scmp.eq.s32.totalorder %s6219_s29, 1  ;;  %p6220_p5 = scmp.ge.s32.totalorder %s9648_s27, 1 }
   0xa   : > { %p9734_p4 = por %p11540_p1, %p45_p0  ;;  %p208_p7 = scmp.lt.s32.totalorder %s9648_s27, 3 }
   0xb   : > { %p9739_p6 = por %p201_p3, %p45_p0  ;;  %s9650_s10 = smov [#allocation7]  }
   0xc   : > { %s11551_s30 = scalar_select %p9734_p4, 1, 0 }
   0xd   : > { %s11552_s8 = scalar_select %p9739_p6, 1, 0 }
   0xe   : > { %p9744_p8 = pnand %p6220_p5, %p208_p7  ;;  %s220_s11 = sshll.u32 %s9650_s10, 4  ;;  %s9748_s11 = int_to_ptr.vmem [resolvable:$true] %s220_s11 }
   0xf   : > { %11553 = sst [smem:[#allocation17_spill]] %s11552_s8  ;;  %s9651_s13 = smov [#allocation9]  }
  0x10   : > { %s11554_s9 = scalar_select %p9744_p8, 1, 0 }
  0x11   : > { %p9206_p9 = pneg %p9744_p8  ;;  %s236_s14 = sshll.u32 %s9651_s13, 4  ;;  %s9759_s14 = int_to_ptr.vmem [resolvable:$true] %s236_s14 }
  0x12   : > { %s9652_s15 = smov [#allocation10]   ;;  %s9460_s19 = scalar_lea.hbm %s11533_s1, 9216 }
  0x13   : > { %p9755_p11 = pnand %p9206_p9, %p11540_p1  ;;  %s9761_s16 = sshll.u32 %s9652_s15, 4  ;;  %s253_s16 = int_to_ptr.vmem [resolvable:$true] %s9761_s16 }
  0x14   : > { %p9461_p12 = scmp.ne.s32.totalorder %s11533_s1, %s9460_s19  ;;  %p9467_p5 = scmp.lt.u32.totalorder %s9460_s19, %s11533_s1 }
  0x15   : > { %p9771_p13 = pneg %p9755_p11 }
  0x17   : > { %p9463_p0 = pnand %p9771_p13, %p9461_p12 }
  0x19   : > { %p9464_p3 = pneg %p9463_p0 }
  0x1b   : > { %p9469_p7 = pnand %p9467_p5, %p9464_p3 }
  0x1d   : > { %9472 = shalt.err (!%p9469_p7)
}
  0x1e   : > { %s9473_s10 = scalar_lea.vmem %s9748_s11, 9216  ;;  %p9481_p2 = scmp.lt.s32.totalorder %s9748_s11, %s9748_s11 }
  0x1f   : > { %p9474_p9 = scmp.ne.s32.totalorder %s9748_s11, %s9473_s10  ;;  %p9482_p6 = scmp.lt.s32.totalorder %s9473_s10, %s9473_s10 }
  0x21   : > { %p9476_p10 = pnand %p9474_p9, %p9771_p13  ;;  %p9483_p12 = por %p9482_p6, %p9481_p2 }
  0x23   : > { %p9477_p1 = pneg %p9476_p10 }
  0x25   : > { %p9484_p0 = pnand %p9483_p12, %p9477_p1 }
  0x27   : > { %9487 = shalt.err (!%p9484_p0)
}
  0x28   : > { %s9653_s13 = smov 64   ;;  %s9654_s15 = smov 4  }
  0x29   : > { %9209 = dma.hbm_to_vmem [thread:$0]  (!%p9755_p11), %s11533_s1, 9216, %s9748_s11, [#allocation8], %s9653_s13, %s9653_s13, %s9654_s15  }
  0x2a   : > { %s9488_s21 = scalar_lea.hbm %s11535_s3, 9216 }
  0x2b   : > { %p9489_p1 = scmp.ne.s32.totalorder %s11535_s3, %s9488_s21  ;;  %p9495_p10 = scmp.lt.u32.totalorder %s9488_s21, %s11535_s3 }
  0x2d   : > { %p9491_p2 = pnand %p9489_p1, %p9771_p13 }
  0x2f   : > { %p9492_p6 = pneg %p9491_p2 }
  0x31   : > { %p9497_p3 = pnand %p9495_p10, %p9492_p6 }
  0x33   : > { %9500 = shalt.err (!%p9497_p3)
}
  0x34   : > { %s9501_s11 = scalar_lea.vmem %s9759_s14, 9216  ;;  %p9509_p12 = scmp.lt.s32.totalorder %s9759_s14, %s9759_s14 }
  0x35   : > { %p9502_p5 = scmp.ne.s32.totalorder %s9759_s14, %s9501_s11  ;;  %p9510_p0 = scmp.lt.s32.totalorder %s9501_s11, %s9501_s11 }
  0x37   : > { %p9504_p7 = pnand %p9502_p5, %p9771_p13  ;;  %p9511_p1 = por %p9510_p0, %p9509_p12 }
  0x39   : > { %p9505_p9 = pneg %p9504_p7 }
  0x3b   : > { %p9512_p2 = pnand %p9511_p1, %p9505_p9 }
  0x3d   : > { %9515 = shalt.err (!%p9512_p2)
}
  0x3e   : > { %9212 = dma.hbm_to_vmem [thread:$0]  (!%p9755_p11), %s11535_s3, 9216, %s9759_s14, [#allocation8], %s9653_s13, %s9653_s13, %s9654_s15  }
  0x3f   : > { %s9516_s20 = scalar_lea.hbm %s11537_s5, 1024 }
  0x40   : > { %p9517_p6 = scmp.ne.s32.totalorder %s11537_s5, %s9516_s20  ;;  %p9523_p5 = scmp.lt.u32.totalorder %s9516_s20, %s11537_s5 }
  0x42   : > { %p9519_p10 = pnand %p9517_p6, %p9771_p13 }
  0x44   : > { %p9520_p3 = pneg %p9519_p10 }
  0x46   : > { %p9525_p7 = pnand %p9523_p5, %p9520_p3 }
  0x48   : > { %9528 = shalt.err (!%p9525_p7)
}
  0x49   : > { %s9529_s11 = scalar_lea.vmem %s253_s16, 1024  ;;  %p9537_p1 = scmp.lt.s32.totalorder %s253_s16, %s253_s16 }
  0x4a   : > { %p9530_p9 = scmp.ne.s32.totalorder %s253_s16, %s9529_s11  ;;  %p9538_p2 = scmp.lt.s32.totalorder %s9529_s11, %s9529_s11 }
  0x4c   : > { %p9532_p12 = pnand %p9530_p9, %p9771_p13  ;;  %p9539_p4 = por %p9538_p2, %p9537_p1 }
  0x4e   : > { %p9533_p0 = pneg %p9532_p12 }
  0x50   : > { %p9540_p8 = pnand %p9539_p4, %p9533_p0 }
  0x52   : > { %9543 = shalt.err (!%p9540_p8)
}
  0x53   : > { %9215 = dma.hbm_to_vmem [thread:$0]  (!%p9755_p11), %s11537_s5, 1024, %s253_s16, [#allocation11], %s9653_s13, %s9653_s13, %s9654_s15  }
  0x54   : > { %s9844_s22 = sadd.s32 1, %s9648_s27   ;;  %s32_s17 = sadd.s32 1, %s9644_s26 }
  0x55   : > { %s29_s12 = ssub.s32 %s9648_s27, %s9844_s22  ;;  %p39_p8 = scmp.ne.s32.totalorder %s9644_s26, %s9640_s25 }
  0x56   : > { %p30_p4 = scmp.eq.s32.totalorder %s29_s12, 0  ;;  %p40_p13 = scmp.eq.s32.totalorder %s9648_s27, 0 }
  0x57   : > { %p9227_p6 = scmp.lt.s32.totalorder %s9648_s27, 2  ;;  %p11557_p3 = scmp.eq.s32.totalorder %s9725_s28, 1 }
  0x58   : > { %s9854_s18 = scalar_select %p30_p4, %s9644_s26, %s32_s17  }
  0x59   : > { %p41_p10 = por %p40_p13, %p39_p8  ;;  %p9858_p5 = por %p11557_p3, %p39_p8 }
  0x5a   : > { %s269_s20 = sand.u32 1, %s9644_s26   ;;  %s7162_s21 = sshll.u32 %s9648_s27, 12 }
  0x5b   : > { %s6225_s16 = sshll.u32 %s269_s20, 8  ;;  %s9867_s23 = scalar_lea.hbm %s11532_s0, %s7162_s21 }
  0x5c   : > { %s273_s29 = scalar_lea.vmem [#allocation4], %s6225_s16  ;;  %p9869_p11 = pnand %p9227_p6, %p41_p10 }
  0x5d   : > { %s280_s10 = sshll.u32 %s273_s29, 4  ;;  %s9875_s14 = scalar_lea.sflag [#allocation5], %s269_s20  ;;  %s9873_s10 = int_to_ptr.vmem [resolvable:$true] %s280_s10 }
  0x5e   : > { %s9544_s8 = scalar_lea.hbm %s9867_s23, 4096  ;;  %p9546_p9 = pneg %p9869_p11 }
  0x5f   : > { %p9545_p7 = scmp.ne.s32.totalorder %s9867_s23, %s9544_s8  ;;  %s9549_s21 = scalar_lea.hbm %s11532_s0, 8192 }
  0x60   : > { %p9550_p1 = scmp.lt.u32.totalorder %s9867_s23, %s11532_s0  ;;  %p9551_p2 = scmp.lt.u32.totalorder %s9549_s21, %s9544_s8 }
  0x61   : > { %p9547_p12 = pnand %p9546_p9, %p9545_p7  ;;  %p9553_p8 = scmp.lt.u32.totalorder %s9544_s8, %s9867_s23 }
  0x62   : > { %p9552_p4 = por %p9551_p2, %p9550_p1 }
  0x63   : > { %p9548_p0 = pneg %p9547_p12 }
  0x64   : > { %p9554_p13 = por %p9553_p8, %p9552_p4 }
  0x66   : > { %p9555_p6 = pnand %p9554_p13, %p9548_p0 }
  0x68   : > { %9558 = shalt.err (!%p9555_p6)
}
  0x69   : > { %s9559_s20 = scalar_lea.vmem %s9873_s10, 4096  ;;  %s9655_s15 = smov [#allocation4]  }
  0x6a   : > { %p9560_p10 = scmp.ne.s32.totalorder %s9873_s10, %s9559_s20  ;;  %s9564_s29 = sshll.u32 %s9655_s15, 4  ;;  %s9565_s29 = int_to_ptr.vmem [resolvable:$false] %s9564_s29 }
  0x6b   : > { %s9566_s12 = scalar_lea.vmem %s9565_s29, 8192  ;;  %p9567_p12 = scmp.lt.s32.totalorder %s9873_s10, %s9565_s29 }
  0x6c   : > { %p9562_p3 = pnand %p9560_p10, %p9546_p9  ;;  %p9568_p1 = scmp.lt.s32.totalorder %s9566_s12, %s9559_s20 }
  0x6e   : > { %p9563_p7 = pneg %p9562_p3  ;;  %p9569_p2 = por %p9568_p1, %p9567_p12 }
  0x70   : > { %p9570_p4 = pnand %p9569_p2, %p9563_p7 }
  0x72   : > { %9573 = shalt.err (!%p9570_p4)
}
  0x73   : > { %s9656_s8 = smov 128   ;;  %s9657_s17 = smov 8  }
  0x74   : > { %9219 = dma.hbm_to_vmem [thread:$0]  (!%p9869_p11), %s9867_s23, 4096, %s9873_s10, %s9875_s14, %s9656_s8, %s9656_s8, %s9657_s17  }
  0x75   : > { %p11560_p9 = scmp.ne.s32.totalorder %s11554_s9, 0 }
  0x77   : > { %292 = sbr.rel (%p11560_p9) target bundleno = 1770 (0x6ea), region = 48 }
  0x7e   : > { %s9906_s21 = sand.u32 1, %s9640_s25   ;;  %p11561_p0 = scmp.ne.s32.totalorder %s11551_s30, 0 }
  0x7f   : > { %s6229_s16 = sshll.u32 %s9906_s21, 8  ;;  %s295_s13 = scalar_lea.sflag [#allocation5], %s9906_s21 }
  0x80   : > { %s9912_s20 = scalar_lea.vmem [#allocation4], %s6229_s16 }
  0x81   : > { %9619 = dma.done.wait (%p11561_p0), %s295_s13, 4096  }
  0x82   : > { %9621 = vsyncadd (%p11561_p0), %s295_s13, 4294963200  ;;  %p11562_p11 = scmp.eq.s32.totalorder %s9725_s28, 0 }
  0x84   : > { %9623 = dma.done.wait (%p11562_p11), [#allocation8], 18432   ;;  %p11563_p8 = pmov %p11562_p11 }
  0x86   : > { %9625 = vsyncadd (%p11563_p8), [#allocation8], 4294948864  ;;  %p11564_p13 = pmov %p11563_p8 }
  0x87   : > { %p11565_p6 = pmov %p11563_p8 }
  0x88   : > { %9627 = dma.done.wait (%p11564_p13), [#allocation11], 1024  }
  0x89   : > { %9629 = vsyncadd (%p11565_p6), [#allocation11], 4294966272  ;;  %v480_v0 = vlaneseq  ;;  %v9658_v1 = vmov 0.0   ;;  %vm9659_vm1 = vmmov 1   ;;  %v9276_v6 = vld [vmem:[#allocation7] sm:$0xff]   ;;  %v9277_v7 = vld [vmem:[#allocation7 + $0x8] sm:$0xff]  }
  0x8a   : > { %v490_v2 = vrot.slane %v9658_v1, 7  ;;  %7622 = vmatprep.subr.bf16.mxu0 %v9276_v6  ;;  %v9278_v8 = vld [vmem:[#allocation7 + $0x10] sm:$0xff]   ;;  %v9279_v9 = vld [vmem:[#allocation7 + $0x18] sm:$0xff]   ;;  %v9280_v10 = vld [vmem:[#allocation7 + $0x20] sm:$0xff]   ;;  %s11415_s15 = scalar_lea.vmem [#allocation12], %s6229_s16  ;;  %s7163_s29 = sshll.u32 %s9725_s28, 12 }
  0x8b   : > { %v9927_v3 = vshrl.u32 %v480_v0, 7  ;;  %7623 = vmatpush3.bf16.msra.mxu0 %v9276_v6  ;;  %v342_v11 = vld [vmem:[%s9912_s20] sm:$0xff]  ;;  %v343_v12 = vld [vmem:[%s9912_s20 + $0x8] sm:$0xff]  ;;  %v344_v13 = vld [vmem:[%s9912_s20 + $0x10] sm:$0xff]  ;;  %s6117_s12 = sshll.u32 %s11415_s15, 4  ;;  %s11483_s16 = scalar_lea.hbm %s11539_s7, %s7163_s29  ;;  %s11485_s12 = int_to_ptr.vmem [resolvable:$true] %s6117_s12 }
  0x8c   : > { %v9929_v4 = vpack.c.bf16 %v490_v2, %v490_v2  ;;  %7624 = vmatprep.subr.bf16.mxu0 %v9277_v7  ;;  %v345_v14 = vld [vmem:[%s9912_s20 + $0x18] sm:$0xff]  ;;  %v9281_v15 = vld [vmem:[#allocation7 + $0x28] sm:$0xff]   ;;  %v9944_v16 = vmax.f32 %v342_v11, 0.0  ;;  %v9946_v17 = vmax.f32 %v343_v12, 0.0  ;;  %v9282_v18 = vld [vmem:[#allocation7 + $0x30] sm:$0xff]   ;;  %v9948_v19 = vmax.f32 %v344_v13, 0.0 }
  0x8d   : > { %vm7164_vm0 = vcmp.ne.s32.totalorder %v9927_v3, 0  ;;  %v9950_v20 = vmax.f32 %v345_v14, 0.0  ;;  %v346_v21 = vld [vmem:[%s9912_s20 + $0x20] sm:$0xff]  ;;  %v347_v22 = vld [vmem:[%s9912_s20 + $0x28] sm:$0xff]  ;;  %v348_v23 = vld [vmem:[%s9912_s20 + $0x30] sm:$0xff]  ;;  %vm526_vm3 = vcmp.lt.s32.totalorder %v9927_v3, 1 }
  0x8e   : > { %vm9933_vm2 = vmpackc.low %vm9659_vm1, %vm7164_vm0  ;;  %v349_v24 = vld [vmem:[%s9912_s20 + $0x38] sm:$0xff]  ;;  %v350_v25 = vld [vmem:[%s9912_s20 + $0x40] sm:$0xff]  ;;  %v491_v26 = vrot.slane %v9944_v16, 7  ;;  %v509_v27 = vrot.slane %v9946_v17, 7  ;;  %v492_v30 = vrot.slane %v9948_v19, 7  ;;  %v9964_v32 = vmax.f32 %v346_v21, 0.0 }
  0x8f   : > { %7638 = vmatprep.mubr.msk.bf16.mxu0 %vm9933_vm2, %v9929_v4  ;;  %7625 = vmatpush3.bf16.msra.mxu0 %v9277_v7  ;;  %v351_v28 = vld [vmem:[%s9912_s20 + $0x48] sm:$0xff]  ;;  %v352_v29 = vld [vmem:[%s9912_s20 + $0x50] sm:$0xff]  ;;  %v510_v31 = vrot.slane %v9950_v20, 7  ;;  %v9966_v33 = vmax.f32 %v347_v22, 0.0  ;;  %v353_v34 = vld [vmem:[%s9912_s20 + $0x58] sm:$0xff]  ;;  %v9969_v36 = vmax.f32 %v348_v23, 0.0 }
  0x90   : > { %7626 = vmatprep.subr.bf16.mxu0 %v9278_v8  ;;  %v9283_v35 = vld [vmem:[#allocation7 + $0x38] sm:$0xff]   ;;  %v9971_v37 = vmax.f32 %v349_v24, 0.0  ;;  %v9973_v38 = vmax.f32 %v350_v25, 0.0  ;;  %v9975_v39 = vmax.f32 %v351_v28, 0.0  ;;  %v9977_v40 = vmax.f32 %v352_v29, 0.0  ;;  %v354_v41 = vld [vmem:[%s9912_s20 + $0x60] sm:$0xff] }
  0x91   : > { %v355_v42 = vld [vmem:[%s9912_s20 + $0x68] sm:$0xff]  ;;  %v528_v43 = vsel %vm526_vm3, %v491_v26, %v509_v27  ;;  %v9983_v44 = vmax.f32 %v353_v34, 0.0  ;;  %v546_v45 = vsel %vm526_vm3, %v509_v27, %v491_v26  ;;  %v529_v46 = vsel %vm526_vm3, %v492_v30, %v510_v31  ;;  %v356_v49 = vld [vmem:[%s9912_s20 + $0x70] sm:$0xff]  ;;  %v357_v50 = vld [vmem:[%s9912_s20 + $0x78] sm:$0xff]  ;;  %s6104_s28 = scalar_lea.sflag [#allocation6], %s9906_s21  ;;  %s9574_s13 = scalar_lea.vmem %s11485_s12, 4096 }
  0x92   : > { %v493_v47 = vrot.slane %v9964_v32, 7  ;;  %v511_v48 = vrot.slane %v9966_v33, 7  ;;  %v547_v51 = vsel %vm526_vm3, %v510_v31, %v492_v30  ;;  %v494_v52 = vrot.slane %v9969_v36, 7  ;;  %v9284_v55 = vld [vmem:[#allocation7 + $0xc0] sm:$0xff]   ;;  %v359_v0 = vld [vmem:[%s9912_s20 + $0x88] sm:$0xff]  ;;  %v361_v11 = vld [vmem:[%s9912_s20 + $0x98] sm:$0xff]  ;;  %p9575_p10 = scmp.ne.s32.totalorder %s11485_s12, %s9574_s13 }
  0x93   : > { %7627 = vmatpush3.bf16.msra.mxu0 %v9278_v8  ;;  %v9996_v53 = vmax.f32 %v354_v41, 0.0  ;;  %v9998_v54 = vmax.f32 %v355_v42, 0.0  ;;  %v512_v56 = vrot.slane %v9971_v37, 7  ;;  %v495_v57 = vrot.slane %v9973_v38, 7  ;;  %v358_v60 = vld [vmem:[%s9912_s20 + $0x80] sm:$0xff]  ;;  %v9285_v6 = vld [vmem:[#allocation7 + $0xc8] sm:$0xff]  }
  0x94   : > { %7628 = vmatprep.subr.bf16.mxu0 %v9279_v9  ;;  %v513_v58 = vrot.slane %v9975_v39, 7  ;;  %v496_v59 = vrot.slane %v9977_v40, 7  ;;  %v514_v61 = vrot.slane %v9983_v44, 7  ;;  %v10006_v62 = vmax.f32 %v356_v49, 0.0  ;;  %v362_v14 = vld [vmem:[%s9912_s20 + $0xa0] sm:$0xff]  ;;  %v364_v21 = vld [vmem:[%s9912_s20 + $0xb0] sm:$0xff]  ;;  %p9576_p3 = pnand %p9575_p10, %p9858_p5 }
  0x95   : > { %v10008_v63 = vmax.f32 %v357_v50, 0.0  ;;  %v10011_v2 = vpack.c.bf16 %v528_v43, %v546_v45  ;;  %v10013_v7 = vpack.c.bf16 %v529_v46, %v547_v51  ;;  %v497_v8 = vrot.slane %v9996_v53, 7  ;;  %v9286_v24 = vld [vmem:[#allocation7 + $0xd0] sm:$0xff]   ;;  %v365_v26 = vld [vmem:[%s9912_s20 + $0xb8] sm:$0xff]  ;;  %v366_v29 = vld [vmem:[%s9912_s20 + $0xc0] sm:$0xff] }
  0x96   : > { %v10019_v12 = vmax.f32 %v358_v60, 0.0  ;;  %v10021_v13 = vmax.f32 %v359_v0, 0.0  ;;  %v530_v22 = vsel %vm526_vm3, %v493_v47, %v511_v48  ;;  %v548_v23 = vsel %vm526_vm3, %v511_v48, %v493_v47  ;;  %v367_v30 = vld [vmem:[%s9912_s20 + $0xc8] sm:$0xff]  ;;  %v9287_v46 = vld [vmem:[#allocation7 + $0xd8] sm:$0xff]   ;;  %p9577_p7 = pneg %p9576_p3 }
  0x97   : > { %7629 = vmatpush3.bf16.msra.mxu0 %v9279_v9  ;;  %v515_v9 = vrot.slane %v9998_v54, 7  ;;  %v516_v25 = vrot.slane %v10008_v63, 7  ;;  %v10041_v28 = vmax.f32 %v361_v11, 0.0  ;;  %v531_v31 = vsel %vm526_vm3, %v494_v52, %v512_v56  ;;  %v9385_v5 = vld [vmem:[#allocation9 + $0x128] sm:$0xff]  }
  0x98   : > { %7630 = vmatprep.subr.bf16.mxu0 %v9280_v10  ;;  %v549_v34 = vsel %vm526_vm3, %v512_v56, %v494_v52  ;;  %v10053_v42 = vpack.c.bf16 %v530_v22, %v548_v23  ;;  %v10055_v43 = vmax.f32 %v364_v21, 0.0  ;;  %v10057_v45 = vmax.f32 %v365_v26, 0.0  ;;  %v368_v26 = vld [vmem:[%s9912_s20 + $0xd0] sm:$0xff] }
  0x99   : > { %v499_v47 = vrot.slane %v10019_v12, 7  ;;  %v517_v48 = vrot.slane %v10021_v13, 7  ;;  %v10061_v49 = vmax.f32 %v366_v29, 0.0  ;;  %v10063_v50 = vmax.f32 %v367_v30, 0.0  ;;  %v369_v29 = vld [vmem:[%s9912_s20 + $0xd8] sm:$0xff] }
  0x9a   : > { %v10065_v51 = vpack.c.bf16 %v531_v31, %v549_v34  ;;  %v502_v0 = vrot.slane %v10055_v43, 7  ;;  %v550_v21 = vsel %vm526_vm3, %v513_v58, %v495_v57  ;;  %v533_v22 = vsel %vm526_vm3, %v496_v59, %v514_v61 }
  0x9b   : > { %7631 = vmatpush3.bf16.msra.mxu0 %v9280_v10  ;;  %v360_v10 = vld [vmem:[%s9912_s20 + $0x90] sm:$0xff]  ;;  %v503_v11 = vrot.slane %v10061_v49, 7  ;;  %v551_v23 = vsel %vm526_vm3, %v514_v61, %v496_v59  ;;  %v10114_v31 = vmax.f32 %v368_v26, 0.0  ;;  %v10116_v59 = vmax.f32 %v369_v29, 0.0  ;;  %v9291_v26 = vld [vmem:[#allocation7 + $0xf8] sm:$0xff]  }
  0x9c   : > { %7632 = vmatprep.subr.bf16.mxu0 %v9281_v15  ;;  %v10039_v27 = vmax.f32 %v360_v10, 0.0  ;;  %v520_v10 = vrot.slane %v10057_v45, 7  ;;  %v534_v61 = vsel %vm526_vm3, %v497_v8, %v515_v9  ;;  %v552_v34 = vsel %vm526_vm3, %v515_v9, %v497_v8 }
  0x9d   : > { %vm2220_vm6 = vcmp.lt.s32.totalorder %v9927_v3, 7 }
  0x9e   : > { %v500_v52 = vrot.slane %v10039_v27, 7 }
  0x9f   : > { %7633 = vmatpush3.bf16.msra.mxu0 %v9281_v15  ;;  %v363_v15 = vld [vmem:[%s9912_s20 + $0xa8] sm:$0xff] }
  0xa0   : > { %7634 = vmatprep.subr.bf16.mxu0 %v9282_v18  ;;  %v10051_v41 = vmax.f32 %v363_v15, 0.0  ;;  %v532_v15 = vsel %vm526_vm3, %v495_v57, %v513_v58  ;;  %v9289_v57 = vld [vmem:[#allocation7 + $0xe8] sm:$0xff]   ;;  %v10109_v58 = vpack.c.bf16 %v533_v22, %v551_v23  ;;  %v10143_v23 = vpack.c.bf16 %v534_v61, %v552_v34 }
  0xa1   : > { %v10107_v30 = vpack.c.bf16 %v532_v15, %v550_v21  ;;  %v370_v21 = vld [vmem:[%s9912_s20 + $0xe0] sm:$0xff]  ;;  %v371_v22 = vld [vmem:[%s9912_s20 + $0xe8] sm:$0xff] }
  0xa2   : > { %v519_v60 = vrot.slane %v10051_v41, 7  ;;  %v10150_v8 = vmax.f32 %v370_v21, 0.0  ;;  %v10152_v9 = vmax.f32 %v371_v22, 0.0 }
  0xa3   : > { %7635 = vmatpush3.bf16.msra.mxu0 %v9282_v18  ;;  %v498_v18 = vrot.slane %v10006_v62, 7 }
  0xa4   : > { %7636 = vmatprep.subr.bf16.mxu0 %v9283_v35 }
  0xa5   : > { %v553_v15 = vsel %vm526_vm3, %v516_v25, %v498_v18 }
  0xa7   : > { %7637 = vmatpush3.bf16.msra.mxu0 %v9283_v35  ;;  %v10049_v35 = vmax.f32 %v362_v14, 0.0  ;;  %v521_v14 = vrot.slane %v10063_v50, 7 }
  0xa8   : > { %7670 = vmatprep.subr.bf16.mxu0 %v9284_v55 }
  0xa9   : > { %v501_v56 = vrot.slane %v10049_v35, 7 }
  0xaa   : > { %7639 = vmatmul.mubr.msk.bf16.vlgmr.msra.gmra.mrb[0].mxu0 %vm9933_vm2, %v10011_v2 }
  0xab   : > { %7671 = vmatpush3.bf16.msra.mxu0 %v9284_v55  ;;  %7642 = vmatprep.mubr.msk.bf16.mxu0 %vm9933_vm2, %v10013_v7  ;;  %v518_v55 = vrot.slane %v10041_v28, 7 }
  0xac   : > { %7672 = vmatprep.subr.bf16.mxu0 %v9285_v6 }
  0xad   : > { %v555_v61 = vsel %vm526_vm3, %v518_v55, %v500_v52 }
  0xaf   : > { %7673 = vmatpush3.bf16.msra.mxu0 %v9285_v6  ;;  %v9288_v6 = vld [vmem:[#allocation7 + $0xe0] sm:$0xff]  }
  0xb0   : > { %7674 = vmatprep.subr.bf16.mxu0 %v9286_v24 }
  0xb2   : > { %7643 = vmatmul.mubr.msk.bf16.gmra.mrb[4].mxu0 %vm9933_vm2, %v10053_v42 }
  0xb3   : > { %7646 = vmatprep.mubr.msk.bf16.mxu0 %vm9933_vm2, %v10065_v51  ;;  %7675 = vmatpush3.bf16.msra.mxu0 %v9286_v24  ;;  %v9290_v24 = vld [vmem:[#allocation7 + $0xf0] sm:$0xff]  }
  0xb4   : > { %7676 = vmatprep.subr.bf16.mxu0 %v9287_v46 }
  0xb7   : > { %7677 = vmatpush3.bf16.msra.mxu0 %v9287_v46  ;;  %v535_v46 = vsel %vm526_vm3, %v498_v18, %v516_v25  ;;  %v536_v18 = vsel %vm526_vm3, %v499_v47, %v517_v48  ;;  %v554_v25 = vsel %vm526_vm3, %v517_v48, %v499_v47  ;;  %v504_v47 = vrot.slane %v10114_v31, 7 }
  0xb8   : > { %7678 = vmatprep.subr.bf16.mxu0 %v9288_v6  ;;  %v10145_v29 = vpack.c.bf16 %v535_v46, %v553_v15  ;;  %v10165_v34 = vpack.c.bf16 %v536_v18, %v554_v25  ;;  %v522_v48 = vrot.slane %v10116_v59, 7  ;;  %v557_v15 = vsel %vm526_vm3, %v520_v10, %v502_v0 }
  0xb9   : > { %v523_v18 = vrot.slane %v10152_v9, 7 }
  0xba   : > { %7647 = vmatmul.mubr.msk.bf16.gmra.mrb[8].mxu0 %vm9933_vm2, %v10107_v30 }
  0xbb   : > { %7650 = vmatprep.mubr.msk.bf16.mxu0 %vm9933_vm2, %v10109_v58  ;;  %7679 = vmatpush3.bf16.msra.mxu0 %v9288_v6  ;;  %v9292_v6 = vld [vmem:[#allocation7 + $0x180] sm:$0xff]  }
  0xbc   : > { %7680 = vmatprep.subr.bf16.mxu0 %v9289_v57 }
  0xbf   : > { %7681 = vmatpush3.bf16.msra.mxu0 %v9289_v57  ;;  %v537_v57 = vsel %vm526_vm3, %v500_v52, %v518_v55  ;;  %v538_v52 = vsel %vm526_vm3, %v501_v56, %v519_v60  ;;  %v556_v55 = vsel %vm526_vm3, %v519_v60, %v501_v56  ;;  %v540_v56 = vsel %vm526_vm3, %v503_v11, %v521_v14 }
  0xc0   : > { %7682 = vmatprep.subr.bf16.mxu0 %v9290_v24  ;;  %v10167_v46 = vpack.c.bf16 %v537_v57, %v555_v61  ;;  %v10185_v21 = vpack.c.bf16 %v538_v52, %v556_v55  ;;  %v558_v60 = vsel %vm526_vm3, %v521_v14, %v503_v11  ;;  %v9295_v52 = vld [vmem:[#allocation7 + $0x198] sm:$0xff]   ;;  %v9298_v55 = vld [vmem:[#allocation7 + $0x1b0] sm:$0xff]  }
  0xc1   : > { %v10213_v25 = vpack.c.bf16 %v540_v56, %v558_v60 }
  0xc2   : > { %7651 = vmatmul.mubr.msk.bf16.gmra.mrb[12].mxu0 %vm9933_vm2, %v10143_v23 }
  0xc3   : > { %7654 = vmatprep.mubr.msk.bf16.mxu0 %vm9933_vm2, %v10145_v29  ;;  %7683 = vmatpush3.bf16.msra.mxu0 %v9290_v24  ;;  %v539_v24 = vsel %vm526_vm3, %v502_v0, %v520_v10  ;;  %v541_v0 = vsel %vm526_vm3, %v504_v47, %v522_v48  ;;  %v559_v10 = vsel %vm526_vm3, %v522_v48, %v504_v47  ;;  %v9293_v47 = vld [vmem:[#allocation7 + $0x188] sm:$0xff]   ;;  %v9294_v48 = vld [vmem:[#allocation7 + $0x190] sm:$0xff]  }
  0xc4   : > { %7684 = vmatprep.subr.bf16.mxu0 %v9291_v26  ;;  %v10187_v22 = vpack.c.bf16 %v539_v24, %v557_v15  ;;  %v10215_v57 = vpack.c.bf16 %v541_v0, %v559_v10  ;;  %v9299_v24 = vld [vmem:[#allocation7 + $0x1b8] sm:$0xff]   ;;  %v9300_v15 = vld [vmem:[#allocation7 + $0x40] sm:$0xff]  }
  0xc7   : > { %7685 = vmatpush3.bf16.msra.mxu0 %v9291_v26  ;;  %v505_v26 = vrot.slane %v10150_v8, 7 }
  0xc8   : > { %7718 = vmatprep.subr.bf16.mxu0 %v9292_v6 }
  0xc9   : > { %v542_v11 = vsel %vm526_vm3, %v505_v26, %v523_v18  ;;  %v560_v14 = vsel %vm526_vm3, %v523_v18, %v505_v26  ;;  %v372_v26 = vld [vmem:[%s9912_s20 + $0xf0] sm:$0xff]  ;;  %v373_v18 = vld [vmem:[%s9912_s20 + $0xf8] sm:$0xff] }
  0xca   : > { %7655 = vmatmul.mubr.msk.bf16.gmra.mrb[16].mxu0 %vm9933_vm2, %v10165_v34  ;;  %v10227_v61 = vpack.c.bf16 %v542_v11, %v560_v14  ;;  %v10273_v56 = vmax.f32 %v372_v26, 0.0  ;;  %v10275_v60 = vmax.f32 %v373_v18, 0.0  ;;  %v10368_v26 = vpack.c.bf16 %v9998_v54, %v9996_v53 }
  0xcb   : > { %7658 = vmatprep.mubr.msk.bf16.mxu0 %vm9933_vm2, %v10167_v46  ;;  %v10372_v18 = vpack.c.bf16 %v10008_v63, %v10006_v62 }
  0xcc   : > { %v506_v0 = vrot.slane %v10273_v56, 7  ;;  %v524_v10 = vrot.slane %v10275_v60, 7 }
  0xce   : > { %v543_v11 = vsel %vm526_vm3, %v506_v0, %v524_v10  ;;  %v561_v14 = vsel %vm526_vm3, %v524_v10, %v506_v0  ;;  %v9315_v0 = vld [vmem:[#allocation7 + $0x138] sm:$0xff]   ;;  %v9316_v10 = vld [vmem:[#allocation7 + $0x1c0] sm:$0xff]  }
  0xd2   : > { %7659 = vmatmul.mubr.msk.bf16.gmra.mrb[20].mxu0 %vm9933_vm2, %v10185_v21 }
  0xd3   : > { %7662 = vmatprep.mubr.msk.bf16.mxu0 %vm9933_vm2, %v10187_v22 }
  0xda   : > { %7663 = vmatmul.mubr.msk.bf16.gmra.mrb[24].mxu0 %vm9933_vm2, %v10213_v25 }
  0xdb   : > { %7666 = vmatprep.mubr.msk.bf16.mxu0 %vm9933_vm2, %v10215_v57 }
  0xe2   : > { %7667 = vmatmul.mubr.msk.bf16.gmra.mrb[28].mxu0 %vm9933_vm2, %v10227_v61 }
  0xe3   : > { %7686 = vmatprep.mubr.msk.bf16.mxu0 %vm9933_vm2, %v10011_v2  ;;  %v9296_v2 = vld [vmem:[#allocation7 + $0x1a0] sm:$0xff]  }
  0xea   : > { %7687 = vmatmul.mubr.msk.bf16.vlgmr.msra.gmra.mrb[0].mxu0 %vm9933_vm2, %v10013_v7 }
  0xeb   : > { %7719 = vmatpush3.bf16.msra.mxu0 %v9292_v6  ;;  %7690 = vmatprep.mubr.msk.bf16.mxu0 %vm9933_vm2, %v10053_v42  ;;  %v9297_v6 = vld [vmem:[#allocation7 + $0x1a8] sm:$0xff]  }
  0xec   : > { %7720 = vmatprep.subr.bf16.mxu0 %v9293_v47 }
  0xef   : > { %7721 = vmatpush3.bf16.msra.mxu0 %v9293_v47  ;;  %v6377_v47 = vpack.c.bf16 %v543_v11, %v561_v14  ;;  %v10378_v11 = vpack.c.bf16 %v10021_v13, %v10019_v12  ;;  %v10382_v14 = vpack.c.bf16 %v10041_v28, %v10039_v27 }
  0xf0   : > { %7722 = vmatprep.subr.bf16.mxu0 %v9294_v48 }
  0xf2   : > { %7691 = vmatmul.mubr.msk.bf16.gmra.mrb[4].mxu0 %vm9933_vm2, %v10065_v51 }
  0xf3   : > { %7694 = vmatprep.mubr.msk.bf16.mxu0 %vm9933_vm2, %v10107_v30  ;;  %7723 = vmatpush3.bf16.msra.mxu0 %v9294_v48  ;;  %v9301_v48 = vld [vmem:[#allocation7 + $0x48] sm:$0xff]  }
  0xf4   : > { %7724 = vmatprep.subr.bf16.mxu0 %v9295_v52 }
  0xf7   : > { %7725 = vmatpush3.bf16.msra.mxu0 %v9295_v52  ;;  %v9302_v52 = vld [vmem:[#allocation7 + $0x50] sm:$0xff]  }
  0xf8   : > { %7726 = vmatprep.subr.bf16.mxu0 %v9296_v2 }
  0xfa   : > { %7695 = vmatmul.mubr.msk.bf16.gmra.mrb[8].mxu0 %vm9933_vm2, %v10109_v58 }
  0xfb   : > { %7698 = vmatprep.mubr.msk.bf16.mxu0 %vm9933_vm2, %v10143_v23  ;;  %7727 = vmatpush3.bf16.msra.mxu0 %v9296_v2  ;;  %v9303_v2 = vld [vmem:[#allocation7 + $0x58] sm:$0xff]  }
  0xfc   : > { %7728 = vmatprep.subr.bf16.mxu0 %v9297_v6 }
  0xff   : > { %7729 = vmatpush3.bf16.msra.mxu0 %v9297_v6  ;;  %v10358_v6 = vpack.c.bf16 %v9975_v39, %v9973_v38 }
 0x100   : > { %7730 = vmatprep.subr.bf16.mxu0 %v9298_v55 }
 0x102   : > { %7699 = vmatmul.mubr.msk.bf16.gmra.mrb[12].mxu0 %vm9933_vm2, %v10145_v29 }
 0x103   : > { %7702 = vmatprep.mubr.msk.bf16.mxu0 %vm9933_vm2, %v10165_v34  ;;  %7731 = vmatpush3.bf16.msra.mxu0 %v9298_v55  ;;  %v10362_v55 = vpack.c.bf16 %v9983_v44, %v9977_v40 }
 0x104   : > { %7732 = vmatprep.subr.bf16.mxu0 %v9299_v24 }
 0x107   : > { %7733 = vmatpush3.bf16.msra.mxu0 %v9299_v24  ;;  %v9313_v24 = vld [vmem:[#allocation7 + $0x128] sm:$0xff]  }
 0x108   : > { %7766 = vmatprep.subr.bf16.mxu0 %v9300_v15 }
 0x10a   : > { %7703 = vmatmul.mubr.msk.bf16.gmra.mrb[16].mxu0 %vm9933_vm2, %v10167_v46 }
 0x10b   : > { %7706 = vmatprep.mubr.msk.bf16.mxu0 %vm9933_vm2, %v10185_v21 }
 0x112   : > { %7707 = vmatmul.mubr.msk.bf16.gmra.mrb[20].mxu0 %vm9933_vm2, %v10187_v22 }
 0x113   : > { %7710 = vmatprep.mubr.msk.bf16.mxu0 %vm9933_vm2, %v10213_v25 }
 0x11a   : > { %7711 = vmatmul.mubr.msk.bf16.gmra.mrb[24].mxu0 %vm9933_vm2, %v10215_v57 }
 0x11b   : > { %7714 = vmatprep.mubr.msk.bf16.mxu0 %vm9933_vm2, %v10227_v61 }
 0x122   : > { %7715 = vmatmul.mubr.msk.bf16.gmra.mrb[28].mxu0 %vm9933_vm2, %v6377_v47 }
 0x123   : > { %7734 = vmatprep.mubr.msk.bf16.mxu0 %vm9933_vm2, %v10013_v7  ;;  %v9304_v7 = vld [vmem:[#allocation7 + $0x60] sm:$0xff]  }
 0x12a   : > { %7735 = vmatmul.mubr.msk.bf16.vlgmr.msra.gmra.mrb[0].mxu0 %vm9933_vm2, %v10053_v42  ;;  %v9305_v42 = vld [vmem:[#allocation7 + $0x68] sm:$0xff]  }
 0x12b   : > { %7767 = vmatpush3.bf16.msra.mxu0 %v9300_v15  ;;  %7738 = vmatprep.mubr.msk.bf16.mxu0 %vm9933_vm2, %v10065_v51  ;;  %v9306_v51 = vld [vmem:[#allocation7 + $0x70] sm:$0xff]  }
 0x12c   : > { %7768 = vmatprep.subr.bf16.mxu0 %v9301_v48  ;;  %v9314_v15 = vld [vmem:[#allocation7 + $0x130] sm:$0xff]  }
 0x12f   : > { %7769 = vmatpush3.bf16.msra.mxu0 %v9301_v48  ;;  %v10392_v48 = vpack.c.bf16 %v10057_v45, %v10055_v43 }
 0x130   : > { %7770 = vmatprep.subr.bf16.mxu0 %v9302_v52 }
 0x132   : > { %7739 = vmatmul.mubr.msk.bf16.gmra.mrb[4].mxu0 %vm9933_vm2, %v10107_v30  ;;  %v9307_v30 = vld [vmem:[#allocation7 + $0x78] sm:$0xff]  }
 0x133   : > { %7742 = vmatprep.mubr.msk.bf16.mxu0 %vm9933_vm2, %v10109_v58  ;;  %7771 = vmatpush3.bf16.msra.mxu0 %v9302_v52  ;;  %v9308_v58 = vld [vmem:[#allocation7 + $0x100] sm:$0xff]   ;;  %v10398_v52 = vpack.c.bf16 %v10063_v50, %v10061_v49 }
 0x134   : > { %7772 = vmatprep.subr.bf16.mxu0 %v9303_v2 }
 0x137   : > { %7773 = vmatpush3.bf16.msra.mxu0 %v9303_v2  ;;  %v10402_v2 = vpack.c.bf16 %v10116_v59, %v10114_v31 }
 0x138   : > { %7774 = vmatprep.subr.bf16.mxu0 %v9304_v7 }
 0x13a   : > { %7743 = vmatmul.mubr.msk.bf16.gmra.mrb[8].mxu0 %vm9933_vm2, %v10143_v23  ;;  %v11544_v23 = vmov 0.0|0.0  }
 0x13b   : > { %7746 = vmatprep.mubr.msk.bf16.mxu0 %vm9933_vm2, %v10145_v29  ;;  %7775 = vmatpush3.bf16.msra.mxu0 %v9304_v7  ;;  %v1393_v29 = vpack.c.bf16 %v9946_v17, %v9944_v16  ;;  %v10408_v7 = vpack.c.bf16 %v10152_v9, %v10150_v8 }
 0x13c   : > { %7776 = vmatprep.subr.bf16.mxu0 %v9305_v42 }
 0x13f   : > { %7777 = vmatpush3.bf16.msra.mxu0 %v9305_v42  ;;  %v9317_v42 = vld [vmem:[#allocation7 + $0x1c8] sm:$0xff]  }
 0x140   : > { %7778 = vmatprep.subr.bf16.mxu0 %v9306_v51 }
 0x142   : > { %7747 = vmatmul.mubr.msk.bf16.gmra.mrb[12].mxu0 %vm9933_vm2, %v10165_v34  ;;  %v10343_v34 = vpack.c.bf16 %v9950_v20, %v9948_v19 }
 0x143   : > { %7750 = vmatprep.mubr.msk.bf16.mxu0 %vm9933_vm2, %v10167_v46  ;;  %7779 = vmatpush3.bf16.msra.mxu0 %v9306_v51  ;;  %v9309_v46 = vld [vmem:[#allocation7 + $0x108] sm:$0xff]   ;;  %v9318_v51 = vld [vmem:[#allocation7 + $0x1d0] sm:$0xff]  }
 0x144   : > { %7780 = vmatprep.subr.bf16.mxu0 %v9307_v30 }
 0x147   : > { %7781 = vmatpush3.bf16.msra.mxu0 %v9307_v30  ;;  %v9319_v30 = vld [vmem:[#allocation7 + $0x1d8] sm:$0xff]  }
 0x148   : > { %7814 = vmatprep.subr.bf16.mxu0 %v9308_v58 }
 0x14a   : > { %7751 = vmatmul.mubr.msk.bf16.gmra.mrb[16].mxu0 %vm9933_vm2, %v10185_v21  ;;  %v9310_v21 = vld [vmem:[#allocation7 + $0x110] sm:$0xff]  }
 0x14b   : > { %7754 = vmatprep.mubr.msk.bf16.mxu0 %vm9933_vm2, %v10187_v22  ;;  %v10348_v22 = vpack.c.bf16 %v9966_v33, %v9964_v32 }
 0x152   : > { %7755 = vmatmul.mubr.msk.bf16.gmra.mrb[20].mxu0 %vm9933_vm2, %v10213_v25  ;;  %v10352_v25 = vpack.c.bf16 %v9971_v37, %v9969_v36 }
 0x153   : > { %7758 = vmatprep.mubr.msk.bf16.mxu0 %vm9933_vm2, %v10215_v57  ;;  %v9311_v57 = vld [vmem:[#allocation7 + $0x118] sm:$0xff]  }
 0x15a   : > { %7759 = vmatmul.mubr.msk.bf16.gmra.mrb[24].mxu0 %vm9933_vm2, %v10227_v61  ;;  %v9312_v61 = vld [vmem:[#allocation7 + $0x120] sm:$0xff]  }
 0x15b   : > { %7762 = vmatprep.mubr.msk.bf16.mxu0 %vm9933_vm2, %v6377_v47  ;;  %v10388_v47 = vpack.c.bf16 %v10051_v41, %v10049_v35 }
 0x162   : > { %7763 = vmatmul.mubr.msk.bf16.gmra.mrb[28].mxu0 %vm9933_vm2, %v9929_v4 }
 0x163   : > { %7782 = vmatprep.mubr.bf16.mxu0 %v11544_v23 }
 0x16a   : > { %7783 = vmatmul.mubr.bf16.vlgmr.msra.gmra.mrb[0].mxu0 %v1393_v29 }
 0x16b   : > { %7815 = vmatpush3.bf16.msra.mxu0 %v9308_v58  ;;  %7786 = vmatprep.mubr.bf16.mxu0 %v10343_v34  ;;  %v9320_v58 = vld [vmem:[#allocation7 + $0x1e0] sm:$0xff]  }
 0x16c   : > { %7816 = vmatprep.subr.bf16.mxu0 %v9309_v46 }
 0x16f   : > { %7817 = vmatpush3.bf16.msra.mxu0 %v9309_v46  ;;  %v9322_v46 = vld [vmem:[#allocation7 + $0x1f0] sm:$0xff]  }
 0x170   : > { %7818 = vmatprep.subr.bf16.mxu0 %v9310_v21 }
 0x172   : > { %7787 = vmatmul.mubr.bf16.gmra.mrb[4].mxu0 %v10348_v22 }
 0x173   : > { %7790 = vmatprep.mubr.bf16.mxu0 %v10352_v25  ;;  %7819 = vmatpush3.bf16.msra.mxu0 %v9310_v21  ;;  %v9323_v21 = vld [vmem:[#allocation7 + $0x1f8] sm:$0xff]  }
 0x174   : > { %7820 = vmatprep.subr.bf16.mxu0 %v9311_v57 }
 0x177   : > { %7821 = vmatpush3.bf16.msra.mxu0 %v9311_v57  ;;  %v9324_v57 = vld [vmem:[#allocation7 + $0x80] sm:$0xff]  }
 0x178   : > { %7822 = vmatprep.subr.bf16.mxu0 %v9312_v61 }
 0x17a   : > { %7791 = vmatmul.mubr.bf16.gmra.mrb[8].mxu0 %v10358_v6 }
 0x17b   : > { %7794 = vmatprep.mubr.bf16.mxu0 %v10362_v55  ;;  %7823 = vmatpush3.bf16.msra.mxu0 %v9312_v61  ;;  %v1408_v61 = vpack.c.bf16 %v10275_v60, %v10273_v56 }
 0x17c   : > { %7824 = vmatprep.subr.bf16.mxu0 %v9313_v24 }
 0x17f   : > { %7825 = vmatpush3.bf16.msra.mxu0 %v9313_v24  ;;  %v9325_v24 = vld [vmem:[#allocation7 + $0x88] sm:$0xff]  }
 0x180   : > { %7826 = vmatprep.subr.bf16.mxu0 %v9314_v15 }
 0x182   : > { %7795 = vmatmul.mubr.bf16.gmra.mrb[12].mxu0 %v10368_v26 }
 0x183   : > { %7798 = vmatprep.mubr.bf16.mxu0 %v10372_v18  ;;  %7827 = vmatpush3.bf16.msra.mxu0 %v9314_v15  ;;  %v9326_v15 = vld [vmem:[#allocation7 + $0x90] sm:$0xff]  }
 0x184   : > { %7828 = vmatprep.subr.bf16.mxu0 %v9315_v0 }
 0x187   : > { %7829 = vmatpush3.bf16.msra.mxu0 %v9315_v0  ;;  %v9327_v0 = vld [vmem:[#allocation7 + $0x98] sm:$0xff]  }
 0x188   : > { %7862 = vmatprep.subr.bf16.mxu0 %v9316_v10 }
 0x18a   : > { %7799 = vmatmul.mubr.bf16.gmra.mrb[16].mxu0 %v10378_v11 }
 0x18b   : > { %7802 = vmatprep.mubr.bf16.mxu0 %v10382_v14 }
 0x192   : > { %7803 = vmatmul.mubr.bf16.gmra.mrb[20].mxu0 %v10388_v47 }
 0x193   : > { %7806 = vmatprep.mubr.bf16.mxu0 %v10392_v48 }
 0x19a   : > { %7807 = vmatmul.mubr.bf16.gmra.mrb[24].mxu0 %v10398_v52 }
 0x19b   : > { %7810 = vmatprep.mubr.bf16.mxu0 %v10402_v2 }
 0x1a2   : > { %7811 = vmatmul.mubr.bf16.gmra.mrb[28].mxu0 %v10408_v7 }
 0x1a3   : > { %7830 = vmatprep.mubr.bf16.mxu0 %v1393_v29  ;;  %v9321_v29 = vld [vmem:[#allocation7 + $0x1e8] sm:$0xff]  }
 0x1aa   : > { %7831 = vmatmul.mubr.bf16.vlgmr.msra.gmra.mrb[0].mxu0 %v10343_v34 }
 0x1ab   : > { %7863 = vmatpush3.bf16.msra.mxu0 %v9316_v10  ;;  %7834 = vmatprep.mubr.bf16.mxu0 %v10348_v22  ;;  %v9328_v10 = vld [vmem:[#allocation7 + $0xa0] sm:$0xff]  }
 0x1ac   : > { %7864 = vmatprep.subr.bf16.mxu0 %v9317_v42 }
 0x1af   : > { %7865 = vmatpush3.bf16.msra.mxu0 %v9317_v42  ;;  %v2205_v42 = vrot.slane %v9966_v33, 1 }
 0x1b0   : > { %7866 = vmatprep.subr.bf16.mxu0 %v9318_v51 }
 0x1b2   : > { %7835 = vmatmul.mubr.bf16.gmra.mrb[4].mxu0 %v10352_v25 }
 0x1b3   : > { %7838 = vmatprep.mubr.bf16.mxu0 %v10358_v6  ;;  %7867 = vmatpush3.bf16.msra.mxu0 %v9318_v51  ;;  %v9333_v51 = vld [vmem:[#allocation7 + $0x148] sm:$0xff]  }
 0x1b4   : > { %7868 = vmatprep.subr.bf16.mxu0 %v9319_v30 }
 0x1b7   : > { %7869 = vmatpush3.bf16.msra.mxu0 %v9319_v30  ;;  %v2188_v30 = vrot.slane %v9969_v36, 1 }
 0x1b8   : > { %7870 = vmatprep.subr.bf16.mxu0 %v9320_v58 }
 0x1ba   : > { %7839 = vmatmul.mubr.bf16.gmra.mrb[8].mxu0 %v10362_v55 }
 0x1bb   : > { %7842 = vmatprep.mubr.bf16.mxu0 %v10368_v26  ;;  %7871 = vmatpush3.bf16.msra.mxu0 %v9320_v58  ;;  %v2206_v58 = vrot.slane %v9971_v37, 1  ;;  %v9334_v37 = vld [vmem:[#allocation7 + $0x150] sm:$0xff]  }
 0x1bc   : > { %7872 = vmatprep.subr.bf16.mxu0 %v9321_v29 }
 0x1bd   : > { %v2225_v33 = vsel %vm2220_vm6, %v2188_v30, %v2206_v58  ;;  %v2243_v36 = vsel %vm2220_vm6, %v2206_v58, %v2188_v30  ;;  %v2195_v58 = vrot.slane %v10049_v35, 1 }
 0x1bf   : > { %7873 = vmatpush3.bf16.msra.mxu0 %v9321_v29 }
 0x1c0   : > { %7874 = vmatprep.subr.bf16.mxu0 %v9322_v46 }
 0x1c2   : > { %7843 = vmatmul.mubr.bf16.gmra.mrb[12].mxu0 %v10372_v18 }
 0x1c3   : > { %7846 = vmatprep.mubr.bf16.mxu0 %v10378_v11  ;;  %7875 = vmatpush3.bf16.msra.mxu0 %v9322_v46 }
 0x1c4   : > { %7876 = vmatprep.subr.bf16.mxu0 %v9323_v21 }
 0x1c7   : > { %7877 = vmatpush3.bf16.msra.mxu0 %v9323_v21  ;;  %v10491_v21 = vpack.c.bf16 %v2243_v36, %v2225_v33  ;;  %v2214_v33 = vrot.slane %v10057_v45, 1 }
 0x1c8   : > { %7910 = vmatprep.subr.bf16.mxu0 %v9324_v57 }
 0x1ca   : > { %7847 = vmatmul.mubr.bf16.gmra.mrb[16].mxu0 %v10382_v14 }
 0x1cb   : > { %7850 = vmatprep.mubr.bf16.mxu0 %v10388_v47 }
 0x1d2   : > { %7851 = vmatmul.mubr.bf16.gmra.mrb[20].mxu0 %v10392_v48 }
 0x1d3   : > { %7854 = vmatprep.mubr.bf16.mxu0 %v10398_v52 }
 0x1da   : > { %7855 = vmatmul.mubr.bf16.gmra.mrb[24].mxu0 %v10402_v2 }
 0x1db   : > { %7858 = vmatprep.mubr.bf16.mxu0 %v10408_v7 }
 0x1e2   : > { %7859 = vmatmul.mubr.bf16.gmra.mrb[28].mxu0 %v1408_v61 }
 0x1e3   : > { %7878 = vmatprep.mubr.bf16.mxu0 %v10343_v34  ;;  %v9329_v34 = vld [vmem:[#allocation7 + $0xa8] sm:$0xff]  }
 0x1ea   : > { %7879 = vmatmul.mubr.bf16.vlgmr.msra.gmra.mrb[0].mxu0 %v10348_v22  ;;  %v9330_v22 = vld [vmem:[#allocation7 + $0xb0] sm:$0xff]  }
 0x1eb   : > { %7911 = vmatpush3.bf16.msra.mxu0 %v9324_v57  ;;  %7882 = vmatprep.mubr.bf16.mxu0 %v10352_v25  ;;  %v9331_v25 = vld [vmem:[#allocation7 + $0xb8] sm:$0xff]   ;;  %v2189_v57 = vrot.slane %v9973_v38, 1 }
 0x1ec   : > { %7912 = vmatprep.subr.bf16.mxu0 %v9325_v24 }
 0x1ef   : > { %7913 = vmatpush3.bf16.msra.mxu0 %v9325_v24  ;;  %v2190_v24 = vrot.slane %v9977_v40, 1 }
 0x1f0   : > { %7914 = vmatprep.subr.bf16.mxu0 %v9326_v15 }
 0x1f2   : > { %7883 = vmatmul.mubr.bf16.gmra.mrb[4].mxu0 %v10358_v6  ;;  %v9332_v6 = vld [vmem:[#allocation7 + $0x140] sm:$0xff]  }
 0x1f3   : > { %7886 = vmatprep.mubr.bf16.mxu0 %v10362_v55  ;;  %7915 = vmatpush3.bf16.msra.mxu0 %v9326_v15  ;;  %v482_v55 = vadd.s32 8, %v9927_v3  ;;  %v2208_v15 = vrot.slane %v9983_v44, 1  ;;  %v9336_v44 = vld [vmem:[#allocation7 + $0x160] sm:$0xff]   ;;  %v9366_v3 = vld [vmem:[#allocation9 + $0x190] sm:$0xff]  }
 0x1f4   : > { %7916 = vmatprep.subr.bf16.mxu0 %v9327_v0 }
 0x1f5   : > { %vm7165_vm4 = vcmp.ne.s32.totalorder %v482_v55, 15  ;;  %v2245_v40 = vsel %vm2220_vm6, %v2208_v15, %v2190_v24  ;;  %v2192_v55 = vrot.slane %v10006_v62, 1 }
 0x1f6   : > { %vm10448_vm5 = vmpackc.low %vm7165_vm4, %vm9659_vm1 }
 0x1f7   : > { %7917 = vmatpush3.bf16.msra.mxu0 %v9327_v0  ;;  %v9335_v0 = vld [vmem:[#allocation7 + $0x158] sm:$0xff]  }
 0x1f8   : > { %7918 = vmatprep.subr.bf16.mxu0 %v9328_v10 }
 0x1fa   : > { %7887 = vmatmul.mubr.bf16.gmra.mrb[8].mxu0 %v10368_v26  ;;  %v2184_v26 = vrot.slane %v9658_v1, 1 }
 0x1fb   : > { %7890 = vmatprep.mubr.bf16.mxu0 %v10372_v18  ;;  %7919 = vmatpush3.bf16.msra.mxu0 %v9328_v10  ;;  %v2185_v18 = vrot.slane %v9944_v16, 1 }
 0x1fc   : > { %7920 = vmatprep.subr.bf16.mxu0 %v9329_v34 }
 0x1ff   : > { %7921 = vmatpush3.bf16.msra.mxu0 %v9329_v34 }
 0x200   : > { %7922 = vmatprep.subr.bf16.mxu0 %v9330_v22 }
 0x202   : > { %7891 = vmatmul.mubr.bf16.gmra.mrb[12].mxu0 %v10378_v11  ;;  %v2203_v11 = vrot.slane %v9946_v17, 1 }
 0x203   : > { %7894 = vmatprep.mubr.bf16.mxu0 %v10382_v14  ;;  %7923 = vmatpush3.bf16.msra.mxu0 %v9330_v22  ;;  %v10445_v14 = vpack.c.bf16 %v2184_v26, %v2184_v26  ;;  %v2210_v26 = vrot.slane %v10008_v63, 1 }
 0x204   : > { %7924 = vmatprep.subr.bf16.mxu0 %v9331_v25  ;;  %v2222_v1 = vsel %vm2220_vm6, %v2185_v18, %v2203_v11  ;;  %v2240_v16 = vsel %vm2220_vm6, %v2203_v11, %v2185_v18  ;;  %v9337_v18 = vld [vmem:[#allocation7 + $0x168] sm:$0xff]   ;;  %v9338_v11 = vld [vmem:[#allocation7 + $0x170] sm:$0xff]  }
 0x205   : > { %v2229_v62 = vsel %vm2220_vm6, %v2192_v55, %v2210_v26  ;;  %v2247_v63 = vsel %vm2220_vm6, %v2210_v26, %v2192_v55  ;;  %v9350_v55 = vld [vmem:[#allocation9 + $0x10] sm:$0xff]  }
 0x206   : > { %v9342_v26 = vld [vmem:[#allocation7 + $0x210] sm:$0xff]  }
 0x207   : > { %7925 = vmatpush3.bf16.msra.mxu0 %v9331_v25  ;;  %v2191_v25 = vrot.slane %v9996_v53, 1 }
 0x208   : > { %7958 = vmatprep.subr.bf16.mxu0 %v9332_v6 }
 0x20a   : > { %7895 = vmatmul.mubr.bf16.gmra.mrb[16].mxu0 %v10388_v47  ;;  %v9436_v47 = vld [vmem:[%s9912_s20 + $0x40] sm:$0xff] }
 0x20b   : > { %7898 = vmatprep.mubr.bf16.mxu0 %v10392_v48  ;;  %v2186_v48 = vrot.slane %v9948_v19, 1 }
 0x212   : > { %7899 = vmatmul.mubr.bf16.gmra.mrb[20].mxu0 %v10398_v52  ;;  %v2204_v52 = vrot.slane %v9950_v20, 1 }
 0x213   : > { %7902 = vmatprep.mubr.bf16.mxu0 %v10402_v2  ;;  %v10467_v2 = vpack.c.bf16 %v2240_v16, %v2222_v1  ;;  %v2193_v1 = vrot.slane %v10019_v12, 1  ;;  %v2211_v16 = vrot.slane %v10021_v13, 1 }
 0x214   : > { %v2223_v17 = vsel %vm2220_vm6, %v2186_v48, %v2204_v52  ;;  %v2241_v19 = vsel %vm2220_vm6, %v2204_v52, %v2186_v48  ;;  %v10535_v52 = vpack.c.bf16 %v2247_v63, %v2229_v62  ;;  %v9345_v62 = vld [vmem:[#allocation7 + $0x228] sm:$0xff]   ;;  %v9346_v63 = vld [vmem:[#allocation7 + $0x230] sm:$0xff]  }
 0x215   : > { %v10469_v20 = vpack.c.bf16 %v2241_v19, %v2223_v17  ;;  %v2194_v17 = vrot.slane %v10039_v27, 1  ;;  %v2212_v19 = vrot.slane %v10041_v28, 1  ;;  %v2230_v12 = vsel %vm2220_vm6, %v2193_v1, %v2211_v16 }
 0x216   : > { %v2248_v13 = vsel %vm2220_vm6, %v2211_v16, %v2193_v1  ;;  %v2200_v1 = vrot.slane %v10273_v56, 1  ;;  %v2218_v16 = vrot.slane %v10275_v60, 1  ;;  %v9353_v56 = vld [vmem:[#allocation9 + $0x28] sm:$0xff]   ;;  %v9354_v60 = vld [vmem:[#allocation9 + $0x30] sm:$0xff]  }
 0x217   : > { %v2231_v27 = vsel %vm2220_vm6, %v2194_v17, %v2212_v19  ;;  %v2249_v28 = vsel %vm2220_vm6, %v2212_v19, %v2194_v17 }
 0x218   : > { %v10557_v30 = vpack.c.bf16 %v2249_v28, %v2231_v27  ;;  %v2237_v17 = vsel %vm2220_vm6, %v2200_v1, %v2218_v16  ;;  %v2255_v19 = vsel %vm2220_vm6, %v2218_v16, %v2200_v1 }
 0x21a   : > { %7903 = vmatmul.mubr.bf16.gmra.mrb[24].mxu0 %v10408_v7  ;;  %v2187_v7 = vrot.slane %v9964_v32, 1 }
 0x21b   : > { %7906 = vmatprep.mubr.bf16.mxu0 %v1408_v61  ;;  %v2207_v61 = vrot.slane %v9975_v39, 1  ;;  %v2227_v39 = vsel %vm2220_vm6, %v2190_v24, %v2208_v15  ;;  %v2198_v24 = vrot.slane %v10114_v31, 1  ;;  %v2216_v15 = vrot.slane %v10116_v59, 1 }
 0x21c   : > { %v2224_v29 = vsel %vm2220_vm6, %v2187_v7, %v2205_v42  ;;  %v2242_v32 = vsel %vm2220_vm6, %v2205_v42, %v2187_v7  ;;  %v10513_v22 = vpack.c.bf16 %v2245_v40, %v2227_v39  ;;  %v9339_v7 = vld [vmem:[#allocation7 + $0x178] sm:$0xff]   ;;  %v9340_v42 = vld [vmem:[#allocation7 + $0x200] sm:$0xff]   ;;  %v2217_v39 = vrot.slane %v10152_v9, 1  ;;  %v9349_v9 = vld [vmem:[#allocation9 + $0x8] sm:$0xff]  }
 0x21d   : > { %v10489_v46 = vpack.c.bf16 %v2242_v32, %v2224_v29  ;;  %v2226_v10 = vsel %vm2220_vm6, %v2189_v57, %v2207_v61  ;;  %v2244_v38 = vsel %vm2220_vm6, %v2207_v61, %v2189_v57  ;;  %v2213_v29 = vrot.slane %v10051_v41, 1 }
 0x21e   : > { %v10511_v34 = vpack.c.bf16 %v2244_v38, %v2226_v10  ;;  %v2196_v32 = vrot.slane %v10055_v43, 1  ;;  %v2197_v57 = vrot.slane %v10061_v49, 1  ;;  %v2215_v61 = vrot.slane %v10063_v50, 1 }
 0x21f   : > { %v2232_v36 = vsel %vm2220_vm6, %v2195_v58, %v2213_v29  ;;  %v2250_v35 = vsel %vm2220_vm6, %v2213_v29, %v2195_v58  ;;  %v2235_v50 = vsel %vm2220_vm6, %v2198_v24, %v2216_v15  ;;  %v2253_v31 = vsel %vm2220_vm6, %v2216_v15, %v2198_v24 }
 0x220   : > { %v2233_v41 = vsel %vm2220_vm6, %v2196_v32, %v2214_v33  ;;  %v2251_v43 = vsel %vm2220_vm6, %v2214_v33, %v2196_v32  ;;  %v10577_v45 = vpack.c.bf16 %v2250_v35, %v2232_v36  ;;  %v2252_v49 = vsel %vm2220_vm6, %v2215_v61, %v2197_v57 }
 0x221   : > { %v10601_v10 = vpack.c.bf16 %v2253_v31, %v2235_v50  ;;  %v2199_v38 = vrot.slane %v10150_v8, 1  ;;  %v9348_v8 = vld [vmem:[#allocation9] sm:$0xff]  }
 0x222   : > { %7907 = vmatmul.mubr.bf16.gmra.mrb[28].mxu0 %v11544_v23  ;;  %8534 = vmatprep.subr.bf16.mxu1 %v9348_v8 }
 0x223   : > { %7926 = vmatprep.mubr.msk.bf16.mxu0 %vm10448_vm5, %v10445_v14  ;;  %v2236_v40 = vsel %vm2220_vm6, %v2199_v38, %v2217_v39  ;;  %8542 = vmatpush3.bf16.msra.mxu1 %v9348_v8 }
 0x224   : > { %8535 = vmatprep.subr.bf16.mxu1 %v9349_v9 }
 0x227   : > { %8543 = vmatpush3.bf16.msra.mxu1 %v9349_v9 }
 0x228   : > { %8536 = vmatprep.subr.bf16.mxu1 %v9350_v55 }
 0x22a   : > { %7927 = vmatmul.mubr.msk.bf16.vlgmr.msra.gmra.mrb[0].mxu0 %vm10448_vm5, %v10467_v2 }
 0x22b   : > { %7959 = vmatpush3.bf16.msra.mxu0 %v9332_v6  ;;  %7930 = vmatprep.mubr.msk.bf16.mxu0 %vm10448_vm5, %v10469_v20  ;;  %v2209_v6 = vrot.slane %v9998_v54, 1 }
 0x22c   : > { %7960 = vmatprep.subr.bf16.mxu0 %v9333_v51  ;;  %8544 = vmatpush3.bf16.msra.mxu1 %v9350_v55 }
 0x22d   : > { %v2228_v53 = vsel %vm2220_vm6, %v2191_v25, %v2209_v6  ;;  %v2246_v54 = vsel %vm2220_vm6, %v2209_v6, %v2191_v25  ;;  %v9341_v6 = vld [vmem:[#allocation7 + $0x208] sm:$0xff]  }
 0x22e   : > { %v10533_v48 = vpack.c.bf16 %v2246_v54, %v2228_v53  ;;  %v9352_v53 = vld [vmem:[#allocation9 + $0x20] sm:$0xff]  }
 0x22f   : > { %7961 = vmatpush3.bf16.msra.mxu0 %v9333_v51  ;;  %v10555_v51 = vpack.c.bf16 %v2248_v13, %v2230_v12  ;;  %v9344_v54 = vld [vmem:[#allocation7 + $0x220] sm:$0xff]  }
 0x230   : > { %7962 = vmatprep.subr.bf16.mxu0 %v9334_v37 }
 0x232   : > { %7931 = vmatmul.mubr.msk.bf16.gmra.mrb[4].mxu0 %vm10448_vm5, %v10489_v46 }
 0x233   : > { %7934 = vmatprep.mubr.msk.bf16.mxu0 %vm10448_vm5, %v10491_v21  ;;  %7963 = vmatpush3.bf16.msra.mxu0 %v9334_v37  ;;  %v10579_v37 = vpack.c.bf16 %v2251_v43, %v2233_v41 }
 0x234   : > { %7964 = vmatprep.subr.bf16.mxu0 %v9335_v0 }
 0x237   : > { %7965 = vmatpush3.bf16.msra.mxu0 %v9335_v0  ;;  %v2234_v0 = vsel %vm2220_vm6, %v2197_v57, %v2215_v61 }
 0x238   : > { %7966 = vmatprep.subr.bf16.mxu0 %v9336_v44  ;;  %v10599_v59 = vpack.c.bf16 %v2252_v49, %v2234_v0 }
 0x23a   : > { %7935 = vmatmul.mubr.msk.bf16.gmra.mrb[8].mxu0 %vm10448_vm5, %v10511_v34 }
 0x23b   : > { %7938 = vmatprep.mubr.msk.bf16.mxu0 %vm10448_vm5, %v10513_v22  ;;  %7967 = vmatpush3.bf16.msra.mxu0 %v9336_v44  ;;  %v2254_v44 = vsel %vm2220_vm6, %v2217_v39, %v2199_v38 }
 0x23c   : > { %7968 = vmatprep.subr.bf16.mxu0 %v9337_v18  ;;  %v10615_v25 = vpack.c.bf16 %v2254_v44, %v2236_v40 }
 0x23f   : > { %7969 = vmatpush3.bf16.msra.mxu0 %v9337_v18  ;;  %v9343_v18 = vld [vmem:[#allocation7 + $0x218] sm:$0xff]  }
 0x240   : > { %7970 = vmatprep.subr.bf16.mxu0 %v9338_v11 }
 0x242   : > { %7939 = vmatmul.mubr.msk.bf16.gmra.mrb[12].mxu0 %vm10448_vm5, %v10533_v48 }
 0x243   : > { %7942 = vmatprep.mubr.msk.bf16.mxu0 %vm10448_vm5, %v10535_v52  ;;  %7971 = vmatpush3.bf16.msra.mxu0 %v9338_v11  ;;  %v9347_v11 = vld [vmem:[#allocation7 + $0x238] sm:$0xff]  }
 0x244   : > { %7972 = vmatprep.subr.bf16.mxu0 %v9339_v7 }
 0x247   : > { %7973 = vmatpush3.bf16.msra.mxu0 %v9339_v7  ;;  %v6617_v7 = vpack.c.bf16 %v2255_v19, %v2237_v17 }
 0x248   : > { %8006 = vmatprep.subr.bf16.mxu0 %v9340_v42 }
 0x24a   : > { %7943 = vmatmul.mubr.msk.bf16.gmra.mrb[16].mxu0 %vm10448_vm5, %v10555_v51 }
 0x24b   : > { %7946 = vmatprep.mubr.msk.bf16.mxu0 %vm10448_vm5, %v10557_v30 }
 0x252   : > { %7947 = vmatmul.mubr.msk.bf16.gmra.mrb[20].mxu0 %vm10448_vm5, %v10577_v45 }
 0x253   : > { %7950 = vmatprep.mubr.msk.bf16.mxu0 %vm10448_vm5, %v10579_v37 }
 0x25a   : > { %7951 = vmatmul.mubr.msk.bf16.gmra.mrb[24].mxu0 %vm10448_vm5, %v10599_v59 }
 0x25b   : > { %7954 = vmatprep.mubr.msk.bf16.mxu0 %vm10448_vm5, %v10601_v10 }
 0x262   : > { %7955 = vmatmul.mubr.msk.bf16.gmra.mrb[28].mxu0 %vm10448_vm5, %v10615_v25 }
 0x263   : > { %7974 = vmatprep.mubr.msk.bf16.mxu0 %vm10448_vm5, %v10467_v2  ;;  %v9351_v2 = vld [vmem:[#allocation9 + $0x18] sm:$0xff]  }
 0x264   : > { %8537 = vmatprep.subr.bf16.mxu1 %v9351_v2 }
 0x265   : > { %8545 = vmatpush3.bf16.msra.mxu1 %v9351_v2 }
 0x266   : > { %8538 = vmatprep.subr.bf16.mxu1 %v9352_v53 }
 0x269   : > { %8546 = vmatpush3.bf16.msra.mxu1 %v9352_v53 }
 0x26a   : > { %7975 = vmatmul.mubr.msk.bf16.vlgmr.msra.gmra.mrb[0].mxu0 %vm10448_vm5, %v10469_v20  ;;  %8539 = vmatprep.subr.bf16.mxu1 %v9353_v56 }
 0x26b   : > { %8007 = vmatpush3.bf16.msra.mxu0 %v9340_v42  ;;  %7978 = vmatprep.mubr.msk.bf16.mxu0 %vm10448_vm5, %v10489_v46 }
 0x26c   : > { %8008 = vmatprep.subr.bf16.mxu0 %v9341_v6 }
 0x26d   : > { %8547 = vmatpush3.bf16.msra.mxu1 %v9353_v56 }
 0x26e   : > { %8540 = vmatprep.subr.bf16.mxu1 %v9354_v60 }
 0x26f   : > { %8009 = vmatpush3.bf16.msra.mxu0 %v9341_v6 }
 0x270   : > { %8010 = vmatprep.subr.bf16.mxu0 %v9342_v26 }
 0x271   : > { %8548 = vmatpush3.bf16.msra.mxu1 %v9354_v60 }
 0x272   : > { %7979 = vmatmul.mubr.msk.bf16.gmra.mrb[4].mxu0 %vm10448_vm5, %v10491_v21 }
 0x273   : > { %7982 = vmatprep.mubr.msk.bf16.mxu0 %vm10448_vm5, %v10511_v34  ;;  %8011 = vmatpush3.bf16.msra.mxu0 %v9342_v26 }
 0x274   : > { %8012 = vmatprep.subr.bf16.mxu0 %v9343_v18 }
 0x277   : > { %8013 = vmatpush3.bf16.msra.mxu0 %v9343_v18 }
 0x278   : > { %8014 = vmatprep.subr.bf16.mxu0 %v9344_v54 }
 0x27a   : > { %7983 = vmatmul.mubr.msk.bf16.gmra.mrb[8].mxu0 %vm10448_vm5, %v10513_v22 }
 0x27b   : > { %7986 = vmatprep.mubr.msk.bf16.mxu0 %vm10448_vm5, %v10533_v48  ;;  %8015 = vmatpush3.bf16.msra.mxu0 %v9344_v54 }
 0x27c   : > { %8016 = vmatprep.subr.bf16.mxu0 %v9345_v62 }
 0x27f   : > { %8017 = vmatpush3.bf16.msra.mxu0 %v9345_v62 }
 0x280   : > { %8018 = vmatprep.subr.bf16.mxu0 %v9346_v63 }
 0x282   : > { %7987 = vmatmul.mubr.msk.bf16.gmra.mrb[12].mxu0 %vm10448_vm5, %v10535_v52 }
 0x283   : > { %7990 = vmatprep.mubr.msk.bf16.mxu0 %vm10448_vm5, %v10555_v51  ;;  %8019 = vmatpush3.bf16.msra.mxu0 %v9346_v63 }
 0x284   : > { %8020 = vmatprep.subr.bf16.mxu0 %v9347_v11 }
 0x287   : > { %8021 = vmatpush3.bf16.msra.mxu0 %v9347_v11 }
 0x288   : > { %8054 = vmatprep.subr.bf16.mxu0 %v9348_v8 }
 0x28a   : > { %7991 = vmatmul.mubr.msk.bf16.gmra.mrb[16].mxu0 %vm10448_vm5, %v10557_v30 }
 0x28b   : > { %7994 = vmatprep.mubr.msk.bf16.mxu0 %vm10448_vm5, %v10577_v45 }
 0x292   : > { %7995 = vmatmul.mubr.msk.bf16.gmra.mrb[20].mxu0 %vm10448_vm5, %v10579_v37 }
 0x293   : > { %7998 = vmatprep.mubr.msk.bf16.mxu0 %vm10448_vm5, %v10599_v59 }
 0x29a   : > { %7999 = vmatmul.mubr.msk.bf16.gmra.mrb[24].mxu0 %vm10448_vm5, %v10601_v10 }
 0x29b   : > { %8002 = vmatprep.mubr.msk.bf16.mxu0 %vm10448_vm5, %v10615_v25 }
 0x2a2   : > { %8003 = vmatmul.mubr.msk.bf16.gmra.mrb[28].mxu0 %vm10448_vm5, %v6617_v7 }
 0x2a3   : > { %8022 = vmatprep.mubr.msk.bf16.mxu0 %vm10448_vm5, %v10469_v20  ;;  %v9355_v20 = vld [vmem:[#allocation9 + $0x38] sm:$0xff]  }
 0x2a4   : > { %8541 = vmatprep.subr.bf16.mxu1 %v9355_v20 }
 0x2a5   : > { %8549 = vmatpush3.bf16.msra.mxu1 %v9355_v20 }
 0x2aa   : > { %8023 = vmatmul.mubr.msk.bf16.vlgmr.msra.gmra.mrb[0].mxu0 %vm10448_vm5, %v10489_v46  ;;  %v10723_v46 = vld [vmem:[#allocation9 + $0xc0] sm:$0xff]  }
 0x2ab   : > { %8026 = vmatprep.mubr.msk.bf16.mxu0 %vm10448_vm5, %v10491_v21  ;;  %8055 = vmatpush3.bf16.msra.mxu0 %v9348_v8  ;;  %v10729_v21 = vld [vmem:[%s11534_s2] ss:$0 sm:$0xff] }
 0x2ac   : > { %8056 = vmatprep.subr.bf16.mxu0 %v9349_v9  ;;  %8102 = vmatprep.subr.bf16.mxu1 %v10723_v46 }
 0x2af   : > { %8057 = vmatpush3.bf16.msra.mxu0 %v9349_v9 }
 0x2b0   : > { %8058 = vmatprep.subr.bf16.mxu0 %v9350_v55 }
 0x2b2   : > { %8027 = vmatmul.mubr.msk.bf16.gmra.mrb[4].mxu0 %vm10448_vm5, %v10511_v34 }
 0x2b3   : > { %8030 = vmatprep.mubr.msk.bf16.mxu0 %vm10448_vm5, %v10513_v22  ;;  %8059 = vmatpush3.bf16.msra.mxu0 %v9350_v55 }
 0x2b4   : > { %8060 = vmatprep.subr.bf16.mxu0 %v9351_v2 }
 0x2b7   : > { %8061 = vmatpush3.bf16.msra.mxu0 %v9351_v2 }
 0x2b8   : > { %8062 = vmatprep.subr.bf16.mxu0 %v9352_v53 }
 0x2ba   : > { %8031 = vmatmul.mubr.msk.bf16.gmra.mrb[8].mxu0 %vm10448_vm5, %v10533_v48 }
 0x2bb   : > { %8034 = vmatprep.mubr.msk.bf16.mxu0 %vm10448_vm5, %v10535_v52  ;;  %8063 = vmatpush3.bf16.msra.mxu0 %v9352_v53 }
 0x2bc   : > { %8064 = vmatprep.subr.bf16.mxu0 %v9353_v56 }
 0x2bf   : > { %8065 = vmatpush3.bf16.msra.mxu0 %v9353_v56 }
 0x2c0   : > { %8066 = vmatprep.subr.bf16.mxu0 %v9354_v60 }
 0x2c2   : > { %8035 = vmatmul.mubr.msk.bf16.gmra.mrb[12].mxu0 %vm10448_vm5, %v10555_v51 }
 0x2c3   : > { %8038 = vmatprep.mubr.msk.bf16.mxu0 %vm10448_vm5, %v10557_v30  ;;  %8067 = vmatpush3.bf16.msra.mxu0 %v9354_v60 }
 0x2c4   : > { %8068 = vmatprep.subr.bf16.mxu0 %v9355_v20 }
 0x2c7   : > { %8069 = vmatpush3.bf16.msra.mxu0 %v9355_v20 }
 0x2ca   : > { %8039 = vmatmul.mubr.msk.bf16.gmra.mrb[16].mxu0 %vm10448_vm5, %v10577_v45 }
 0x2cb   : > { %8042 = vmatprep.mubr.msk.bf16.mxu0 %vm10448_vm5, %v10579_v37 }
 0x2d2   : > { %8043 = vmatmul.mubr.msk.bf16.gmra.mrb[20].mxu0 %vm10448_vm5, %v10599_v59 }
 0x2d3   : > { %8046 = vmatprep.mubr.msk.bf16.mxu0 %vm10448_vm5, %v10601_v10 }
 0x2da   : > { %8047 = vmatmul.mubr.msk.bf16.gmra.mrb[24].mxu0 %vm10448_vm5, %v10615_v25 }
 0x2db   : > { %8050 = vmatprep.mubr.msk.bf16.mxu0 %vm10448_vm5, %v6617_v7 }
 0x2e2   : > { %8051 = vmatmul.mubr.msk.bf16.gmra.mrb[28].mxu0 %vm10448_vm5, %v10445_v14 }
 0x2e3   : > { %8070 = vmatprep.mubr.msk.bf16.mxu0 %vm9933_vm2, %v9929_v4 }
 0x37d   : > { %v8024_v34 = vpop.f32.mrb[0].mxu0 }
 0x37e   : > { %v8550_v22 = vadd.f32 %v8024_v34, %v10729_v21  ;;  %v2928_v48 = vpop.f32.mrb[1].mxu0 }
 0x37f   : > { %v8551_v52 = vadd.f32 %v10729_v21, %v2928_v48  ;;  %v8025_v12 = vpop.f32.mrb[2].mxu0 }
 0x380   : > { %v3089_v13 = vmax.f32 %v8550_v22, 0.0  ;;  %v8552_v27 = vadd.f32 %v8025_v12, %v10729_v21  ;;  %v2931_v28 = vpop.f32.mrb[3].mxu0 }
 0x381   : > { %v3087_v42 = vmax.f32 %v8551_v52, 0.0  ;;  %v8553_v51 = vadd.f32 %v10729_v21, %v2931_v28 }
 0x382   : > { %v3090_v30 = vmax.f32 %v8552_v27, 0.0  ;;  %v3202_v58 = vrot.slane %v3089_v13, 7  ;;  %v4893_v29 = vrot.slane %v3089_v13, 1 }
 0x383   : > { %v3088_v32 = vmax.f32 %v8553_v51, 0.0  ;;  %v3201_v33 = vrot.slane %v3087_v42, 7  ;;  %v4892_v43 = vrot.slane %v3087_v42, 1 }
 0x384   : > { %v3220_v36 = vrot.slane %v3090_v30, 7  ;;  %v4911_v35 = vrot.slane %v3090_v30, 1  ;;  %v10735_v41 = vpack.c.bf16 %v3090_v30, %v3089_v13 }
 0x385   : > { %v3219_v45 = vrot.slane %v3088_v32, 7  ;;  %v10737_v37 = vpack.c.bf16 %v3088_v32, %v3087_v42  ;;  %v4910_v57 = vrot.slane %v3088_v32, 1  ;;  %v8028_v61 = vpop.f32.mrb[4].mxu0 }
 0x386   : > { %v8554_v24 = vadd.f32 %v8028_v61, %v10729_v21  ;;  %v2944_v15 = vpop.f32.mrb[5].mxu0  ;;  %v3238_v0 = vsel %vm526_vm3, %v3202_v58, %v3220_v36  ;;  %v3256_v49 = vsel %vm526_vm3, %v3220_v36, %v3202_v58  ;;  %v4929_v50 = vsel %vm2220_vm6, %v4893_v29, %v4911_v35 }
 0x387   : > { %v3237_v31 = vsel %vm526_vm3, %v3201_v33, %v3219_v45  ;;  %v3255_v59 = vsel %vm526_vm3, %v3219_v45, %v3201_v33  ;;  %v4928_v10 = vsel %vm2220_vm6, %v4892_v43, %v4910_v57  ;;  %v4946_v38 = vsel %vm2220_vm6, %v4910_v57, %v4892_v43  ;;  %v8029_v39 = vpop.f32.mrb[6].mxu0 }
 0x388   : > { %v10754_v40 = vpack.c.bf16 %v3237_v31, %v3255_v59  ;;  %v10756_v44 = vpack.c.bf16 %v4946_v38, %v4928_v10  ;;  %v3093_v25 = vmax.f32 %v8554_v24, 0.0  ;;  %v8555_v8 = vadd.f32 %v10729_v21, %v2944_v15  ;;  %v2947_v9 = vpop.f32.mrb[7].mxu0 }
 0x389   : > { %v8556_v6 = vadd.f32 %v8029_v39, %v10729_v21  ;;  %v8557_v55 = vadd.f32 %v10729_v21, %v2947_v9  ;;  %v10761_v26 = vpack.c.bf16 %v3238_v0, %v3256_v49  ;;  %v4947_v2 = vsel %vm2220_vm6, %v4911_v35, %v4893_v29 }
 0x38a   : > { %v3091_v18 = vmax.f32 %v8555_v8, 0.0  ;;  %8071 = vmatmul.mubr.msk.bf16.vlgmr.msra.gmra.mrb[32].mxu0 %vm9933_vm2, %v10754_v40  ;;  %v10768_v53 = vpack.c.bf16 %v4947_v2, %v4929_v50  ;;  %v3204_v63 = vrot.slane %v3093_v25, 7  ;;  %v4895_v11 = vrot.slane %v3093_v25, 1 }
 0x38b   : > { %v3094_v54 = vmax.f32 %v8556_v6, 0.0  ;;  %v3092_v62 = vmax.f32 %v8557_v55, 0.0  ;;  %8074 = vmatprep.mubr.msk.bf16.mxu0 %vm9933_vm2, %v10761_v26 }
 0x38c   : > { %v3203_v1 = vrot.slane %v3091_v18, 7  ;;  %v4894_v16 = vrot.slane %v3091_v18, 1 }
 0x38d   : > { %v3222_v17 = vrot.slane %v3094_v54, 7  ;;  %v3221_v19 = vrot.slane %v3092_v62, 7  ;;  %v4912_v7 = vrot.slane %v3092_v62, 1  ;;  %v8032_v56 = vpop.f32.mrb[8].mxu0  ;;  %v4913_v60 = vrot.slane %v3094_v54, 1 }
 0x38e   : > { %v8558_v20 = vadd.f32 %v8032_v56, %v10729_v21  ;;  %v2960_v34 = vpop.f32.mrb[9].mxu0  ;;  %v10774_v22 = vpack.c.bf16 %v3092_v62, %v3091_v18  ;;  %v10776_v48 = vpack.c.bf16 %v3094_v54, %v3093_v25 }
 0x38f   : > { %v8559_v52 = vadd.f32 %v10729_v21, %v2960_v34  ;;  %v8033_v12 = vpop.f32.mrb[10].mxu0  ;;  %v3239_v13 = vsel %vm526_vm3, %v3203_v1, %v3221_v19  ;;  %v3257_v27 = vsel %vm526_vm3, %v3221_v19, %v3203_v1  ;;  %v3240_v28 = vsel %vm526_vm3, %v3204_v63, %v3222_v17 }
 0x390   : > { %v3097_v42 = vmax.f32 %v8558_v20, 0.0  ;;  %v8560_v51 = vadd.f32 %v8033_v12, %v10729_v21  ;;  %v2963_v30 = vpop.f32.mrb[11].mxu0  ;;  %v10786_v58 = vpack.c.bf16 %v3239_v13, %v3257_v27  ;;  %v3258_v29 = vsel %vm526_vm3, %v3222_v17, %v3204_v63 }
 0x391   : > { %v3095_v32 = vmax.f32 %v8559_v52, 0.0  ;;  %v8561_v33 = vadd.f32 %v10729_v21, %v2963_v30  ;;  %v10791_v36 = vpack.c.bf16 %v3240_v28, %v3258_v29  ;;  %v4930_v35 = vsel %vm2220_vm6, %v4894_v16, %v4912_v7 }
 0x392   : > { %v3206_v43 = vrot.slane %v3097_v42, 7  ;;  %v4897_v45 = vrot.slane %v3097_v42, 1  ;;  %v3098_v57 = vmax.f32 %v8560_v51, 0.0  ;;  %8075 = vmatmul.mubr.msk.bf16.gmra.mrb[36].mxu0 %vm9933_vm2, %v10786_v58  ;;  %v4948_v61 = vsel %vm2220_vm6, %v4912_v7, %v4894_v16 }
 0x393   : > { %v3205_v24 = vrot.slane %v3095_v32, 7  ;;  %v4896_v15 = vrot.slane %v3095_v32, 1  ;;  %v3096_v0 = vmax.f32 %v8561_v33, 0.0  ;;  %8078 = vmatprep.mubr.msk.bf16.mxu0 %vm9933_vm2, %v10791_v36  ;;  %v10803_v49 = vpack.c.bf16 %v4948_v61, %v4930_v35 }
 0x394   : > { %v3224_v50 = vrot.slane %v3098_v57, 7  ;;  %v4915_v31 = vrot.slane %v3098_v57, 1  ;;  %v10805_v59 = vpack.c.bf16 %v3098_v57, %v3097_v42  ;;  %v4931_v10 = vsel %vm2220_vm6, %v4895_v11, %v4913_v60 }
 0x395   : > { %v3223_v38 = vrot.slane %v3096_v0, 7  ;;  %v4914_v39 = vrot.slane %v3096_v0, 1  ;;  %v8036_v25 = vpop.f32.mrb[12].mxu0  ;;  %v10809_v8 = vpack.c.bf16 %v3096_v0, %v3095_v32  ;;  %v4949_v9 = vsel %vm2220_vm6, %v4913_v60, %v4895_v11 }
 0x396   : > { %v8562_v6 = vadd.f32 %v8036_v25, %v10729_v21  ;;  %v2976_v55 = vpop.f32.mrb[13].mxu0  ;;  %v3242_v2 = vsel %vm526_vm3, %v3206_v43, %v3224_v50  ;;  %v3260_v18 = vsel %vm526_vm3, %v3224_v50, %v3206_v43  ;;  %v10818_v54 = vpack.c.bf16 %v4949_v9, %v4931_v10 }
 0x397   : > { %v8563_v62 = vadd.f32 %v10729_v21, %v2976_v55  ;;  %v8037_v63 = vpop.f32.mrb[14].mxu0  ;;  %v3241_v1 = vsel %vm526_vm3, %v3205_v24, %v3223_v38  ;;  %v3259_v11 = vsel %vm526_vm3, %v3223_v38, %v3205_v24  ;;  %v10825_v16 = vpack.c.bf16 %v3242_v2, %v3260_v18 }
 0x398   : > { %v3101_v17 = vmax.f32 %v8562_v6, 0.0  ;;  %v8564_v19 = vadd.f32 %v8037_v63, %v10729_v21  ;;  %v2979_v7 = vpop.f32.mrb[15].mxu0  ;;  %v10828_v56 = vpack.c.bf16 %v3241_v1, %v3259_v11  ;;  %v4932_v60 = vsel %vm2220_vm6, %v4896_v15, %v4914_v39 }
 0x399   : > { %v3099_v20 = vmax.f32 %v8563_v62, 0.0  ;;  %v8565_v34 = vadd.f32 %v10729_v21, %v2979_v7  ;;  %v4950_v52 = vsel %vm2220_vm6, %v4914_v39, %v4896_v15  ;;  %v4933_v12 = vsel %vm2220_vm6, %v4897_v45, %v4915_v31 }
 0x39a   : > { %v3208_v13 = vrot.slane %v3101_v17, 7  ;;  %v3102_v27 = vmax.f32 %v8564_v19, 0.0  ;;  %8079 = vmatmul.mubr.msk.bf16.gmra.mrb[40].mxu0 %vm9933_vm2, %v10828_v56  ;;  %v10840_v28 = vpack.c.bf16 %v4950_v52, %v4932_v60  ;;  %v4899_v42 = vrot.slane %v3101_v17, 1 }
 0x39b   : > { %v3207_v51 = vrot.slane %v3099_v20, 7  ;;  %v3100_v30 = vmax.f32 %v8565_v34, 0.0  ;;  %8082 = vmatprep.mubr.msk.bf16.mxu0 %vm9933_vm2, %v10825_v16  ;;  %v4951_v29 = vsel %vm2220_vm6, %v4915_v31, %v4897_v45  ;;  %v4898_v57 = vrot.slane %v3099_v20, 1 }
 0x39c   : > { %v3226_v32 = vrot.slane %v3102_v27, 7  ;;  %v4917_v33 = vrot.slane %v3102_v27, 1  ;;  %v10847_v35 = vpack.c.bf16 %v3102_v27, %v3101_v17  ;;  %v10849_v43 = vpack.c.bf16 %v4951_v29, %v4933_v12 }
 0x39d   : > { %v3225_v61 = vrot.slane %v3100_v30, 7  ;;  %v4916_v24 = vrot.slane %v3100_v30, 1  ;;  %v8040_v15 = vpop.f32.mrb[16].mxu0  ;;  %v10851_v0 = vpack.c.bf16 %v3100_v30, %v3099_v20 }
 0x39e   : > { %v8566_v50 = vadd.f32 %v8040_v15, %v10729_v21  ;;  %v2992_v10 = vpop.f32.mrb[17].mxu0  ;;  %v3244_v38 = vsel %vm526_vm3, %v3208_v13, %v3226_v32  ;;  %v3262_v45 = vsel %vm526_vm3, %v3226_v32, %v3208_v13  ;;  %v4935_v31 = vsel %vm2220_vm6, %v4899_v42, %v4917_v33 }
 0x39f   : > { %v8567_v39 = vadd.f32 %v10729_v21, %v2992_v10  ;;  %v8041_v25 = vpop.f32.mrb[18].mxu0  ;;  %v10861_v9 = vpack.c.bf16 %v3244_v38, %v3262_v45  ;;  %v3243_v6 = vsel %vm526_vm3, %v3207_v51, %v3225_v61  ;;  %v3261_v55 = vsel %vm526_vm3, %v3225_v61, %v3207_v51 }
 0x3a0   : > { %v3105_v2 = vmax.f32 %v8566_v50, 0.0  ;;  %v8568_v18 = vadd.f32 %v8041_v25, %v10729_v21  ;;  %v2995_v62 = vpop.f32.mrb[19].mxu0  ;;  %v10868_v63 = vpack.c.bf16 %v3243_v6, %v3261_v55  ;;  %v4934_v1 = vsel %vm2220_vm6, %v4898_v57, %v4916_v24 }
 0x3a1   : > { %v3103_v11 = vmax.f32 %v8567_v39, 0.0  ;;  %v8569_v17 = vadd.f32 %v10729_v21, %v2995_v62  ;;  %8086 = vmatprep.mubr.msk.bf16.mxu1 %vm9933_vm2, %v10861_v9  ;;  %v4952_v19 = vsel %vm2220_vm6, %v4916_v24, %v4898_v57  ;;  %v4953_v7 = vsel %vm2220_vm6, %v4917_v33, %v4899_v42 }
 0x3a2   : > { %v3106_v60 = vmax.f32 %v8568_v18, 0.0  ;;  %8083 = vmatmul.mubr.msk.bf16.gmra.mrb[44].mxu0 %vm9933_vm2, %v10868_v63  ;;  %v10883_v20 = vpack.c.bf16 %v4952_v19, %v4934_v1  ;;  %v3210_v34 = vrot.slane %v3105_v2, 7  ;;  %v4901_v52 = vrot.slane %v3105_v2, 1  ;;  %v9357_v1 = vld [vmem:[#allocation9 + $0xc8] sm:$0xff]  }
 0x3a3   : > { %v3104_v12 = vmax.f32 %v8569_v17, 0.0  ;;  %v10885_v13 = vpack.c.bf16 %v4953_v7, %v4935_v31  ;;  %v3209_v27 = vrot.slane %v3103_v11, 7  ;;  %v4900_v32 = vrot.slane %v3103_v11, 1 }
 0x3a4   : > { %v3228_v51 = vrot.slane %v3106_v60, 7  ;;  %v4919_v30 = vrot.slane %v3106_v60, 1  ;;  %v10887_v29 = vpack.c.bf16 %v3106_v60, %v3105_v2 }
 0x3a5   : > { %11570 = vst [vmem:[#allocation18_spill] sm:$0xff] %v10885_v13  ;;  %v3227_v57 = vrot.slane %v3104_v12, 7  ;;  %v4918_v42 = vrot.slane %v3104_v12, 1  ;;  %v8044_v33 = vpop.f32.mrb[20].mxu0  ;;  %v10889_v61 = vpack.c.bf16 %v3104_v12, %v3103_v11 }
 0x3a6   : > { %v8570_v24 = vadd.f32 %v8044_v33, %v10729_v21  ;;  %v3008_v15 = vpop.f32.mrb[21].mxu0  ;;  %v3246_v50 = vsel %vm526_vm3, %v3210_v34, %v3228_v51  ;;  %v3264_v10 = vsel %vm526_vm3, %v3228_v51, %v3210_v34  ;;  %v4937_v38 = vsel %vm2220_vm6, %v4901_v52, %v4919_v30  ;;  %v9358_v33 = vld [vmem:[#allocation9 + $0xd0] sm:$0xff]  }
 0x3a7   : > { %v8571_v45 = vadd.f32 %v10729_v21, %v3008_v15  ;;  %v8045_v31 = vpop.f32.mrb[22].mxu0  ;;  %v3245_v39 = vsel %vm526_vm3, %v3209_v27, %v3227_v57  ;;  %v3263_v25 = vsel %vm526_vm3, %v3227_v57, %v3209_v27  ;;  %v10903_v6 = vpack.c.bf16 %v3246_v50, %v3264_v10 }
 0x3a8   : > { %v3109_v55 = vmax.f32 %v8570_v24, 0.0  ;;  %v8572_v2 = vadd.f32 %v8045_v31, %v10729_v21  ;;  %v3011_v18 = vpop.f32.mrb[23].mxu0  ;;  %v10906_v62 = vpack.c.bf16 %v3245_v39, %v3263_v25  ;;  %v4936_v11 = vsel %vm2220_vm6, %v4900_v32, %v4918_v42 }
 0x3a9   : > { %v3107_v17 = vmax.f32 %v8571_v45, 0.0  ;;  %v8573_v19 = vadd.f32 %v10729_v21, %v3011_v18  ;;  %v4954_v7 = vsel %vm2220_vm6, %v4918_v42, %v4900_v32  ;;  %v4955_v60 = vsel %vm2220_vm6, %v4919_v30, %v4901_v52 }
 0x3aa   : > { %v3110_v34 = vmax.f32 %v8572_v2, 0.0  ;;  %8087 = vmatmul.mubr.msk.bf16.vlgmr.msra.gmra.mrb[0].mxu1 %vm9933_vm2, %v10906_v62  ;;  %v10918_v12 = vpack.c.bf16 %v4954_v7, %v4936_v11  ;;  %v3212_v27 = vrot.slane %v3109_v55, 7  ;;  %v4903_v51 = vrot.slane %v3109_v55, 1 }
 0x3ab   : > { %v3108_v57 = vmax.f32 %v8573_v19, 0.0  ;;  %8090 = vmatprep.mubr.msk.bf16.mxu1 %vm9933_vm2, %v10903_v6  ;;  %8103 = vmatpush3.bf16.msra.mxu1 %v10723_v46  ;;  %v10924_v32 = vpack.c.bf16 %v4955_v60, %v4937_v38  ;;  %v3211_v42 = vrot.slane %v3107_v17, 7  ;;  %v4902_v15 = vrot.slane %v3107_v17, 1 }
 0x3ac   : > { %11571 = vst [vmem:[#allocation19_spill] sm:$0xff] %v10918_v12  ;;  %v3230_v52 = vrot.slane %v3110_v34, 7  ;;  %v4921_v30 = vrot.slane %v3110_v34, 1  ;;  %8104 = vmatprep.subr.bf16.mxu1 %v9357_v1  ;;  %v10926_v24 = vpack.c.bf16 %v3110_v34, %v3109_v55 }
 0x3ad   : > { %11572 = vst [vmem:[#allocation20_spill] sm:$0xff] %v10924_v32  ;;  %v3229_v50 = vrot.slane %v3108_v57, 7  ;;  %v4920_v10 = vrot.slane %v3108_v57, 1  ;;  %v8048_v45 = vpop.f32.mrb[24].mxu0  ;;  %v10928_v31 = vpack.c.bf16 %v3108_v57, %v3107_v17  ;;  %v9359_v57 = vld [vmem:[#allocation9 + $0xd8] sm:$0xff]  }
 0x3ae   : > { %v8574_v39 = vadd.f32 %v8048_v45, %v10729_v21  ;;  %v3024_v25 = vpop.f32.mrb[25].mxu0  ;;  %v3248_v46 = vsel %vm526_vm3, %v3212_v27, %v3230_v52  ;;  %v3266_v38 = vsel %vm526_vm3, %v3230_v52, %v3212_v27  ;;  %v4939_v2 = vsel %vm2220_vm6, %v4903_v51, %v4921_v30 }
 0x3af   : > { %v8575_v55 = vadd.f32 %v10729_v21, %v3024_v25  ;;  %v8049_v18 = vpop.f32.mrb[26].mxu0  ;;  %8105 = vmatpush3.bf16.msra.mxu1 %v9357_v1  ;;  %v3247_v11 = vsel %vm526_vm3, %v3211_v42, %v3229_v50  ;;  %v3265_v17 = vsel %vm526_vm3, %v3229_v50, %v3211_v42  ;;  %v10942_v19 = vpack.c.bf16 %v3248_v46, %v3266_v38 }
 0x3b0   : > { %v3113_v7 = vmax.f32 %v8574_v39, 0.0  ;;  %v8576_v60 = vadd.f32 %v8049_v18, %v10729_v21  ;;  %v3027_v34 = vpop.f32.mrb[27].mxu0  ;;  %v10945_v27 = vpack.c.bf16 %v3247_v11, %v3265_v17  ;;  %8106 = vmatprep.subr.bf16.mxu1 %v9358_v33  ;;  %v4938_v52 = vsel %vm2220_vm6, %v4902_v15, %v4920_v10 }
 0x3b1   : > { %v3111_v1 = vmax.f32 %v8575_v55, 0.0  ;;  %v8577_v45 = vadd.f32 %v10729_v21, %v3027_v34  ;;  %v4956_v25 = vsel %vm2220_vm6, %v4920_v10, %v4902_v15  ;;  %v4957_v42 = vsel %vm2220_vm6, %v4921_v30, %v4903_v51  ;;  %v9360_v30 = vld [vmem:[#allocation9 + $0xe0] sm:$0xff]  }
 0x3b2   : > { %v3114_v50 = vmax.f32 %v8576_v60, 0.0  ;;  %8091 = vmatmul.mubr.msk.bf16.gmra.mrb[4].mxu1 %vm9933_vm2, %v10945_v27  ;;  %v10957_v39 = vpack.c.bf16 %v4956_v25, %v4938_v52  ;;  %v3214_v46 = vrot.slane %v3113_v7, 7  ;;  %v4905_v38 = vrot.slane %v3113_v7, 1 }
 0x3b3   : > { %v3112_v18 = vmax.f32 %v8577_v45, 0.0  ;;  %8094 = vmatprep.mubr.msk.bf16.mxu1 %vm9933_vm2, %v10942_v19  ;;  %8107 = vmatpush3.bf16.msra.mxu1 %v9358_v33  ;;  %v10962_v55 = vpack.c.bf16 %v4957_v42, %v4939_v2  ;;  %v3213_v15 = vrot.slane %v3111_v1, 7  ;;  %v4904_v17 = vrot.slane %v3111_v1, 1 }
 0x3b4   : > { %11573 = vst [vmem:[#allocation21_spill] sm:$0xff] %v10957_v39  ;;  %v3232_v10 = vrot.slane %v3114_v50, 7  ;;  %v4923_v51 = vrot.slane %v3114_v50, 1  ;;  %8108 = vmatprep.subr.bf16.mxu1 %v9359_v57  ;;  %v10964_v11 = vpack.c.bf16 %v3114_v50, %v3113_v7 }
 0x3b5   : > { %11574 = vst [vmem:[#allocation22_spill] sm:$0xff] %v10962_v55  ;;  %v3231_v60 = vrot.slane %v3112_v18, 7  ;;  %v4922_v34 = vrot.slane %v3112_v18, 1  ;;  %v8052_v52 = vpop.f32.mrb[28].mxu0  ;;  %v10966_v25 = vpack.c.bf16 %v3112_v18, %v3111_v1 }
 0x3b6   : > { %v8578_v45 = vadd.f32 %v8052_v52, %v10729_v21  ;;  %v3040_v23 = vpop.f32.mrb[29].mxu0  ;;  %v3250_v33 = vsel %vm526_vm3, %v3214_v46, %v3232_v10  ;;  %v3268_v2 = vsel %vm526_vm3, %v3232_v10, %v3214_v46  ;;  %v4941_v42 = vsel %vm2220_vm6, %v4905_v38, %v4923_v51  ;;  %v9361_v10 = vld [vmem:[#allocation9 + $0xe8] sm:$0xff]  }
 0x3b7   : > { %v8579_v7 = vadd.f32 %v10729_v21, %v3040_v23  ;;  %v8053_v50 = vpop.f32.mrb[30].mxu0  ;;  %8109 = vmatpush3.bf16.msra.mxu1 %v9359_v57  ;;  %v3249_v1 = vsel %vm526_vm3, %v3213_v15, %v3231_v60  ;;  %v3267_v18 = vsel %vm526_vm3, %v3231_v60, %v3213_v15  ;;  %v10980_v52 = vpack.c.bf16 %v3250_v33, %v3268_v2 }
 0x3b8   : > { %v3117_v55 = vmax.f32 %v8578_v45, 0.0  ;;  %v8580_v39 = vadd.f32 %v8053_v50, %v10729_v21  ;;  %v3043_v32 = vpop.f32.mrb[31].mxu0  ;;  %v10983_v46 = vpack.c.bf16 %v3249_v1, %v3267_v18  ;;  %8110 = vmatprep.subr.bf16.mxu1 %v9360_v30  ;;  %v4940_v23 = vsel %vm2220_vm6, %v4904_v17, %v4922_v34 }
 0x3b9   : > { %v3115_v57 = vmax.f32 %v8579_v7, 0.0  ;;  %v8581_v12 = vadd.f32 %v10729_v21, %v3043_v32  ;;  %v4958_v13 = vsel %vm2220_vm6, %v4922_v34, %v4904_v17  ;;  %v4959_v15 = vsel %vm2220_vm6, %v4923_v51, %v4905_v38 }
 0x3ba   : > { %v3118_v60 = vmax.f32 %v8580_v39, 0.0  ;;  %8095 = vmatmul.mubr.msk.bf16.gmra.mrb[8].mxu1 %vm9933_vm2, %v10983_v46  ;;  %v10995_v45 = vpack.c.bf16 %v4958_v13, %v4940_v23  ;;  %v3216_v33 = vrot.slane %v3117_v55, 7  ;;  %v4907_v2 = vrot.slane %v3117_v55, 1  ;;  %v9362_v39 = vld [vmem:[#allocation9 + $0xf0] sm:$0xff]  }
 0x3bb   : > { %v3116_v50 = vmax.f32 %v8581_v12, 0.0  ;;  %8098 = vmatprep.mubr.msk.bf16.mxu1 %vm9933_vm2, %v10980_v52  ;;  %8111 = vmatpush3.bf16.msra.mxu1 %v9360_v30  ;;  %v11000_v21 = vpack.c.bf16 %v4959_v15, %v4941_v42  ;;  %v3215_v32 = vrot.slane %v3115_v57, 7  ;;  %v4906_v34 = vrot.slane %v3115_v57, 1 }
 0x3bc   : > { %v3234_v17 = vrot.slane %v3118_v60, 7  ;;  %v4925_v38 = vrot.slane %v3118_v60, 1  ;;  %8112 = vmatprep.subr.bf16.mxu1 %v9361_v10  ;;  %v11002_v51 = vpack.c.bf16 %v3118_v60, %v3117_v55 }
 0x3bd   : > { %v3233_v13 = vrot.slane %v3116_v50, 7  ;;  %v4924_v7 = vrot.slane %v3116_v50, 1  ;;  %v11004_v1 = vpack.c.bf16 %v3116_v50, %v3115_v57 }
 0x3be   : > { %v3252_v12 = vsel %vm526_vm3, %v3216_v33, %v3234_v17  ;;  %v3270_v30 = vsel %vm526_vm3, %v3234_v17, %v3216_v33  ;;  %v4943_v42 = vsel %vm2220_vm6, %v4907_v2, %v4925_v38  ;;  %v4961_v18 = vsel %vm2220_vm6, %v4925_v38, %v4907_v2  ;;  %v9363_v33 = vld [vmem:[#allocation9 + $0xf8] sm:$0xff]   ;;  %v9365_v17 = vld [vmem:[#allocation9 + $0x188] sm:$0xff]  }
 0x3bf   : > { %8113 = vmatpush3.bf16.msra.mxu1 %v9361_v10  ;;  %v3251_v55 = vsel %vm526_vm3, %v3215_v32, %v3233_v13  ;;  %v3269_v23 = vsel %vm526_vm3, %v3233_v13, %v3215_v32  ;;  %v11018_v57 = vpack.c.bf16 %v3252_v12, %v3270_v30  ;;  %v4942_v15 = vsel %vm2220_vm6, %v4906_v34, %v4924_v7  ;;  %v9364_v32 = vld [vmem:[#allocation9 + $0x180] sm:$0xff]   ;;  %v9367_v38 = vld [vmem:[#allocation9 + $0x198] sm:$0xff]   ;;  %v9373_v12 = vld [vmem:[#allocation9 + $0x48] sm:$0xff]  }
 0x3c0   : > { %v11022_v60 = vpack.c.bf16 %v3251_v55, %v3269_v23  ;;  %8114 = vmatprep.subr.bf16.mxu1 %v9362_v39  ;;  %v4960_v50 = vsel %vm2220_vm6, %v4924_v7, %v4906_v34  ;;  %v11026_v2 = vpack.c.bf16 %v4961_v18, %v4943_v42  ;;  %v9370_v34 = vld [vmem:[#allocation9 + $0x1b0] sm:$0xff]   ;;  %v9371_v13 = vld [vmem:[#allocation9 + $0x1b8] sm:$0xff]   ;;  %v9372_v7 = vld [vmem:[#allocation9 + $0x40] sm:$0xff]  }
 0x3c1   : > { %v11028_v10 = vpack.c.bf16 %v4960_v50, %v4942_v15  ;;  %v9374_v30 = vld [vmem:[#allocation9 + $0x50] sm:$0xff]   ;;  %v9375_v42 = vld [vmem:[#allocation9 + $0x58] sm:$0xff]   ;;  %v9388_v23 = vld [vmem:[#allocation9 + $0x1c0] sm:$0xff]  }
 0x3c2   : > { %8099 = vmatmul.mubr.msk.bf16.gmra.mrb[12].mxu1 %vm9933_vm2, %v11022_v60  ;;  %v9387_v55 = vld [vmem:[#allocation9 + $0x138] sm:$0xff]  }
 0x3c3   : > { %8115 = vmatpush3.bf16.msra.mxu1 %v9362_v39  ;;  %8118 = vmatprep.mubr.msk.bf16.mxu1 %vm9933_vm2, %v10754_v40  ;;  %v9368_v40 = vld [vmem:[#allocation9 + $0x1a0] sm:$0xff]   ;;  %v9369_v39 = vld [vmem:[#allocation9 + $0x1a8] sm:$0xff]  }
 0x3c4   : > { %8116 = vmatprep.subr.bf16.mxu1 %v9363_v33 }
 0x3c7   : > { %8117 = vmatpush3.bf16.msra.mxu1 %v9363_v33 }
 0x3c8   : > { %8150 = vmatprep.subr.bf16.mxu1 %v9364_v32 }
 0x3ca   : > { %8119 = vmatmul.mubr.msk.bf16.vlgmr.msra.gmra.mrb[16].mxu1 %vm9933_vm2, %v10761_v26 }
 0x3cb   : > { %8122 = vmatprep.mubr.msk.bf16.mxu1 %vm9933_vm2, %v10786_v58  ;;  %8151 = vmatpush3.bf16.msra.mxu1 %v9364_v32 }
 0x3cc   : > { %8152 = vmatprep.subr.bf16.mxu1 %v9365_v17 }
 0x3cf   : > { %8153 = vmatpush3.bf16.msra.mxu1 %v9365_v17 }
 0x3d0   : > { %8154 = vmatprep.subr.bf16.mxu1 %v9366_v3 }
 0x3d2   : > { %8123 = vmatmul.mubr.msk.bf16.gmra.mrb[20].mxu1 %vm9933_vm2, %v10791_v36 }
 0x3d3   : > { %8126 = vmatprep.mubr.msk.bf16.mxu1 %vm9933_vm2, %v10828_v56  ;;  %8155 = vmatpush3.bf16.msra.mxu1 %v9366_v3 }
 0x3d4   : > { %8156 = vmatprep.subr.bf16.mxu1 %v9367_v38 }
 0x3d7   : > { %8157 = vmatpush3.bf16.msra.mxu1 %v9367_v38 }
 0x3d8   : > { %8158 = vmatprep.subr.bf16.mxu1 %v9368_v40 }
 0x3da   : > { %8127 = vmatmul.mubr.msk.bf16.gmra.mrb[24].mxu1 %vm9933_vm2, %v10825_v16 }
 0x3db   : > { %8130 = vmatprep.mubr.msk.bf16.mxu1 %vm9933_vm2, %v10868_v63  ;;  %8159 = vmatpush3.bf16.msra.mxu1 %v9368_v40 }
 0x3dc   : > { %8160 = vmatprep.subr.bf16.mxu1 %v9369_v39 }
 0x3df   : > { %8161 = vmatpush3.bf16.msra.mxu1 %v9369_v39 }
 0x3e0   : > { %8162 = vmatprep.subr.bf16.mxu1 %v9370_v34 }
 0x3e2   : > { %8131 = vmatmul.mubr.msk.bf16.gmra.mrb[28].mxu1 %vm9933_vm2, %v10861_v9 }
 0x3e3   : > { %8134 = vmatprep.mubr.msk.bf16.mxu1 %vm9933_vm2, %v10906_v62  ;;  %8163 = vmatpush3.bf16.msra.mxu1 %v9370_v34 }
 0x3e4   : > { %8164 = vmatprep.subr.bf16.mxu1 %v9371_v13 }
 0x3e7   : > { %8165 = vmatpush3.bf16.msra.mxu1 %v9371_v13  ;;  %v9389_v13 = vld [vmem:[#allocation9 + $0x1c8] sm:$0xff]  }
 0x3e8   : > { %8198 = vmatprep.subr.bf16.mxu1 %v9372_v7 }
 0x3ea   : > { %8135 = vmatmul.mubr.msk.bf16.gmra.mrb[0].mxu1 %vm9933_vm2, %v10903_v6 }
 0x3eb   : > { %8138 = vmatprep.mubr.msk.bf16.mxu1 %vm9933_vm2, %v10945_v27 }
 0x3f2   : > { %8139 = vmatmul.mubr.msk.bf16.gmra.mrb[4].mxu1 %vm9933_vm2, %v10942_v19 }
 0x3f3   : > { %8142 = vmatprep.mubr.msk.bf16.mxu1 %vm9933_vm2, %v10983_v46 }
 0x3fa   : > { %8143 = vmatmul.mubr.msk.bf16.gmra.mrb[8].mxu1 %vm9933_vm2, %v10980_v52 }
 0x3fb   : > { %8146 = vmatprep.mubr.msk.bf16.mxu1 %vm9933_vm2, %v11022_v60 }
 0x402   : > { %8147 = vmatmul.mubr.msk.bf16.gmra.mrb[12].mxu1 %vm9933_vm2, %v11018_v57 }
 0x403   : > { %8166 = vmatprep.mubr.msk.bf16.mxu1 %vm9933_vm2, %v10761_v26  ;;  %v9376_v26 = vld [vmem:[#allocation9 + $0x60] sm:$0xff]  }
 0x40a   : > { %8167 = vmatmul.mubr.msk.bf16.vlgmr.msra.gmra.mrb[16].mxu1 %vm9933_vm2, %v10786_v58  ;;  %v9377_v58 = vld [vmem:[#allocation9 + $0x68] sm:$0xff]  }
 0x40b   : > { %8170 = vmatprep.mubr.msk.bf16.mxu1 %vm9933_vm2, %v10791_v36  ;;  %8199 = vmatpush3.bf16.msra.mxu1 %v9372_v7  ;;  %v9378_v36 = vld [vmem:[#allocation9 + $0x70] sm:$0xff]  }
 0x40c   : > { %8200 = vmatprep.subr.bf16.mxu1 %v9373_v12  ;;  %v9390_v7 = vld [vmem:[#allocation9 + $0x1d0] sm:$0xff]  }
 0x40f   : > { %8201 = vmatpush3.bf16.msra.mxu1 %v9373_v12  ;;  %v9391_v12 = vld [vmem:[#allocation9 + $0x1d8] sm:$0xff]  }
 0x410   : > { %8202 = vmatprep.subr.bf16.mxu1 %v9374_v30 }
 0x412   : > { %8171 = vmatmul.mubr.msk.bf16.gmra.mrb[20].mxu1 %vm9933_vm2, %v10828_v56  ;;  %v9380_v56 = vld [vmem:[#allocation9 + $0x100] sm:$0xff]  }
 0x413   : > { %8174 = vmatprep.mubr.msk.bf16.mxu1 %vm9933_vm2, %v10825_v16  ;;  %8203 = vmatpush3.bf16.msra.mxu1 %v9374_v30  ;;  %v9379_v16 = vld [vmem:[#allocation9 + $0x78] sm:$0xff]   ;;  %v9392_v30 = vld [vmem:[#allocation9 + $0x1e0] sm:$0xff]  }
 0x414   : > { %8204 = vmatprep.subr.bf16.mxu1 %v9375_v42 }
 0x417   : > { %8205 = vmatpush3.bf16.msra.mxu1 %v9375_v42  ;;  %v9394_v42 = vld [vmem:[#allocation9 + $0x1f0] sm:$0xff]  }
 0x418   : > { %8206 = vmatprep.subr.bf16.mxu1 %v9376_v26 }
 0x41a   : > { %8175 = vmatmul.mubr.msk.bf16.gmra.mrb[24].mxu1 %vm9933_vm2, %v10868_v63  ;;  %v9381_v63 = vld [vmem:[#allocation9 + $0x108] sm:$0xff]  }
 0x41b   : > { %8178 = vmatprep.mubr.msk.bf16.mxu1 %vm9933_vm2, %v10861_v9  ;;  %8207 = vmatpush3.bf16.msra.mxu1 %v9376_v26  ;;  %v11575_v9 = vmov 0.0|0.0   ;;  %v9395_v26 = vld [vmem:[#allocation9 + $0x1f8] sm:$0xff]  }
 0x41c   : > { %8208 = vmatprep.subr.bf16.mxu1 %v9377_v58 }
 0x41f   : > { %8209 = vmatpush3.bf16.msra.mxu1 %v9377_v58  ;;  %v9396_v58 = vld [vmem:[#allocation9 + $0x80] sm:$0xff]  }
 0x420   : > { %8210 = vmatprep.subr.bf16.mxu1 %v9378_v36 }
 0x422   : > { %8179 = vmatmul.mubr.msk.bf16.gmra.mrb[28].mxu1 %vm9933_vm2, %v10906_v62  ;;  %v9383_v62 = vld [vmem:[#allocation9 + $0x118] sm:$0xff]  }
 0x423   : > { %8182 = vmatprep.mubr.msk.bf16.mxu1 %vm9933_vm2, %v10903_v6  ;;  %8211 = vmatpush3.bf16.msra.mxu1 %v9378_v36  ;;  %v9382_v6 = vld [vmem:[#allocation9 + $0x110] sm:$0xff]   ;;  %v9397_v36 = vld [vmem:[#allocation9 + $0x88] sm:$0xff]  }
 0x424   : > { %8212 = vmatprep.subr.bf16.mxu1 %v9379_v16 }
 0x427   : > { %8213 = vmatpush3.bf16.msra.mxu1 %v9379_v16  ;;  %v9398_v16 = vld [vmem:[#allocation9 + $0x90] sm:$0xff]  }
 0x428   : > { %8246 = vmatprep.subr.bf16.mxu1 %v9380_v56 }
 0x42a   : > { %8183 = vmatmul.mubr.msk.bf16.gmra.mrb[0].mxu1 %vm9933_vm2, %v10945_v27 }
 0x42b   : > { %8186 = vmatprep.mubr.msk.bf16.mxu1 %vm9933_vm2, %v10942_v19  ;;  %v9386_v19 = vld [vmem:[#allocation9 + $0x130] sm:$0xff]  }
 0x432   : > { %8187 = vmatmul.mubr.msk.bf16.gmra.mrb[4].mxu1 %vm9933_vm2, %v10983_v46 }
 0x433   : > { %8190 = vmatprep.mubr.msk.bf16.mxu1 %vm9933_vm2, %v10980_v52 }
 0x43a   : > { %8191 = vmatmul.mubr.msk.bf16.gmra.mrb[8].mxu1 %vm9933_vm2, %v11022_v60 }
 0x43b   : > { %8194 = vmatprep.mubr.msk.bf16.mxu1 %vm9933_vm2, %v11018_v57 }
 0x442   : > { %8195 = vmatmul.mubr.msk.bf16.gmra.mrb[12].mxu1 %vm9933_vm2, %v9929_v4  ;;  %v9384_v4 = vld [vmem:[#allocation9 + $0x120] sm:$0xff]  }
 0x443   : > { %8214 = vmatprep.mubr.bf16.mxu1 %v11575_v9 }
 0x44a   : > { %8215 = vmatmul.mubr.bf16.vlgmr.msra.gmra.mrb[16].mxu1 %v10737_v37 }
 0x44b   : > { %8218 = vmatprep.mubr.bf16.mxu1 %v10735_v41  ;;  %8247 = vmatpush3.bf16.msra.mxu1 %v9380_v56  ;;  %v9399_v56 = vld [vmem:[#allocation9 + $0x98] sm:$0xff]  }
 0x44c   : > { %8248 = vmatprep.subr.bf16.mxu1 %v9381_v63 }
 0x44f   : > { %8249 = vmatpush3.bf16.msra.mxu1 %v9381_v63  ;;  %v9400_v63 = vld [vmem:[#allocation9 + $0xa0] sm:$0xff]  }
 0x450   : > { %8250 = vmatprep.subr.bf16.mxu1 %v9382_v6 }
 0x452   : > { %8219 = vmatmul.mubr.bf16.gmra.mrb[20].mxu1 %v10774_v22 }
 0x453   : > { %8222 = vmatprep.mubr.bf16.mxu1 %v10776_v48  ;;  %8251 = vmatpush3.bf16.msra.mxu1 %v9382_v6  ;;  %v11580_v6 = vld [vmem:[#allocation22_spill] sm:$0xff] }
 0x454   : > { %8252 = vmatprep.subr.bf16.mxu1 %v9383_v62 }
 0x457   : > { %8253 = vmatpush3.bf16.msra.mxu1 %v9383_v62  ;;  %v9413_v62 = vld [vmem:[#allocation9 + $0x208] sm:$0xff]  }
 0x458   : > { %8254 = vmatprep.subr.bf16.mxu1 %v9384_v4 }
 0x45a   : > { %8223 = vmatmul.mubr.bf16.gmra.mrb[24].mxu1 %v10809_v8 }
 0x45b   : > { %8226 = vmatprep.mubr.bf16.mxu1 %v10805_v59  ;;  %8255 = vmatpush3.bf16.msra.mxu1 %v9384_v4  ;;  %v9414_v4 = vld [vmem:[#allocation9 + $0x210] sm:$0xff]  }
 0x45c   : > { %8256 = vmatprep.subr.bf16.mxu1 %v9385_v5 }
 0x45d   : > { %v11136_v27 = vpop.f32.mrb[32].mxu0 }
 0x45e   : > { %v11138_v52 = vpop.f32.mrb[33].mxu0 }
 0x45f   : > { %v11140_v46 = vpop.f32.mrb[34].mxu0  ;;  %8257 = vmatpush3.bf16.msra.mxu1 %v9385_v5  ;;  %v9415_v5 = vld [vmem:[#allocation9 + $0x218] sm:$0xff]  }
 0x460   : > { %v11142_v18 = vpop.f32.mrb[35].mxu0  ;;  %8258 = vmatprep.subr.bf16.mxu1 %v9386_v19 }
 0x462   : > { %8227 = vmatmul.mubr.bf16.gmra.mrb[28].mxu1 %v10851_v0 }
 0x463   : > { %8230 = vmatprep.mubr.bf16.mxu1 %v10847_v35  ;;  %8259 = vmatpush3.bf16.msra.mxu1 %v9386_v19  ;;  %v9417_v19 = vld [vmem:[#allocation9 + $0x228] sm:$0xff]  }
 0x464   : > { %8260 = vmatprep.subr.bf16.mxu1 %v9387_v55 }
 0x465   : > { %v11146_v57 = vpop.f32.mrb[36].mxu0 }
 0x466   : > { %v11148_v15 = vpop.f32.mrb[37].mxu0 }
 0x467   : > { %v11150_v60 = vpop.f32.mrb[38].mxu0  ;;  %8261 = vmatpush3.bf16.msra.mxu1 %v9387_v55  ;;  %v9418_v55 = vld [vmem:[#allocation9 + $0x230] sm:$0xff]  }
 0x468   : > { %v11152_v33 = vpop.f32.mrb[39].mxu0  ;;  %8294 = vmatprep.subr.bf16.mxu1 %v9388_v23 }
 0x46a   : > { %8231 = vmatmul.mubr.bf16.gmra.mrb[0].mxu1 %v10889_v61 }
 0x46b   : > { %8234 = vmatprep.mubr.bf16.mxu1 %v10887_v29 }
 0x46d   : > { %v11156_v50 = vpop.f32.mrb[40].mxu0 }
 0x46e   : > { %v11158_v32 = vpop.f32.mrb[41].mxu0 }
 0x46f   : > { %v11160_v17 = vpop.f32.mrb[42].mxu0 }
 0x470   : > { %v11162_v3 = vpop.f32.mrb[43].mxu0 }
 0x472   : > { %8235 = vmatmul.mubr.bf16.gmra.mrb[4].mxu1 %v10928_v31 }
 0x473   : > { %8238 = vmatprep.mubr.bf16.mxu1 %v10926_v24 }
 0x475   : > { %v11166_v38 = vpop.f32.mrb[44].mxu0 }
 0x476   : > { %v11168_v40 = vpop.f32.mrb[45].mxu0 }
 0x477   : > { %v11170_v39 = vpop.f32.mrb[46].mxu0 }
 0x478   : > { %v11172_v34 = vpop.f32.mrb[47].mxu0 }
 0x47a   : > { %8239 = vmatmul.mubr.bf16.gmra.mrb[8].mxu1 %v10966_v25 }
 0x47b   : > { %8242 = vmatprep.mubr.bf16.mxu1 %v10964_v11 }
 0x482   : > { %8243 = vmatmul.mubr.bf16.gmra.mrb[12].mxu1 %v11004_v1 }
 0x483   : > { %8262 = vmatprep.mubr.bf16.mxu1 %v10737_v37  ;;  %v9393_v37 = vld [vmem:[#allocation9 + $0x1e8] sm:$0xff]  }
 0x48a   : > { %8263 = vmatmul.mubr.bf16.vlgmr.msra.gmra.mrb[16].mxu1 %v10735_v41 }
 0x48b   : > { %8266 = vmatprep.mubr.bf16.mxu1 %v10774_v22  ;;  %8295 = vmatpush3.bf16.msra.mxu1 %v9388_v23  ;;  %v9419_v23 = vld [vmem:[#allocation9 + $0x238] sm:$0xff]  }
 0x48c   : > { %8296 = vmatprep.subr.bf16.mxu1 %v9389_v13 }
 0x48f   : > { %8297 = vmatpush3.bf16.msra.mxu1 %v9389_v13  ;;  %v9420_v13 = vld [vmem:[#allocation10] sm:$0xff]  }
 0x490   : > { %8298 = vmatprep.subr.bf16.mxu1 %v9390_v7 }
 0x492   : > { %8267 = vmatmul.mubr.bf16.gmra.mrb[20].mxu1 %v10776_v48 }
 0x493   : > { %8270 = vmatprep.mubr.bf16.mxu1 %v10809_v8  ;;  %8299 = vmatpush3.bf16.msra.mxu1 %v9390_v7  ;;  %v9421_v7 = vld [vmem:[#allocation10 + $0x8] sm:$0xff]  }
 0x494   : > { %8300 = vmatprep.subr.bf16.mxu1 %v9391_v12 }
 0x497   : > { %8301 = vmatpush3.bf16.msra.mxu1 %v9391_v12  ;;  %v9422_v12 = vld [vmem:[#allocation10 + $0x10] sm:$0xff]  }
 0x498   : > { %8302 = vmatprep.subr.bf16.mxu1 %v9392_v30 }
 0x49a   : > { %8271 = vmatmul.mubr.bf16.gmra.mrb[24].mxu1 %v10805_v59 }
 0x49b   : > { %8274 = vmatprep.mubr.bf16.mxu1 %v10851_v0  ;;  %8303 = vmatpush3.bf16.msra.mxu1 %v9392_v30  ;;  %v9423_v30 = vld [vmem:[#allocation10 + $0x18] sm:$0xff]  }
 0x49c   : > { %8304 = vmatprep.subr.bf16.mxu1 %v9393_v37 }
 0x49f   : > { %8305 = vmatpush3.bf16.msra.mxu1 %v9393_v37 }
 0x4a0   : > { %8306 = vmatprep.subr.bf16.mxu1 %v9394_v42 }
 0x4a2   : > { %8275 = vmatmul.mubr.bf16.gmra.mrb[28].mxu1 %v10847_v35 }
 0x4a3   : > { %8278 = vmatprep.mubr.bf16.mxu1 %v10889_v61  ;;  %8307 = vmatpush3.bf16.msra.mxu1 %v9394_v42  ;;  %v9432_v42 = vld [vmem:[%s9912_s20 + $0x20] sm:$0xff] }
 0x4a4   : > { %8308 = vmatprep.subr.bf16.mxu1 %v9395_v26 }
 0x4a7   : > { %8309 = vmatpush3.bf16.msra.mxu1 %v9395_v26  ;;  %v9433_v26 = vld [vmem:[%s9912_s20 + $0x28] sm:$0xff] }
 0x4a8   : > { %8342 = vmatprep.subr.bf16.mxu1 %v9396_v58 }
 0x4aa   : > { %8279 = vmatmul.mubr.bf16.gmra.mrb[0].mxu1 %v10887_v29 }
 0x4ab   : > { %8282 = vmatprep.mubr.bf16.mxu1 %v10928_v31 }
 0x4b2   : > { %8283 = vmatmul.mubr.bf16.gmra.mrb[4].mxu1 %v10926_v24 }
 0x4b3   : > { %8286 = vmatprep.mubr.bf16.mxu1 %v10966_v25 }
 0x4ba   : > { %8287 = vmatmul.mubr.bf16.gmra.mrb[8].mxu1 %v10964_v11 }
 0x4bb   : > { %8290 = vmatprep.mubr.bf16.mxu1 %v11004_v1 }
 0x4c2   : > { %8291 = vmatmul.mubr.bf16.gmra.mrb[12].mxu1 %v11002_v51 }
 0x4c3   : > { %8310 = vmatprep.mubr.bf16.mxu1 %v10735_v41  ;;  %v9401_v41 = vld [vmem:[#allocation9 + $0xa8] sm:$0xff]  }
 0x4ca   : > { %8311 = vmatmul.mubr.bf16.vlgmr.msra.gmra.mrb[16].mxu1 %v10774_v22  ;;  %v9402_v22 = vld [vmem:[#allocation9 + $0xb0] sm:$0xff]  }
 0x4cb   : > { %8314 = vmatprep.mubr.bf16.mxu1 %v10776_v48  ;;  %8343 = vmatpush3.bf16.msra.mxu1 %v9396_v58  ;;  %v9403_v48 = vld [vmem:[#allocation9 + $0xb8] sm:$0xff]   ;;  %v9434_v58 = vld [vmem:[%s9912_s20 + $0x30] sm:$0xff] }
 0x4cc   : > { %8344 = vmatprep.subr.bf16.mxu1 %v9397_v36 }
 0x4cf   : > { %8345 = vmatpush3.bf16.msra.mxu1 %v9397_v36  ;;  %v9435_v36 = vld [vmem:[%s9912_s20 + $0x38] sm:$0xff] }
 0x4d0   : > { %8346 = vmatprep.subr.bf16.mxu1 %v9398_v16 }
 0x4d2   : > { %8315 = vmatmul.mubr.bf16.gmra.mrb[20].mxu1 %v10809_v8  ;;  %v9405_v8 = vld [vmem:[#allocation9 + $0x148] sm:$0xff]  }
 0x4d3   : > { %8318 = vmatprep.mubr.bf16.mxu1 %v10805_v59  ;;  %8347 = vmatpush3.bf16.msra.mxu1 %v9398_v16  ;;  %v9404_v59 = vld [vmem:[#allocation9 + $0x140] sm:$0xff]   ;;  %v5794_v16 = vpack.c.bf16 %v9435_v36, %v9434_v58 }
 0x4d4   : > { %8348 = vmatprep.subr.bf16.mxu1 %v9399_v56 }
 0x4d7   : > { %8349 = vmatpush3.bf16.msra.mxu1 %v9399_v56 }
 0x4d8   : > { %8350 = vmatprep.subr.bf16.mxu1 %v9400_v63 }
 0x4da   : > { %8319 = vmatmul.mubr.bf16.gmra.mrb[24].mxu1 %v10851_v0  ;;  %v9407_v0 = vld [vmem:[#allocation9 + $0x158] sm:$0xff]  }
 0x4db   : > { %8322 = vmatprep.mubr.bf16.mxu1 %v10847_v35  ;;  %8351 = vmatpush3.bf16.msra.mxu1 %v9400_v63  ;;  %v9406_v35 = vld [vmem:[#allocation9 + $0x150] sm:$0xff]  }
 0x4dc   : > { %8352 = vmatprep.subr.bf16.mxu1 %v9401_v41  ;;  %v9438_v63 = vld [vmem:[%s9912_s20 + $0x50] sm:$0xff] }
 0x4df   : > { %8353 = vmatpush3.bf16.msra.mxu1 %v9401_v41  ;;  %v9439_v41 = vld [vmem:[%s9912_s20 + $0x58] sm:$0xff] }
 0x4e0   : > { %8354 = vmatprep.subr.bf16.mxu1 %v9402_v22 }
 0x4e2   : > { %8323 = vmatmul.mubr.bf16.gmra.mrb[28].mxu1 %v10889_v61  ;;  %v9409_v61 = vld [vmem:[#allocation9 + $0x168] sm:$0xff]  }
 0x4e3   : > { %8326 = vmatprep.mubr.bf16.mxu1 %v10887_v29  ;;  %8355 = vmatpush3.bf16.msra.mxu1 %v9402_v22  ;;  %v9408_v29 = vld [vmem:[#allocation9 + $0x160] sm:$0xff]   ;;  %v5796_v22 = vpack.c.bf16 %v9439_v41, %v9438_v63 }
 0x4e4   : > { %8356 = vmatprep.subr.bf16.mxu1 %v9403_v48 }
 0x4e7   : > { %8357 = vmatpush3.bf16.msra.mxu1 %v9403_v48  ;;  %v9440_v48 = vld [vmem:[%s9912_s20 + $0x60] sm:$0xff] }
 0x4e8   : > { %8390 = vmatprep.subr.bf16.mxu1 %v9404_v59 }
 0x4ea   : > { %8327 = vmatmul.mubr.bf16.gmra.mrb[0].mxu1 %v10928_v31  ;;  %v9411_v31 = vld [vmem:[#allocation9 + $0x178] sm:$0xff]  }
 0x4eb   : > { %8330 = vmatprep.mubr.bf16.mxu1 %v10926_v24  ;;  %v9410_v24 = vld [vmem:[#allocation9 + $0x170] sm:$0xff]  }
 0x4f2   : > { %8331 = vmatmul.mubr.bf16.gmra.mrb[4].mxu1 %v10966_v25  ;;  %v9412_v25 = vld [vmem:[#allocation9 + $0x200] sm:$0xff]  }
 0x4f3   : > { %8334 = vmatprep.mubr.bf16.mxu1 %v10964_v11  ;;  %v11576_v11 = vld [vmem:[#allocation18_spill] sm:$0xff] }
 0x4fa   : > { %8335 = vmatmul.mubr.bf16.gmra.mrb[8].mxu1 %v11004_v1  ;;  %v11578_v1 = vld [vmem:[#allocation20_spill] sm:$0xff] }
 0x4fb   : > { %8338 = vmatprep.mubr.bf16.mxu1 %v11002_v51  ;;  %v11577_v51 = vld [vmem:[#allocation19_spill] sm:$0xff] }
 0x502   : > { %8339 = vmatmul.mubr.bf16.gmra.mrb[12].mxu1 %v11575_v9  ;;  %v11579_v9 = vld [vmem:[#allocation21_spill] sm:$0xff] }
 0x503   : > { %8358 = vmatprep.mubr.msk.bf16.mxu1 %vm10448_vm5, %v10445_v14 }
 0x50a   : > { %8359 = vmatmul.mubr.msk.bf16.vlgmr.msra.gmra.mrb[16].mxu1 %vm10448_vm5, %v10756_v44 }
 0x50b   : > { %8362 = vmatprep.mubr.msk.bf16.mxu1 %vm10448_vm5, %v10768_v53  ;;  %8391 = vmatpush3.bf16.msra.mxu1 %v9404_v59  ;;  %v9441_v59 = vld [vmem:[%s9912_s20 + $0x68] sm:$0xff] }
 0x50c   : > { %8392 = vmatprep.subr.bf16.mxu1 %v9405_v8 }
 0x50f   : > { %8393 = vmatpush3.bf16.msra.mxu1 %v9405_v8  ;;  %v5797_v8 = vpack.c.bf16 %v9441_v59, %v9440_v48 }
 0x510   : > { %8394 = vmatprep.subr.bf16.mxu1 %v9406_v35 }
 0x512   : > { %8363 = vmatmul.mubr.msk.bf16.gmra.mrb[20].mxu1 %vm10448_vm5, %v10803_v49 }
 0x513   : > { %8366 = vmatprep.mubr.msk.bf16.mxu1 %vm10448_vm5, %v10818_v54  ;;  %8395 = vmatpush3.bf16.msra.mxu1 %v9406_v35  ;;  %v9442_v35 = vld [vmem:[%s9912_s20 + $0x70] sm:$0xff] }
 0x514   : > { %8396 = vmatprep.subr.bf16.mxu1 %v9407_v0 }
 0x517   : > { %8397 = vmatpush3.bf16.msra.mxu1 %v9407_v0  ;;  %v9443_v0 = vld [vmem:[%s9912_s20 + $0x78] sm:$0xff] }
 0x518   : > { %8398 = vmatprep.subr.bf16.mxu1 %v9408_v29 }
 0x51a   : > { %8367 = vmatmul.mubr.msk.bf16.gmra.mrb[24].mxu1 %vm10448_vm5, %v10840_v28 }
 0x51b   : > { %8370 = vmatprep.mubr.msk.bf16.mxu1 %vm10448_vm5, %v10849_v43  ;;  %8399 = vmatpush3.bf16.msra.mxu1 %v9408_v29  ;;  %v5798_v29 = vpack.c.bf16 %v9443_v0, %v9442_v35 }
 0x51c   : > { %8400 = vmatprep.subr.bf16.mxu1 %v9409_v61 }
 0x51f   : > { %8401 = vmatpush3.bf16.msra.mxu1 %v9409_v61  ;;  %v9444_v61 = vld [vmem:[%s9912_s20 + $0x80] sm:$0xff] }
 0x520   : > { %8402 = vmatprep.subr.bf16.mxu1 %v9410_v24 }
 0x522   : > { %8371 = vmatmul.mubr.msk.bf16.gmra.mrb[28].mxu1 %vm10448_vm5, %v10883_v20 }
 0x523   : > { %8374 = vmatprep.mubr.msk.bf16.mxu1 %vm10448_vm5, %v11576_v11  ;;  %8403 = vmatpush3.bf16.msra.mxu1 %v9410_v24  ;;  %v9445_v24 = vld [vmem:[%s9912_s20 + $0x88] sm:$0xff] }
 0x524   : > { %8404 = vmatprep.subr.bf16.mxu1 %v9411_v31 }
 0x527   : > { %8405 = vmatpush3.bf16.msra.mxu1 %v9411_v31  ;;  %v5799_v31 = vpack.c.bf16 %v9445_v24, %v9444_v61 }
 0x528   : > { %8438 = vmatprep.subr.bf16.mxu1 %v9412_v25 }
 0x52a   : > { %8375 = vmatmul.mubr.msk.bf16.gmra.mrb[0].mxu1 %vm10448_vm5, %v11577_v51 }
 0x52b   : > { %8378 = vmatprep.mubr.msk.bf16.mxu1 %vm10448_vm5, %v11578_v1 }
 0x532   : > { %8379 = vmatmul.mubr.msk.bf16.gmra.mrb[4].mxu1 %vm10448_vm5, %v11579_v9 }
 0x533   : > { %8382 = vmatprep.mubr.msk.bf16.mxu1 %vm10448_vm5, %v11580_v6 }
 0x53a   : > { %8383 = vmatmul.mubr.msk.bf16.gmra.mrb[8].mxu1 %vm10448_vm5, %v10995_v45 }
 0x53b   : > { %8386 = vmatprep.mubr.msk.bf16.mxu1 %vm10448_vm5, %v11000_v21 }
 0x542   : > { %8387 = vmatmul.mubr.msk.bf16.gmra.mrb[12].mxu1 %vm10448_vm5, %v11028_v10 }
 0x543   : > { %8406 = vmatprep.mubr.msk.bf16.mxu1 %vm10448_vm5, %v10756_v44  ;;  %v9416_v44 = vld [vmem:[#allocation9 + $0x220] sm:$0xff]  }
 0x54a   : > { %8407 = vmatmul.mubr.msk.bf16.vlgmr.msra.gmra.mrb[16].mxu1 %vm10448_vm5, %v10768_v53 }
 0x54b   : > { %8410 = vmatprep.mubr.msk.bf16.mxu1 %vm10448_vm5, %v10803_v49  ;;  %8439 = vmatpush3.bf16.msra.mxu1 %v9412_v25  ;;  %v9447_v25 = vld [vmem:[%s9912_s20 + $0x98] sm:$0xff] }
 0x54c   : > { %8440 = vmatprep.subr.bf16.mxu1 %v9413_v62 }
 0x54f   : > { %8441 = vmatpush3.bf16.msra.mxu1 %v9413_v62  ;;  %v9450_v62 = vld [vmem:[%s9912_s20 + $0xb0] sm:$0xff] }
 0x550   : > { %8442 = vmatprep.subr.bf16.mxu1 %v9414_v4 }
 0x552   : > { %8411 = vmatmul.mubr.msk.bf16.gmra.mrb[20].mxu1 %vm10448_vm5, %v10818_v54 }
 0x553   : > { %8414 = vmatprep.mubr.msk.bf16.mxu1 %vm10448_vm5, %v10840_v28  ;;  %8443 = vmatpush3.bf16.msra.mxu1 %v9414_v4  ;;  %v9451_v4 = vld [vmem:[%s9912_s20 + $0xb8] sm:$0xff] }
 0x554   : > { %8444 = vmatprep.subr.bf16.mxu1 %v9415_v5 }
 0x557   : > { %8445 = vmatpush3.bf16.msra.mxu1 %v9415_v5  ;;  %v5802_v5 = vpack.c.bf16 %v9451_v4, %v9450_v62 }
 0x558   : > { %8446 = vmatprep.subr.bf16.mxu1 %v9416_v44 }
 0x55a   : > { %8415 = vmatmul.mubr.msk.bf16.gmra.mrb[24].mxu1 %vm10448_vm5, %v10849_v43 }
 0x55b   : > { %8418 = vmatprep.mubr.msk.bf16.mxu1 %vm10448_vm5, %v10883_v20  ;;  %8447 = vmatpush3.bf16.msra.mxu1 %v9416_v44  ;;  %v9452_v44 = vld [vmem:[%s9912_s20 + $0xc0] sm:$0xff] }
 0x55c   : > { %8448 = vmatprep.subr.bf16.mxu1 %v9417_v19 }
 0x55f   : > { %8449 = vmatpush3.bf16.msra.mxu1 %v9417_v19  ;;  %v9453_v19 = vld [vmem:[%s9912_s20 + $0xc8] sm:$0xff] }
 0x560   : > { %8450 = vmatprep.subr.bf16.mxu1 %v9418_v55 }
 0x562   : > { %8419 = vmatmul.mubr.msk.bf16.gmra.mrb[28].mxu1 %vm10448_vm5, %v11576_v11 }
 0x563   : > { %8422 = vmatprep.mubr.msk.bf16.mxu1 %vm10448_vm5, %v11577_v51  ;;  %8451 = vmatpush3.bf16.msra.mxu1 %v9418_v55  ;;  %v5803_v55 = vpack.c.bf16 %v9453_v19, %v9452_v44 }
 0x564   : > { %8452 = vmatprep.subr.bf16.mxu1 %v9419_v23 }
 0x567   : > { %8453 = vmatpush3.bf16.msra.mxu1 %v9419_v23  ;;  %v9454_v23 = vld [vmem:[%s9912_s20 + $0xd0] sm:$0xff] }
 0x568   : > { %8486 = vmatprep.subr.bf16.mxu1 %v9420_v13 }
 0x56a   : > { %8423 = vmatmul.mubr.msk.bf16.gmra.mrb[0].mxu1 %vm10448_vm5, %v11578_v1 }
 0x56b   : > { %8426 = vmatprep.mubr.msk.bf16.mxu1 %vm10448_vm5, %v11579_v9 }
 0x572   : > { %8427 = vmatmul.mubr.msk.bf16.gmra.mrb[4].mxu1 %vm10448_vm5, %v11580_v6 }
 0x573   : > { %8430 = vmatprep.mubr.msk.bf16.mxu1 %vm10448_vm5, %v10995_v45 }
 0x57a   : > { %8431 = vmatmul.mubr.msk.bf16.gmra.mrb[8].mxu1 %vm10448_vm5, %v11000_v21 }
 0x57b   : > { %8434 = vmatprep.mubr.msk.bf16.mxu1 %vm10448_vm5, %v11028_v10 }
 0x582   : > { %8435 = vmatmul.mubr.msk.bf16.gmra.mrb[12].mxu1 %vm10448_vm5, %v11026_v2 }
 0x583   : > { %8454 = vmatprep.mubr.msk.bf16.mxu1 %vm10448_vm5, %v10768_v53  ;;  %v9424_v53 = vld [vmem:[#allocation10 + $0x20] sm:$0xff]  }
 0x58a   : > { %8455 = vmatmul.mubr.msk.bf16.vlgmr.msra.gmra.mrb[16].mxu1 %vm10448_vm5, %v10803_v49  ;;  %v9425_v49 = vld [vmem:[#allocation10 + $0x28] sm:$0xff]  }
 0x58b   : > { %8458 = vmatprep.mubr.msk.bf16.mxu1 %vm10448_vm5, %v10818_v54  ;;  %8487 = vmatpush3.bf16.msra.mxu1 %v9420_v13  ;;  %v9426_v54 = vld [vmem:[#allocation10 + $0x30] sm:$0xff]   ;;  %v9455_v13 = vld [vmem:[%s9912_s20 + $0xd8] sm:$0xff] }
 0x58c   : > { %8488 = vmatprep.subr.bf16.mxu1 %v9421_v7 }
 0x58f   : > { %8489 = vmatpush3.bf16.msra.mxu1 %v9421_v7  ;;  %v5804_v7 = vpack.c.bf16 %v9455_v13, %v9454_v23 }
 0x590   : > { %8490 = vmatprep.subr.bf16.mxu1 %v9422_v12 }
 0x592   : > { %8459 = vmatmul.mubr.msk.bf16.gmra.mrb[20].mxu1 %vm10448_vm5, %v10840_v28  ;;  %v9427_v28 = vld [vmem:[#allocation10 + $0x38] sm:$0xff]  }
 0x593   : > { %8462 = vmatprep.mubr.msk.bf16.mxu1 %vm10448_vm5, %v10849_v43  ;;  %8491 = vmatpush3.bf16.msra.mxu1 %v9422_v12  ;;  %v9428_v43 = vld [vmem:[%s9912_s20] sm:$0xff] }
 0x594   : > { %8492 = vmatprep.subr.bf16.mxu1 %v9423_v30  ;;  %v9456_v12 = vld [vmem:[%s9912_s20 + $0xe0] sm:$0xff] }
 0x597   : > { %8493 = vmatpush3.bf16.msra.mxu1 %v9423_v30  ;;  %v9457_v30 = vld [vmem:[%s9912_s20 + $0xe8] sm:$0xff] }
 0x598   : > { %8494 = vmatprep.subr.bf16.mxu1 %v9424_v53 }
 0x59a   : > { %8463 = vmatmul.mubr.msk.bf16.gmra.mrb[24].mxu1 %vm10448_vm5, %v10883_v20  ;;  %v9429_v20 = vld [vmem:[%s9912_s20 + $0x8] sm:$0xff] }
 0x59b   : > { %8466 = vmatprep.mubr.msk.bf16.mxu1 %vm10448_vm5, %v11576_v11  ;;  %8495 = vmatpush3.bf16.msra.mxu1 %v9424_v53  ;;  %v5791_v37 = vpack.c.bf16 %v9429_v20, %v9428_v43  ;;  %v9446_v11 = vld [vmem:[%s9912_s20 + $0x90] sm:$0xff]  ;;  %v5805_v53 = vpack.c.bf16 %v9457_v30, %v9456_v12  ;;  %v11388_v43 = vld [vmem:[%s11536_s4] ss:$0 sm:$0xff] }
 0x59c   : > { %8496 = vmatprep.subr.bf16.mxu1 %v9425_v49  ;;  %v3554_v20 = vadd.f32 %v11140_v46, %v11388_v43  ;;  %v3558_v41 = vadd.f32 %v11150_v60, %v11388_v43  ;;  %v3566_v13 = vadd.f32 %v11170_v39, %v11388_v43 }
 0x59f   : > { %8497 = vmatpush3.bf16.msra.mxu1 %v9425_v49  ;;  %v9458_v49 = vld [vmem:[%s9912_s20 + $0xf0] sm:$0xff] }
 0x5a0   : > { %8498 = vmatprep.subr.bf16.mxu1 %v9426_v54 }
 0x5a2   : > { %8467 = vmatmul.mubr.msk.bf16.gmra.mrb[28].mxu1 %vm10448_vm5, %v11577_v51  ;;  %v5800_v51 = vpack.c.bf16 %v9447_v25, %v9446_v11  ;;  %v3562_v25 = vadd.f32 %v11160_v17, %v11388_v43 }
 0x5a3   : > { %8470 = vmatprep.mubr.msk.bf16.mxu1 %vm10448_vm5, %v11578_v1  ;;  %8499 = vmatpush3.bf16.msra.mxu1 %v9426_v54  ;;  %v9448_v1 = vld [vmem:[%s9912_s20 + $0xa0] sm:$0xff]  ;;  %v9459_v54 = vld [vmem:[%s9912_s20 + $0xf8] sm:$0xff] }
 0x5a4   : > { %8500 = vmatprep.subr.bf16.mxu1 %v9427_v28 }
 0x5a7   : > { %8501 = vmatpush3.bf16.msra.mxu1 %v9427_v28  ;;  %v5806_v28 = vpack.c.bf16 %v9459_v54, %v9458_v49 }
 0x5aa   : > { %8471 = vmatmul.mubr.msk.bf16.gmra.mrb[0].mxu1 %vm10448_vm5, %v11579_v9  ;;  %v9449_v9 = vld [vmem:[%s9912_s20 + $0xa8] sm:$0xff] }
 0x5ab   : > { %8474 = vmatprep.mubr.msk.bf16.mxu1 %vm10448_vm5, %v11580_v6  ;;  %v5801_v6 = vpack.c.bf16 %v9449_v9, %v9448_v1 }
 0x5b2   : > { %8475 = vmatmul.mubr.msk.bf16.gmra.mrb[4].mxu1 %vm10448_vm5, %v10995_v45  ;;  %v9430_v45 = vld [vmem:[%s9912_s20 + $0x10] sm:$0xff] }
 0x5b3   : > { %8478 = vmatprep.mubr.msk.bf16.mxu1 %vm10448_vm5, %v11000_v21  ;;  %v9431_v21 = vld [vmem:[%s9912_s20 + $0x18] sm:$0xff] }
 0x5ba   : > { %8479 = vmatmul.mubr.msk.bf16.gmra.mrb[8].mxu1 %vm10448_vm5, %v11028_v10  ;;  %v5792_v10 = vpack.c.bf16 %v9431_v21, %v9430_v45  ;;  %v11397_v45 = vld [vmem:[%s11538_s6] ss:$0 sm:$0xff]  ;;  %v3553_v21 = vadd.f32 %v11136_v27, %v11388_v43 }
 0x5bb   : > { %8482 = vmatprep.mubr.msk.bf16.mxu1 %vm10448_vm5, %v11026_v2  ;;  %v5793_v2 = vpack.c.bf16 %v9433_v26, %v9432_v42  ;;  %v8589_v46 = vadd.f32 %v11397_v45, %v3554_v20  ;;  %v8613_v62 = vadd.f32 %v11397_v45, %v3562_v25  ;;  %v8625_v49 = vadd.f32 %v11397_v45, %v3566_v13 }
 0x5c2   : > { %8483 = vmatmul.mubr.msk.bf16.gmra.mrb[12].mxu1 %vm10448_vm5, %v10445_v14  ;;  %v9437_v14 = vld [vmem:[%s9912_s20 + $0x48] sm:$0xff]  ;;  %s9661_s20 = smov [#allocation12]  }
 0x5c3   : > { %8502 = vmatprep.mubr.bf16.mxu1 %v5791_v37  ;;  %v5795_v56 = vpack.c.bf16 %v9437_v14, %v9436_v47  ;;  %v3552_v37 = vadd.f32 %v11388_v43, %v11142_v18  ;;  %s9578_s30 = sshll.u32 %s9661_s20, 4  ;;  %s9579_s30 = int_to_ptr.vmem [resolvable:$false] %s9578_s30 }
 0x5c4   : > { %s9580_s9 = scalar_lea.vmem %s9579_s30, 8192  ;;  %p9581_p12 = scmp.lt.s32.totalorder %s11485_s12, %s9579_s30 }
 0x5c5   : > { %v8592_v18 = vadd.f32 %v11397_v45, %v3552_v37  ;;  %p9582_p1 = scmp.lt.s32.totalorder %s9580_s9, %s9574_s13 }
 0x5c7   : > { %p9583_p2 = por %p9582_p1, %p9581_p12 }
 0x5c9   : > { %p9584_p4 = pnand %p9583_p2, %p9577_p7 }
 0x5ca   : > { %8503 = vmatmul.mubr.bf16.vlgmr.msra.gmra.mrb[16].mxu1 %v5792_v10  ;;  %v3551_v10 = vadd.f32 %v11388_v43, %v11138_v52  ;;  %v3555_v52 = vadd.f32 %v11388_v43, %v11148_v15 }
 0x5cb   : > { %8506 = vmatprep.mubr.bf16.mxu1 %v5793_v2 }
 0x5cc   : > { %v8598_v60 = vadd.f32 %v11397_v45, %v3555_v52 }
 0x5d2   : > { %8507 = vmatmul.mubr.bf16.gmra.mrb[20].mxu1 %v5794_v16  ;;  %v3557_v16 = vadd.f32 %v11146_v57, %v11388_v43  ;;  %v3556_v57 = vadd.f32 %v11388_v43, %v11152_v33  ;;  %v3561_v33 = vadd.f32 %v11156_v50, %v11388_v43 }
 0x5d3   : > { %8510 = vmatprep.mubr.bf16.mxu1 %v5795_v56 }
 0x5d4   : > { %v8595_v15 = vadd.f32 %v11397_v45, %v3557_v16  ;;  %v8607_v50 = vadd.f32 %v11397_v45, %v3561_v33 }
 0x5da   : > { %8511 = vmatmul.mubr.bf16.gmra.mrb[24].mxu1 %v5796_v22 }
 0x5db   : > { %8514 = vmatprep.mubr.bf16.mxu1 %v5797_v8  ;;  %v8601_v8 = vadd.f32 %v11397_v45, %v3558_v41 }
 0x5e2   : > { %8515 = vmatmul.mubr.bf16.gmra.mrb[28].mxu1 %v5798_v29  ;;  %v8604_v29 = vadd.f32 %v11397_v45, %v3556_v57 }
 0x5e3   : > { %8518 = vmatprep.mubr.bf16.mxu1 %v5799_v31  ;;  %v3559_v31 = vadd.f32 %v11388_v43, %v11158_v32 }
 0x5e5   : > { %v8610_v9 = vadd.f32 %v11397_v45, %v3559_v31 }
 0x5ea   : > { %8519 = vmatmul.mubr.bf16.gmra.mrb[0].mxu1 %v5800_v51  ;;  %v3560_v51 = vadd.f32 %v11388_v43, %v11162_v3  ;;  %v3565_v3 = vadd.f32 %v11166_v38, %v11388_v43 }
 0x5eb   : > { %8522 = vmatprep.mubr.bf16.mxu1 %v5801_v6 }
 0x5ec   : > { %v8616_v17 = vadd.f32 %v11397_v45, %v3560_v51  ;;  %v8619_v38 = vadd.f32 %v11397_v45, %v3565_v3 }
 0x5f2   : > { %8523 = vmatmul.mubr.bf16.gmra.mrb[4].mxu1 %v5802_v5 }
 0x5f3   : > { %8526 = vmatprep.mubr.bf16.mxu1 %v5803_v55  ;;  %v3563_v55 = vadd.f32 %v11388_v43, %v11168_v40 }
 0x5f5   : > { %v8622_v30 = vadd.f32 %v11397_v45, %v3563_v55 }
 0x5fa   : > { %8527 = vmatmul.mubr.bf16.gmra.mrb[8].mxu1 %v5804_v7  ;;  %v3564_v7 = vadd.f32 %v11388_v43, %v11172_v34 }
 0x5fb   : > { %8530 = vmatprep.mubr.bf16.mxu1 %v5805_v53 }
 0x602   : > { %8531 = vmatmul.mubr.bf16.gmra.mrb[12].mxu1 %v5806_v28  ;;  %v8628_v28 = vadd.f32 %v11397_v45, %v3564_v7 }
 0x69d   : > { %v8504_v42 = vpop.f32.mrb[16].mxu1 }
 0x69e   : > { %v8583_v26 = vadd.f32 %v8504_v42, %v3553_v21  ;;  %v5912_v2 = vpop.f32.mrb[17].mxu1  ;;  %v8632_v21 = vadd.f32 %v11397_v45, %v11388_v43 }
 0x69f   : > { %v8586_v58 = vadd.f32 %v5912_v2, %v3551_v10  ;;  %v8505_v36 = vpop.f32.mrb[18].mxu1 }
 0x6a0   : > { %v8584_v47 = vadd.f32 %v8583_v26, %v11397_v45  ;;  %v8590_v14 = vadd.f32 %v8589_v46, %v8505_v36  ;;  %v5915_v27 = vpop.f32.mrb[19].mxu1 }
 0x6a1   : > { %v8587_v56 = vadd.f32 %v8586_v58, %v11397_v45  ;;  %v8593_v63 = vadd.f32 %v8592_v18, %v5915_v27 }
 0x6a2   : > { %6073 = vst [vmem:[%s11415_s15 + $0x10] sm:$0xff] %v8584_v47  ;;  %6074 = vst [vmem:[%s11415_s15 + $0x18] sm:$0xff] %v8590_v14 }
 0x6a3   : > { %6071 = vst [vmem:[%s11415_s15] sm:$0xff] %v8587_v56  ;;  %6072 = vst [vmem:[%s11415_s15 + $0x8] sm:$0xff] %v8593_v63 }
 0x6a5   : > { %v8508_v22 = vpop.f32.mrb[20].mxu1 }
 0x6a6   : > { %v8596_v48 = vadd.f32 %v8595_v15, %v8508_v22  ;;  %v5928_v59 = vpop.f32.mrb[21].mxu1 }
 0x6a7   : > { %v8599_v35 = vadd.f32 %v8598_v60, %v5928_v59  ;;  %v8509_v0 = vpop.f32.mrb[22].mxu1 }
 0x6a8   : > { %6077 = vst [vmem:[%s11415_s15 + $0x30] sm:$0xff] %v8596_v48  ;;  %v8602_v61 = vadd.f32 %v8601_v8, %v8509_v0  ;;  %v5931_v24 = vpop.f32.mrb[23].mxu1 }
 0x6a9   : > { %6075 = vst [vmem:[%s11415_s15 + $0x20] sm:$0xff] %v8599_v35  ;;  %v8605_v11 = vadd.f32 %v8604_v29, %v5931_v24 }
 0x6aa   : > { %6078 = vst [vmem:[%s11415_s15 + $0x38] sm:$0xff] %v8602_v61 }
 0x6ab   : > { %6076 = vst [vmem:[%s11415_s15 + $0x28] sm:$0xff] %v8605_v11 }
 0x6ad   : > { %v8512_v1 = vpop.f32.mrb[24].mxu1 }
 0x6ae   : > { %v8608_v6 = vadd.f32 %v8607_v50, %v8512_v1  ;;  %v5944_v32 = vpop.f32.mrb[25].mxu1 }
 0x6af   : > { %v8611_v4 = vadd.f32 %v8610_v9, %v5944_v32  ;;  %v8513_v5 = vpop.f32.mrb[26].mxu1 }
 0x6b0   : > { %6081 = vst [vmem:[%s11415_s15 + $0x50] sm:$0xff] %v8608_v6  ;;  %v8614_v44 = vadd.f32 %v8613_v62, %v8513_v5  ;;  %v5947_v19 = vpop.f32.mrb[27].mxu1 }
 0x6b1   : > { %6079 = vst [vmem:[%s11415_s15 + $0x40] sm:$0xff] %v8611_v4  ;;  %v8617_v23 = vadd.f32 %v8616_v17, %v5947_v19 }
 0x6b2   : > { %6082 = vst [vmem:[%s11415_s15 + $0x58] sm:$0xff] %v8614_v44 }
 0x6b3   : > { %6080 = vst [vmem:[%s11415_s15 + $0x48] sm:$0xff] %v8617_v23 }
 0x6b5   : > { %v8516_v12 = vpop.f32.mrb[28].mxu1 }
 0x6b6   : > { %v8620_v40 = vadd.f32 %v8619_v38, %v8516_v12  ;;  %v5960_v53 = vpop.f32.mrb[29].mxu1 }
 0x6b7   : > { %v8623_v54 = vadd.f32 %v8622_v30, %v5960_v53  ;;  %v8517_v39 = vpop.f32.mrb[30].mxu1 }
 0x6b8   : > { %6085 = vst [vmem:[%s11415_s15 + $0x70] sm:$0xff] %v8620_v40  ;;  %v8626_v34 = vadd.f32 %v8625_v49, %v8517_v39  ;;  %v5963_v20 = vpop.f32.mrb[31].mxu1 }
 0x6b9   : > { %6083 = vst [vmem:[%s11415_s15 + $0x60] sm:$0xff] %v8623_v54  ;;  %v8629_v37 = vadd.f32 %v8628_v28, %v5963_v20 }
 0x6ba   : > { %6086 = vst [vmem:[%s11415_s15 + $0x78] sm:$0xff] %v8626_v34 }
 0x6bb   : > { %6084 = vst [vmem:[%s11415_s15 + $0x68] sm:$0xff] %v8629_v37 }
 0x6bd   : > { %v8520_v10 = vpop.f32.mrb[0].mxu1 }
 0x6be   : > { %v8631_v42 = vadd.f32 %v8632_v21, %v8520_v10  ;;  %v5976_v26 = vpop.f32.mrb[1].mxu1 }
 0x6bf   : > { %v8633_v2 = vadd.f32 %v8632_v21, %v5976_v26  ;;  %v8521_v46 = vpop.f32.mrb[2].mxu1 }
 0x6c0   : > { %6089 = vst [vmem:[%s11415_s15 + $0x90] sm:$0xff] %v8631_v42  ;;  %v8635_v58 = vadd.f32 %v8632_v21, %v8521_v46  ;;  %v5979_v36 = vpop.f32.mrb[3].mxu1 }
 0x6c1   : > { %6087 = vst [vmem:[%s11415_s15 + $0x80] sm:$0xff] %v8633_v2  ;;  %v8637_v18 = vadd.f32 %v8632_v21, %v5979_v36 }
 0x6c2   : > { %6090 = vst [vmem:[%s11415_s15 + $0x98] sm:$0xff] %v8635_v58 }
 0x6c3   : > { %6088 = vst [vmem:[%s11415_s15 + $0x88] sm:$0xff] %v8637_v18 }
 0x6c5   : > { %v8524_v16 = vpop.f32.mrb[4].mxu1 }
 0x6c6   : > { %v8639_v47 = vadd.f32 %v8632_v21, %v8524_v16  ;;  %v5992_v43 = vpop.f32.mrb[5].mxu1 }
 0x6c7   : > { %v8641_v45 = vadd.f32 %v8632_v21, %v5992_v43  ;;  %v8525_v14 = vpop.f32.mrb[6].mxu1 }
 0x6c8   : > { %6093 = vst [vmem:[%s11415_s15 + $0xb0] sm:$0xff] %v8639_v47  ;;  %v8643_v27 = vadd.f32 %v8632_v21, %v8525_v14  ;;  %v5995_v52 = vpop.f32.mrb[7].mxu1 }
 0x6c9   : > { %6091 = vst [vmem:[%s11415_s15 + $0xa0] sm:$0xff] %v8641_v45  ;;  %v8645_v56 = vadd.f32 %v8632_v21, %v5995_v52 }
 0x6ca   : > { %6094 = vst [vmem:[%s11415_s15 + $0xb8] sm:$0xff] %v8643_v27 }
 0x6cb   : > { %6092 = vst [vmem:[%s11415_s15 + $0xa8] sm:$0xff] %v8645_v56 }
 0x6cd   : > { %v8528_v63 = vpop.f32.mrb[8].mxu1 }
 0x6ce   : > { %v8647_v41 = vadd.f32 %v8632_v21, %v8528_v63  ;;  %v6008_v57 = vpop.f32.mrb[9].mxu1 }
 0x6cf   : > { %v8649_v15 = vadd.f32 %v8632_v21, %v6008_v57  ;;  %v8529_v22 = vpop.f32.mrb[10].mxu1 }
 0x6d0   : > { %6097 = vst [vmem:[%s11415_s15 + $0xd0] sm:$0xff] %v8647_v41  ;;  %v8651_v60 = vadd.f32 %v8632_v21, %v8529_v22  ;;  %v6011_v48 = vpop.f32.mrb[11].mxu1 }
 0x6d1   : > { %6095 = vst [vmem:[%s11415_s15 + $0xc0] sm:$0xff] %v8649_v15  ;;  %v8653_v59 = vadd.f32 %v8632_v21, %v6011_v48 }
 0x6d2   : > { %6098 = vst [vmem:[%s11415_s15 + $0xd8] sm:$0xff] %v8651_v60 }
 0x6d3   : > { %6096 = vst [vmem:[%s11415_s15 + $0xc8] sm:$0xff] %v8653_v59 }
 0x6d5   : > { %v8532_v8 = vpop.f32.mrb[12].mxu1 }
 0x6d6   : > { %v8655_v35 = vadd.f32 %v8632_v21, %v8532_v8  ;;  %v6024_v0 = vpop.f32.mrb[13].mxu1 }
 0x6d7   : > { %v8657_v29 = vadd.f32 %v8632_v21, %v6024_v0  ;;  %v8533_v33 = vpop.f32.mrb[14].mxu1 }
 0x6d8   : > { %6101 = vst [vmem:[%s11415_s15 + $0xf0] sm:$0xff] %v8655_v35  ;;  %v8659_v61 = vadd.f32 %v8632_v21, %v8533_v33  ;;  %v6027_v24 = vpop.f32.mrb[15].mxu1 }
 0x6d9   : > { %6099 = vst [vmem:[%s11415_s15 + $0xe0] sm:$0xff] %v8657_v29  ;;  %v8661_v31 = vadd.f32 %v8632_v21, %v6027_v24 }
 0x6da   : > { %6102 = vst [vmem:[%s11415_s15 + $0xf8] sm:$0xff] %v8659_v61 }
 0x6db   : > { %6100 = vst [vmem:[%s11415_s15 + $0xe8] sm:$0xff] %v8661_v31 }
 0x6dc   : > { %9587 = shalt.err (!%p9584_p4)
}
 0x6dd   : > { %s9588_s23 = scalar_lea.hbm %s11483_s16, 4096  ;;  %s9592_s14 = scalar_lea.hbm %s11539_s7, 8192 }
 0x6de   : > { %p9589_p9 = scmp.ne.s32.totalorder %s11483_s16, %s9588_s23  ;;  %p9593_p8 = scmp.lt.u32.totalorder %s11483_s16, %s11539_s7 }
 0x6df   : > { %p9594_p13 = scmp.lt.u32.totalorder %s9592_s14, %s9588_s23  ;;  %p9596_p10 = scmp.lt.u32.totalorder %s9588_s23, %s11483_s16 }
 0x6e0   : > { %p9590_p0 = pnand %p9589_p9, %p9858_p5 }
 0x6e1   : > { %p9595_p6 = por %p9594_p13, %p9593_p8 }
 0x6e2   : > { %p9591_p11 = pneg %p9590_p0 }
 0x6e3   : > { %p9597_p3 = por %p9596_p10, %p9595_p6 }
 0x6e5   : > { %p9598_p7 = pnand %p9597_p3, %p9591_p11 }
 0x6e7   : > { %9601 = shalt.err (!%p9598_p7)
}
 0x6e8   : > { %s9662_s8 = smov 128   ;;  %s9663_s17 = smov 8  }
 0x6e9   : > { %9204 = dma.vmem_to_hbm [thread:$0]  (%p9858_p5), %s11485_s12, 4096, %s11483_s16, %s6104_s28, %s9662_s8, %s9662_s8, %s9663_s17  }
 0x6ea PF: > { %s11581_s13 = sld [smem:[#allocation17_spill]]  ;;  %s6132_s20 = sand.u32 1, %s9636_s24  }
 0x6eb   : > { %p11583_p1 = scmp.ge.s32.totalorder %s9648_s27, 2  ;;  %s6133_s30 = scalar_lea.sflag [#allocation6], %s6132_s20 }
 0x6f0   : > { %p11582_p12 = scmp.ne.s32.totalorder %s11581_s13, 0 }
 0x6f2   : > { %p9221_p2 = pnand %p11583_p1, %p11582_p12 }
 0x6f4   : > { %9631 = dma.done.wait (!%p9221_p2), %s6133_s30, 4096  }
 0x6f5   : > { %9633 = vsyncadd (!%p9221_p2), %s6133_s30, 4294963200  ;;  %p22_p4 = scmp.ge.s32.totalorder %s9844_s22, 4   ;;  %s11584_s24 = smov %s9640_s25 }
 0x6f6   : > { %s11585_s25 = smov %s9644_s26  ;;  %s11586_s26 = smov %s9854_s18 }
 0x6f7   : > { %s11587_s27 = smov %s9844_s22  ;;  %24 = sbr.rel (!%p22_p4) target bundleno = 7 (0x7), region = 125 }
 0x6fe   :  { %6138 = vsyncpa [#allocation5], 1 }
 0x6ff   :  { %6140 = vsyncpa [#allocation5 + $0x1], 1 }
 0x700   :  { %6141 = vsyncpa [#allocation8], 1 }
 0x701   :  { %6142 = vsyncpa [#allocation11], 1 }
 0x702   :  { %6143 = vsyncpa [#allocation6], 1 }
 0x703   :  { %6145 = vsyncpa [#allocation6 + $0x1], 1 }

</bundles_post_ra>
